<compile_context>
chip_gen: v7x
topology: tpu7x:2x2x1
jax: 0.10.0
libtpu: 0.0.40
codegen_flags: <defaults>
</compile_context>

<pallas_src>
import jax
import jax.numpy as jnp
from jax import lax
from jax.experimental import pallas as pl
from jax.experimental.pallas import tpu as pltpu

# ----------------------------- configuration ---------------------------------
# Original values:  latent=512, lstm_1_hidden=2048, conductor_hidden=1024,
#                   l2_decoder_hidden=1024.
LATENT_DIM = 128           # latent_dimension
LSTM_1_HIDDEN = 256        # lstm_1_hidden_size
LSTM_1_LAYERS = 2          # lstm_1_layers
COND_HIDDEN = 128          # lstm_conductor_hidden_size
COND_INPUT = 1             # lstm_conductor_input_size (input is all zeros -> matmul skipped)
DEC_HIDDEN = 128           # lstm_l2_decoder_hidden_size

INPUT_SIZE = 90            # pianoroll=False -> 90
INPUT_PAD = 128            # pitch dim padded to 128 lanes inside the kernels
RESOLUTION_PER_BEAT = 2    # data.resolution_per_beat (undefined in source; pick small)
BARS = 2                   # `bars` ctor arg
SEQ_LEN = BARS * 4 * RESOLUTION_PER_BEAT   # 16
U = BARS                                   # 2

BATCH = 2
B_PAD = 8                  # pad batch to 8 sublanes for TPU-friendly tiles


def _pick(dim, prefs):
    for t in prefs:
        if dim % t == 0:
            return t
    return dim


# ------------------------- generic fused linear kernel ------------------------
def _linear_kernel(x_ref, w_ref, b_ref, o_ref, acc_ref):
    k = pl.program_id(1)

    @pl.when(k == 0)
    def _():
        acc_ref[...] = jnp.zeros_like(acc_ref)

    acc_ref[...] += jnp.dot(x_ref[...].astype(w_ref.dtype), w_ref[...],
                            preferred_element_type=jnp.float32)

    @pl.when(k == pl.num_programs(1) - 1)
    def _():
        o_ref[...] = (acc_ref[...] + b_ref[...]).astype(o_ref.dtype)


def linear(x, w, b):
    """y = x @ w + b.  x: (M, K) f32, w: (K, N) bf16, b: (1, N) f32."""
    M, K = x.shape
    N = w.shape[1]
    tn = _pick(N, (256, 128))          # 256 fills the 256-wide MXU N dim on v6e/v7x
    tk = _pick(K, (512, 256, 128))
    grid = (N // tn, K // tk)
    return pl.pallas_call(
        _linear_kernel,
        out_shape=jax.ShapeDtypeStruct((M, N), jnp.float32),
        grid=grid,
        in_specs=[
            pl.BlockSpec((M, tk), lambda j, k: (0, k)),
            pl.BlockSpec((tk, tn), lambda j, k: (k, j)),
            pl.BlockSpec((1, tn), lambda j, k: (0, j)),
        ],
        out_specs=pl.BlockSpec((M, tn), lambda j, k: (0, j)),
        scratch_shapes=[pltpu.VMEM((M, tn), jnp.float32)],
        compiler_params=pltpu.CompilerParams(
            dimension_semantics=("parallel", "arbitrary")),
    )(x, w, b)


# ------------------ fused bidirectional recurrent LSTM scan --------------------
def _bidir_lstm_kernel(xproj_ref, whh_ref, hs_ref, h_sc, c_sc):
    """Grid = (direction, time).  Time is sequential; direction is independent.

    xproj_ref: (B, 4H)  precomputed x_t @ W_ih + b for this direction/step
    whh_ref  : (H, 4H)  recurrent weights of this direction (VMEM-resident)
    hs_ref   : (B, H)   slice of the (T, B, 2H) output ([fwd | bwd] on lanes)
    """
    t = pl.program_id(1)
    H = c_sc.shape[-1]

    @pl.when(t == 0)
    def _():
        h_sc[...] = jnp.zeros_like(h_sc)     # torch default zero initial state
        c_sc[...] = jnp.zeros_like(c_sc)

    gates = xproj_ref[...] + jnp.dot(h_sc[...].astype(whh_ref.dtype), whh_ref[...],
                                     preferred_element_type=jnp.float32)
    i_g = jax.nn.sigmoid(gates[:, 0:H])
    f_g = jax.nn.sigmoid(gates[:, H:2 * H])
    g_g = jnp.tanh(gates[:, 2 * H:3 * H])
    o_g = jax.nn.sigmoid(gates[:, 3 * H:4 * H])
    c_new = f_g * c_sc[...] + i_g * g_g
    h_new = o_g * jnp.tanh(c_new)
    c_sc[...] = c_new
    h_sc[...] = h_new
    hs_ref[...] = h_new.astype(hs_ref.dtype)


def bidir_lstm_scan(xproj, whh):
    """xproj: (T, B, 8H) f32 ([fwd|bwd] gates), whh: (2, H, 4H) bf16 -> (T, B, 2H)."""
    T, bp, G2 = xproj.shape
    G = G2 // 2
    H = G // 4
    Tm1 = T - 1

    def tmap(d, t):      # fwd: t ;  bwd: T-1-t  (output stays in original time order)
        return ((1 - d) * t + d * (Tm1 - t), 0, d)

    return pl.pallas_call(
        _bidir_lstm_kernel,
        out_shape=jax.ShapeDtypeStruct((T, bp, 2 * H), jnp.float32),
        grid=(2, T),
        in_specs=[
            pl.BlockSpec((None, bp, G), tmap),
            pl.BlockSpec((None, H, G), lambda d, t: (d, 0, 0)),
        ],
        out_specs=pl.BlockSpec((None, bp, H), tmap),
        scratch_shapes=[pltpu.VMEM((bp, H), jnp.float32),
                        pltpu.VMEM((bp, H), jnp.float32)],
        compiler_params=pltpu.CompilerParams(
            dimension_semantics=("parallel", "arbitrary")),
    )(xproj, whh)


# ------------------- fused fc_mean + fc_std (softplus) kernel ------------------
def _mean_std_kernel(h_ref, w_ref, b_ref, mean_ref, std_ref):
    y = jnp.dot(h_ref[...].astype(w_ref.dtype), w_ref[...],
                preferred_element_type=jnp.float32) + b_ref[...]
    L = mean_ref.shape[1]
    mean_ref[...] = y[:, :L]
    s = y[:, L:]
    # numerically-stable softplus log1p(exp(s))
    std_ref[...] = jnp.maximum(s, 0.0) + jnp.log1p(jnp.exp(-jnp.abs(s)))


def mean_std(h_cat, w, b):
    bp = h_cat.shape[0]
    L = w.shape[1] // 2
    return pl.pallas_call(
        _mean_std_kernel,
        out_shape=(jax.ShapeDtypeStruct((bp, L), jnp.float32),
                   jax.ShapeDtypeStruct((bp, L), jnp.float32)),
    )(h_cat, w, b)


# ------------- fully-fused conductor (fc_2 + 2-layer LSTM) kernel --------------
def _conductor_kernel(z_ref, w2_ref, b2_ref, b0_ref, whh0_ref, wih1_ref, whh1_ref,
                      b1_ref, emb_ref, h0_sc, c0_sc, h1_sc, c1_sc):
    """Grid = (U,), sequential.  Conductor input is all-zero, so layer-0's input
    projection reduces to its bias.  fc_2 + tanh run once at u == 0."""
    u = pl.program_id(0)
    C = COND_HIDDEN

    @pl.when(u == 0)
    def _():
        t0 = jnp.tanh(jnp.dot(z_ref[...].astype(w2_ref.dtype), w2_ref[...],
                              preferred_element_type=jnp.float32) + b2_ref[...])
        h0_sc[...] = t0[:, 0:C]            # layer-0 h
        h1_sc[...] = t0[:, C:2 * C]        # layer-1 h
        c0_sc[...] = t0[:, 2 * C:3 * C]    # layer-0 c
        c1_sc[...] = t0[:, 3 * C:4 * C]    # layer-1 c

    # ---- conductor layer 0:  input = 0 -> gates = bias + h @ W_hh ----
    g0 = b0_ref[...] + jnp.dot(h0_sc[...].astype(whh0_ref.dtype), whh0_ref[...],
                               preferred_element_type=jnp.float32)
    i0 = jax.nn.sigmoid(g0[:, 0:C])
    f0 = jax.nn.sigmoid(g0[:, C:2 * C])
    gg0 = jnp.tanh(g0[:, 2 * C:3 * C])
    o0 = jax.nn.sigmoid(g0[:, 3 * C:4 * C])
    c0n = f0 * c0_sc[...] + i0 * gg0
    h0n = o0 * jnp.tanh(c0n)
    c0_sc[...] = c0n
    h0_sc[...] = h0n

    # ---- conductor layer 1:  input = layer-0 hidden ----
    g1 = (b1_ref[...]
          + jnp.dot(h0n.astype(wih1_ref.dtype), wih1_ref[...],
                    preferred_element_type=jnp.float32)
          + jnp.dot(h1_sc[...].astype(whh1_ref.dtype), whh1_ref[...],
                    preferred_element_type=jnp.float32))
    i1 = jax.nn.sigmoid(g1[:, 0:C])
    f1 = jax.nn.sigmoid(g1[:, C:2 * C])
    gg1 = jnp.tanh(g1[:, 2 * C:3 * C])
    o1 = jax.nn.sigmoid(g1[:, 3 * C:4 * C])
    c1n = f1 * c1_sc[...] + i1 * gg1
    h1n = o1 * jnp.tanh(c1n)
    c1_sc[...] = c1n
    h1_sc[...] = h1n
    emb_ref[...] = h1n.astype(emb_ref.dtype)


def conductor(z, p):
    bp, L = z.shape
    C = COND_HIDDEN
    return pl.pallas_call(
        _conductor_kernel,
        out_shape=jax.ShapeDtypeStruct((U, bp, C), jnp.float32),
        grid=(U,),
        in_specs=[
            pl.BlockSpec((bp, L), lambda u: (0, 0)),        # z
            pl.BlockSpec((L, 4 * C), lambda u: (0, 0)),     # fc2_w
            pl.BlockSpec((1, 4 * C), lambda u: (0, 0)),     # fc2_b
            pl.BlockSpec((1, 4 * C), lambda u: (0, 0)),     # cond_l0_b
            pl.BlockSpec((C, 4 * C), lambda u: (0, 0)),     # cond_l0_whh
            pl.BlockSpec((C, 4 * C), lambda u: (0, 0)),     # cond_l1_wih
            pl.BlockSpec((C, 4 * C), lambda u: (0, 0)),     # cond_l1_whh
            pl.BlockSpec((1, 4 * C), lambda u: (0, 0)),     # cond_l1_b
        ],
        out_specs=pl.BlockSpec((None, bp, C), lambda u: (u, 0, 0)),
        scratch_shapes=[pltpu.VMEM((bp, C), jnp.float32)] * 4,
        compiler_params=pltpu.CompilerParams(
            dimension_semantics=("arbitrary",)),
    )(z, p["fc2_w"], p["fc2_b"], p["cond_l0_b"], p["cond_l0_whh"],
      p["cond_l1_wih"], p["cond_l1_whh"], p["cond_l1_b"])


# --------------- fully-fused hierarchical (l2) decoder kernel ------------------
def _decoder_kernel(emb_ref, wib_ref, bib_ref, wprev_ref, whh1_ref, wih2_ref,
                    whh2_ref, b2_ref, w4_ref, b4_ref, out_ref,
                    h1_sc, c1_sc, h2_sc, c2_sc, base1_sc, prev_sc):
    """Grid = (U bars, steps per bar); both sequential.

    At s == 0 the per-bar matmul  emb_u @ [fc3_w | cell1_emb_w] + [fc3_b | cell1_b]
    is computed once; tanh of the fc3 half seeds h1/h2/c1/c2, the other half is the
    constant part of cell-1's gates (kept in base1_sc).  prev_sc keeps the fc_4
    logits feedback (padded to 128 lanes) across all steps AND bars.
    """
    u = pl.program_id(0)
    s = pl.program_id(1)
    D = DEC_HIDDEN

    @pl.when(jnp.logical_and(u == 0, s == 0))
    def _():
        prev_sc[...] = jnp.zeros_like(prev_sc)

    @pl.when(s == 0)
    def _():
        ib = jnp.dot(emb_ref[...].astype(wib_ref.dtype), wib_ref[...],
                     preferred_element_type=jnp.float32) + bib_ref[...]
        init = jnp.tanh(ib[:, 0:4 * D])            # tanh(fc_3(emb_u))
        h1_sc[...] = init[:, 0:D]
        h2_sc[...] = init[:, D:2 * D]
        c1_sc[...] = init[:, 2 * D:3 * D]
        c2_sc[...] = init[:, 3 * D:4 * D]
        base1_sc[...] = ib[:, 4 * D:8 * D]         # emb part of cell-1 gates

    # ---- LSTM cell 1:  input = [emb (precomputed), prev] ----
    gates1 = (base1_sc[...]
              + jnp.dot(prev_sc[...].astype(wprev_ref.dtype), wprev_ref[...],
                        preferred_element_type=jnp.float32)
              + jnp.dot(h1_sc[...].astype(whh1_ref.dtype), whh1_ref[...],
                        preferred_element_type=jnp.float32))
    i1 = jax.nn.sigmoid(gates1[:, 0:D])
    f1 = jax.nn.sigmoid(gates1[:, D:2 * D])
    g1 = jnp.tanh(gates1[:, 2 * D:3 * D])
    o1 = jax.nn.sigmoid(gates1[:, 3 * D:4 * D])
    c1n = f1 * c1_sc[...] + i1 * g1
    h1n = o1 * jnp.tanh(c1n)
    c1_sc[...] = c1n
    h1_sc[...] = h1n

    # ---- LSTM cell 2:  input = h1 ----
    gates2 = (b2_ref[...]
              + jnp.dot(h1n.astype(wih2_ref.dtype), wih2_ref[...],
                        preferred_element_type=jnp.float32)
              + jnp.dot(h2_sc[...].astype(whh2_ref.dtype), whh2_ref[...],
                        preferred_element_type=jnp.float32))
    i2 = jax.nn.sigmoid(gates2[:, 0:D])
    f2 = jax.nn.sigmoid(gates2[:, D:2 * D])
    g2 = jnp.tanh(gates2[:, 2 * D:3 * D])
    o2 = jax.nn.sigmoid(gates2[:, 3 * D:4 * D])
    c2n = f2 * c2_sc[...] + i2 * g2
    h2n = o2 * jnp.tanh(c2n)
    c2_sc[...] = c2n
    h2_sc[...] = h2n

    # ---- fc_4 (logits feedback) + fused softmax over the 90 real pitches ----
    logits = jnp.dot(h2n.astype(w4_ref.dtype), w4_ref[...],
                     preferred_element_type=jnp.float32) + b4_ref[...]
    prev_sc[...] = logits                      # feedback uses raw logits (as in torch)

    lane = lax.broadcasted_iota(jnp.int32, logits.shape, 1)
    masked = jnp.where(lane < INPUT_SIZE, logits, -1e30)
    m = jnp.max(masked, axis=-1, keepdims=True)
    e = jnp.exp(masked - m)
    out_ref[...] = e / jnp.sum(e, axis=-1, keepdims=True)


def l2_decode_fused(embs, p, steps):
    Ub, bp, C = embs.shape
    D = DEC_HIDDEN
    G = 4 * D
    return pl.pallas_call(
        _decoder_kernel,
        out_shape=jax.ShapeDtypeStruct((Ub, steps, bp, INPUT_PAD), jnp.float32),
        grid=(Ub, steps),
        in_specs=[
            pl.BlockSpec((None, bp, C), lambda u, s: (u, 0, 0)),     # emb_u (per bar)
            pl.BlockSpec((C, 2 * G), lambda u, s: (0, 0)),           # [fc3_w | cell1_emb_w]
            pl.BlockSpec((1, 2 * G), lambda u, s: (0, 0)),           # [fc3_b | cell1_b]
            pl.BlockSpec((INPUT_PAD, G), lambda u, s: (0, 0)),       # W_prev
            pl.BlockSpec((D, G), lambda u, s: (0, 0)),               # W_hh1
            pl.BlockSpec((D, G), lambda u, s: (0, 0)),               # W_ih2
            pl.BlockSpec((D, G), lambda u, s: (0, 0)),               # W_hh2
            pl.BlockSpec((1, G), lambda u, s: (0, 0)),               # b2
            pl.BlockSpec((D, INPUT_PAD), lambda u, s: (0, 0)),       # W4
            pl.BlockSpec((1, INPUT_PAD), lambda u, s: (0, 0)),       # b4
        ],
        out_specs=pl.BlockSpec((None, None, bp, INPUT_PAD),
                               lambda u, s: (u, s, 0, 0)),
        scratch_shapes=[pltpu.VMEM((bp, D), jnp.float32)] * 4
                      + [pltpu.VMEM((bp, G), jnp.float32)]
                      + [pltpu.VMEM((bp, INPUT_PAD), jnp.float32)],
        compiler_params=pltpu.CompilerParams(
            dimension_semantics=("arbitrary", "arbitrary")),
    )(embs, p["dec_ib_w"], p["dec_ib_b"], p["cell1_wprev"], p["cell1_whh"],
      p["cell2_wih"], p["cell2_whh"], p["cell2_b"], p["fc4_w"], p["fc4_b"])


# ------------------------------ parameters -----------------------------------
def _init(key, shape, scale=0.08):
    return scale * jax.random.normal(key, shape, dtype=jnp.float32)


def make_params(key):
    ks = iter(jax.random.split(key, 48))
    p = {}
    H, C, D, L = LSTM_1_HIDDEN, COND_HIDDEN, DEC_HIDDEN, LATENT_DIM
    enc_in = [INPUT_PAD, 2 * H]
    for l in range(LSTM_1_LAYERS):
        # fwd and bwd input projections fused along N: [fwd 4H | bwd 4H]
        wih = jnp.concatenate([_init(next(ks), (enc_in[l], 4 * H)),
                               _init(next(ks), (enc_in[l], 4 * H))], axis=1)
        if l == 0:
            wih = wih.at[INPUT_SIZE:, :].set(0.0)          # padded pitch rows inert
        p[f"enc_l{l}_wih"] = wih.astype(jnp.bfloat16)
        p[f"enc_l{l}_whh"] = jnp.stack([_init(next(ks), (H, 4 * H)),
                                        _init(next(ks), (H, 4 * H))], axis=0
                                       ).astype(jnp.bfloat16)
        # Single combined bias == (b_ih + b_hh) per direction; sum the two when
        # importing torch weights.
        p[f"enc_l{l}_b"] = jnp.concatenate([_init(next(ks), (1, 4 * H)),
                                            _init(next(ks), (1, 4 * H))], axis=1)
    # fc_mean and fc_std_deviation concatenated along N (fused kernel)
    p["fc_ms_w"] = _init(next(ks), (2 * H, 2 * L)).astype(jnp.bfloat16)
    p["fc_ms_b"] = _init(next(ks), (1, 2 * L))
    p["fc2_w"] = _init(next(ks), (L, 4 * C)).astype(jnp.bfloat16)
    p["fc2_b"] = _init(next(ks), (1, 4 * C))
    # Conductor layer 0: its input is identically zero, so W_ih (1 x 4C) never
    # contributes and is omitted entirely (bias-only input projection).
    p["cond_l0_whh"] = _init(next(ks), (C, 4 * C)).astype(jnp.bfloat16)
    p["cond_l0_b"] = _init(next(ks), (1, 4 * C))
    p["cond_l1_wih"] = _init(next(ks), (C, 4 * C)).astype(jnp.bfloat16)
    p["cond_l1_whh"] = _init(next(ks), (C, 4 * C)).astype(jnp.bfloat16)
    p["cond_l1_b"] = _init(next(ks), (1, 4 * C))
    # fc_3 and cell-1's embedding input-projection share the same input (emb_u);
    # fused along N:  [ fc3 (tanh'd in kernel) | cell1 emb part ]
    fc3_w = _init(next(ks), (C, 4 * D))
    fc3_b = _init(next(ks), (1, 4 * D))
    c1emb_w = _init(next(ks), (C, 4 * D))
    c1_b = _init(next(ks), (1, 4 * D))
    p["dec_ib_w"] = jnp.concatenate([fc3_w, c1emb_w], axis=1).astype(jnp.bfloat16)
    p["dec_ib_b"] = jnp.concatenate([fc3_b, c1_b], axis=1)
    # Decoder cell 1: input = [emb (C), prev (padded to 128)]
    wprev = _init(next(ks), (INPUT_PAD, 4 * D)).at[INPUT_SIZE:, :].set(0.0)
    p["cell1_wprev"] = wprev.astype(jnp.bfloat16)
    p["cell1_whh"] = _init(next(ks), (D, 4 * D)).astype(jnp.bfloat16)
    p["cell2_wih"] = _init(next(ks), (D, 4 * D)).astype(jnp.bfloat16)
    p["cell2_whh"] = _init(next(ks), (D, 4 * D)).astype(jnp.bfloat16)
    p["cell2_b"] = _init(next(ks), (1, 4 * D))
    w4 = _init(next(ks), (D, INPUT_PAD)).at[:, INPUT_SIZE:].set(0.0)
    p["fc4_w"] = w4.astype(jnp.bfloat16)
    p["fc4_b"] = _init(next(ks), (1, INPUT_PAD)).at[:, INPUT_SIZE:].set(0.0)
    return p


# ------------------------------ model pieces ----------------------------------
def encode(x_p, p):
    """x_p: (B_PAD, T, INPUT_PAD) -> (z_mean, z_std), each (B_PAD, LATENT_DIM)."""
    bp, T, _ = x_p.shape
    H = LSTM_1_HIDDEN
    layer_in = jnp.transpose(x_p, (1, 0, 2))              # (T, B, F)
    for l in range(LSTM_1_LAYERS):
        flat = layer_in.reshape(T * bp, layer_in.shape[-1])
        # one big input-projection matmul for both directions (M = T*B, N = 8H)
        xproj = linear(flat, p[f"enc_l{l}_wih"], p[f"enc_l{l}_b"]
                       ).reshape(T, bp, 8 * H)
        layer_in = bidir_lstm_scan(xproj, p[f"enc_l{l}_whh"])      # (T, B, 2H)
    hT_f = layer_in[T - 1, :, 0:H]                         # final fwd hidden (last layer)
    hT_b = layer_in[0, :, H:2 * H]                         # final bwd hidden (last layer)
    h_cat = jnp.concatenate([hT_f, hT_b], axis=-1)         # == torch cat(h_t[1,0], h_t[1,1])
    return mean_std(h_cat, p["fc_ms_w"], p["fc_ms_b"])


def decode(z, p):
    bp = z.shape[0]
    steps = SEQ_LEN // U
    embs = conductor(z, p)                                 # (U, B, C)  (fc_2 fused inside)
    # TODO(synk): scheduled-sampling / ground-truth teacher forcing is a training-only
    # branch (counter never advances in the reference), so eval semantics apply.
    out = l2_decode_fused(embs, p, steps)                  # (U, steps, B, 128) softmaxed
    out = out.reshape(SEQ_LEN, bp, INPUT_PAD)              # bar-major == torch stacking
    return jnp.transpose(out, (1, 0, 2))                   # (B, SEQ_LEN, 128)


@jax.jit
def vae_forward(x, params, noise_key):
    """x: (BATCH, SEQ_LEN, INPUT_SIZE).  Returns (out, z_mean, z_std) at BATCH."""
    b = x.shape[0]
    x_p = jnp.pad(x, ((0, B_PAD - b), (0, 0), (0, INPUT_PAD - INPUT_SIZE)))
    z_mean, z_std = encode(x_p, params)
    eps = jax.random.normal(noise_key, z_mean.shape, z_mean.dtype)
    z = z_mean + eps * z_std                               # reparameterize
    out = decode(z, params)
    return out[:b, :, :INPUT_SIZE], z_mean[:b], z_std[:b]


# --------------------------------- main ---------------------------------------
if __name__ == "__main__":
    key = jax.random.PRNGKey(0)
    x = jax.random.normal(key, (BATCH, SEQ_LEN, INPUT_SIZE), dtype=jnp.float32)
    params = make_params(jax.random.PRNGKey(42))
    noise_key = jax.random.PRNGKey(1)

    out, z_mean, z_std = vae_forward(x, params, noise_key)
    jax.block_until_ready((out, z_mean, z_std))

    assert out.shape == (BATCH, SEQ_LEN, INPUT_SIZE)
    assert z_mean.shape == (BATCH, LATENT_DIM)
    assert z_std.shape == (BATCH, LATENT_DIM)
    assert bool(jnp.all(jnp.isfinite(out)))
    assert bool(jnp.all(z_std > 0))                         # softplus output
    row_sums = jnp.sum(out, axis=2)
    assert bool(jnp.all(jnp.abs(row_sums - 1.0) < 1e-4))    # softmax rows sum to 1

    print("KERNEL_OK")
</pallas_src>

<mosaic_0001>
module attributes {stable_mosaic.version = 11 : i64} {
  func.func @_bidir_lstm_kernel(%arg0: i32, %arg1: i32, %arg2: memref<1x8x1024xf32, #tpu.memory_space<vmem>>, %arg3: memref<1x256x1024xbf16, #tpu.memory_space<vmem>>, %arg4: memref<1x8x256xf32, #tpu.memory_space<vmem>>, %arg5: memref<8x256xf32, #tpu.memory_space<vmem>>, %arg6: memref<8x256xf32, #tpu.memory_space<vmem>>) attributes {dimension_semantics = [#tpu.dimension_semantics<parallel>, #tpu.dimension_semantics<arbitrary>], iteration_bounds = array<i64: 2, 16>, scalar_prefetch = 0 : i64, scratch_operands = 2 : i64, tpu.core_type = #tpu.core_type<tc>, window_params = [{transform_indices = @transform_0, window_bounds = array<i64: 1, 8, 1024>}, {transform_indices = @transform_1, window_bounds = array<i64: 1, 256, 1024>}, {transform_indices = @transform_2, window_bounds = array<i64: 1, 8, 256>}]} {
    %c0_i32 = arith.constant 0 : i32
    %0 = arith.cmpi eq, %arg1, %c0_i32 : i32
    %1 = arith.extui %0 : i1 to i32
    %c0_i32_0 = arith.constant 0 : i32
    %2 = arith.cmpi ne, %1, %c0_i32_0 : i32
    scf.if %2 {
      %cst_20 = arith.constant 0.000000e+00 : f32
      %42 = vector.broadcast %cst_20 : f32 to vector<8x256xf32>
      %c0_21 = arith.constant 0 : index
      %c0_22 = arith.constant 0 : index
      %43 = vector.load %arg5[%c0_21, %c0_22] : memref<8x256xf32, #tpu.memory_space<vmem>>, vector<8x256xf32>
      tpu.vector_store %arg5[%c0_21, %c0_22], %42 {strides = array<i32>} : memref<8x256xf32, #tpu.memory_space<vmem>>, vector<8x256xf32>,
      %cst_23 = arith.constant 0.000000e+00 : f32
      %44 = vector.broadcast %cst_23 : f32 to vector<8x256xf32>
      %c0_24 = arith.constant 0 : index
      %c0_25 = arith.constant 0 : index
      %45 = vector.load %arg6[%c0_24, %c0_25] : memref<8x256xf32, #tpu.memory_space<vmem>>, vector<8x256xf32>
      tpu.vector_store %arg6[%c0_24, %c0_25], %44 {strides = array<i32>} : memref<8x256xf32, #tpu.memory_space<vmem>>, vector<8x256xf32>,
    } else {
    }
    %c0 = arith.constant 0 : index
    %c0_1 = arith.constant 0 : index
    %c0_2 = arith.constant 0 : index
    %3 = vector.load %arg2[%c0, %c0_1, %c0_2] : memref<1x8x1024xf32, #tpu.memory_space<vmem>>, vector<1x8x1024xf32>
    %4 = vector.shape_cast %3 : vector<1x8x1024xf32> to vector<8x1024xf32>
    %c0_3 = arith.constant 0 : index
    %c0_4 = arith.constant 0 : index
    %5 = vector.load %arg5[%c0_3, %c0_4] : memref<8x256xf32, #tpu.memory_space<vmem>>, vector<8x256xf32>
    %6 = arith.truncf %5 : vector<8x256xf32> to vector<8x256xbf16>
    %c0_5 = arith.constant 0 : index
    %c0_6 = arith.constant 0 : index
    %c0_7 = arith.constant 0 : index
    %7 = vector.load %arg3[%c0_5, %c0_6, %c0_7] : memref<1x256x1024xbf16, #tpu.memory_space<vmem>>, vector<1x256x1024xbf16>
    %8 = vector.shape_cast %7 : vector<1x256x1024xbf16> to vector<256x1024xbf16>
    %cst = arith.constant dense<0.000000e+00> : vector<8x1024xf32>
    %9 = tpu.matmul %6, %8, %cst {dimension_numbers = #tpu.dot_dimension_numbers<[1], [0], [0], [1], [0, 0, 1, 1], [], []>} : vector<8x256xbf16>, vector<256x1024xbf16>, vector<8x1024xf32> -> vector<8x1024xf32>
    %10 = arith.addf %4, %9 : vector<8x1024xf32>
    %11 = vector.extract_strided_slice %10 {offsets = [0, 0], sizes = [8, 256], strides = [1, 1]} : vector<8x1024xf32> to vector<8x256xf32>
    %12 = arith.negf %11 : vector<8x256xf32>
    %13 = math.exp %12 : vector<8x256xf32>
    %cst_8 = arith.constant 1.000000e+00 : f32
    %14 = vector.broadcast %cst_8 : f32 to vector<8x256xf32>
    %15 = arith.addf %14, %13 : vector<8x256xf32>
    %16 = arith.divf %14, %15 : vector<8x256xf32>
    %17 = vector.extract_strided_slice %10 {offsets = [0, 256], sizes = [8, 256], strides = [1, 1]} : vector<8x1024xf32> to vector<8x256xf32>
    %18 = arith.negf %17 : vector<8x256xf32>
    %19 = math.exp %18 : vector<8x256xf32>
    %cst_9 = arith.constant 1.000000e+00 : f32
    %20 = vector.broadcast %cst_9 : f32 to vector<8x256xf32>
    %21 = arith.addf %20, %19 : vector<8x256xf32>
    %22 = arith.divf %20, %21 : vector<8x256xf32>
    %23 = vector.extract_strided_slice %10 {offsets = [0, 512], sizes = [8, 256], strides = [1, 1]} : vector<8x1024xf32> to vector<8x256xf32>
    %24 = math.tanh %23 : vector<8x256xf32>
    %25 = vector.extract_strided_slice %10 {offsets = [0, 768], sizes = [8, 256], strides = [1, 1]} : vector<8x1024xf32> to vector<8x256xf32>
    %26 = arith.negf %25 : vector<8x256xf32>
    %27 = math.exp %26 : vector<8x256xf32>
    %cst_10 = arith.constant 1.000000e+00 : f32
    %28 = vector.broadcast %cst_10 : f32 to vector<8x256xf32>
    %29 = arith.addf %28, %27 : vector<8x256xf32>
    %30 = arith.divf %28, %29 : vector<8x256xf32>
    %c0_11 = arith.constant 0 : index
    %c0_12 = arith.constant 0 : index
    %31 = vector.load %arg6[%c0_11, %c0_12] : memref<8x256xf32, #tpu.memory_space<vmem>>, vector<8x256xf32>
    %32 = arith.mulf %22, %31 : vector<8x256xf32>
    %33 = arith.mulf %16, %24 : vector<8x256xf32>
    %34 = arith.addf %32, %33 : vector<8x256xf32>
    %35 = math.tanh %34 : vector<8x256xf32>
    %36 = arith.mulf %30, %35 : vector<8x256xf32>
    %c0_13 = arith.constant 0 : index
    %c0_14 = arith.constant 0 : index
    %37 = vector.load %arg6[%c0_13, %c0_14] : memref<8x256xf32, #tpu.memory_space<vmem>>, vector<8x256xf32>
    tpu.vector_store %arg6[%c0_13, %c0_14], %34 {strides = array<i32>} : memref<8x256xf32, #tpu.memory_space<vmem>>, vector<8x256xf32>,
    %c0_15 = arith.constant 0 : index
    %c0_16 = arith.constant 0 : index
    %38 = vector.load %arg5[%c0_15, %c0_16] : memref<8x256xf32, #tpu.memory_space<vmem>>, vector<8x256xf32>
    tpu.vector_store %arg5[%c0_15, %c0_16], %36 {strides = array<i32>} : memref<8x256xf32, #tpu.memory_space<vmem>>, vector<8x256xf32>,
    %c0_17 = arith.constant 0 : index
    %c0_18 = arith.constant 0 : index
    %c0_19 = arith.constant 0 : index
    %39 = vector.load %arg4[%c0_17, %c0_18, %c0_19] : memref<1x8x256xf32, #tpu.memory_space<vmem>>, vector<1x8x256xf32>
    %40 = vector.shape_cast %39 : vector<1x8x256xf32> to vector<8x256xf32>
    %41 = vector.shape_cast %36 : vector<8x256xf32> to vector<1x8x256xf32>
    tpu.vector_store %arg4[%c0_17, %c0_18, %c0_19], %41 {strides = array<i32>} : memref<1x8x256xf32, #tpu.memory_space<vmem>>, vector<1x8x256xf32>,
    return
  }
  func.func @transform_0(%arg0: i32, %arg1: i32) -> (i32, i32, i32) {
    %c1_i32 = arith.constant 1 : i32
    %0 = arith.subi %c1_i32, %arg0 : i32
    %1 = arith.muli %0, %arg1 : i32
    %c15_i32 = arith.constant 15 : i32
    %2 = arith.subi %c15_i32, %arg1 : i32
    %3 = arith.muli %arg0, %2 : i32
    %4 = arith.addi %1, %3 : i32
    %c0_i32 = arith.constant 0 : i32
    %c0_i32_0 = arith.constant 0 : i32
    return %4, %c0_i32, %arg0 : i32, i32, i32
  }
  func.func @transform_1(%arg0: i32, %arg1: i32) -> (i32, i32, i32) {
    %c0_i32 = arith.constant 0 : i32
    %c0_i32_0 = arith.constant 0 : i32
    %c0_i32_1 = arith.constant 0 : i32
    return %arg0, %c0_i32, %c0_i32_0 : i32, i32, i32
  }
  func.func @transform_2(%arg0: i32, %arg1: i32) -> (i32, i32, i32) {
    %c1_i32 = arith.constant 1 : i32
    %0 = arith.subi %c1_i32, %arg0 : i32
    %1 = arith.muli %0, %arg1 : i32
    %c15_i32 = arith.constant 15 : i32
    %2 = arith.subi %c15_i32, %arg1 : i32
    %3 = arith.muli %arg0, %2 : i32
    %4 = arith.addi %1, %3 : i32
    %c0_i32 = arith.constant 0 : i32
    %c0_i32_0 = arith.constant 0 : i32
    return %4, %c0_i32, %arg0 : i32, i32, i32
  }
}

module attributes {stable_mosaic.version = 11 : i64} {
  func.func @_linear_kernel(%arg0: i32, %arg1: i32, %arg2: memref<128x128xf32, #tpu.memory_space<vmem>>, %arg3: memref<128x256xbf16, #tpu.memory_space<vmem>>, %arg4: memref<1x256xf32, #tpu.memory_space<vmem>>, %arg5: memref<128x256xf32, #tpu.memory_space<vmem>>, %arg6: memref<128x256xf32, #tpu.memory_space<vmem>>) attributes {dimension_semantics = [#tpu.dimension_semantics<parallel>, #tpu.dimension_semantics<arbitrary>], iteration_bounds = array<i64: 8, 1>, scalar_prefetch = 0 : i64, scratch_operands = 1 : i64, tpu.core_type = #tpu.core_type<tc>, window_params = [{transform_indices = @transform_0, window_bounds = array<i64: 128, 128>}, {transform_indices = @transform_1, window_bounds = array<i64: 128, 256>}, {transform_indices = @transform_2, window_bounds = array<i64: 1, 256>}, {transform_indices = @transform_3, window_bounds = array<i64: 128, 256>}]} {
    %c0_i32 = arith.constant 0 : i32
    %0 = arith.cmpi eq, %arg1, %c0_i32 : i32
    %1 = arith.extui %0 : i1 to i32
    %c0_i32_0 = arith.constant 0 : i32
    %2 = arith.cmpi ne, %1, %c0_i32_0 : i32
    scf.if %2 {
      %cst_10 = arith.constant 0.000000e+00 : f32
      %13 = vector.broadcast %cst_10 : f32 to vector<128x256xf32>
      %c0_11 = arith.constant 0 : index
      %c0_12 = arith.constant 0 : index
      %14 = vector.load %arg6[%c0_11, %c0_12] : memref<128x256xf32, #tpu.memory_space<vmem>>, vector<128x256xf32>
      tpu.vector_store %arg6[%c0_11, %c0_12], %13 {strides = array<i32>} : memref<128x256xf32, #tpu.memory_space<vmem>>, vector<128x256xf32>,
    } else {
    }
    %c0 = arith.constant 0 : index
    %c0_1 = arith.constant 0 : index
    %3 = vector.load %arg6[%c0, %c0_1] : memref<128x256xf32, #tpu.memory_space<vmem>>, vector<128x256xf32>
    %c0_2 = arith.constant 0 : index
    %c0_3 = arith.constant 0 : index
    %4 = vector.load %arg2[%c0_2, %c0_3] : memref<128x128xf32, #tpu.memory_space<vmem>>, vector<128x128xf32>
    %5 = arith.truncf %4 : vector<128x128xf32> to vector<128x128xbf16>
    %c0_4 = arith.constant 0 : index
    %c0_5 = arith.constant 0 : index
    %6 = vector.load %arg3[%c0_4, %c0_5] : memref<128x256xbf16, #tpu.memory_space<vmem>>, vector<128x256xbf16>
    %cst = arith.constant dense<0.000000e+00> : vector<128x256xf32>
    %7 = tpu.matmul %5, %6, %cst {dimension_numbers = #tpu.dot_dimension_numbers<[1], [0], [0], [1], [0, 0, 1, 1], [], []>} : vector<128x128xbf16>, vector<128x256xbf16>, vector<128x256xf32> -> vector<128x256xf32>
    %8 = arith.addf %3, %7 : vector<128x256xf32>
    %c0_6 = arith.constant 0 : index
    %c0_7 = arith.constant 0 : index
    %9 = vector.load %arg6[%c0_6, %c0_7] : memref<128x256xf32, #tpu.memory_space<vmem>>, vector<128x256xf32>
    tpu.vector_store %arg6[%c0_6, %c0_7], %8 {strides = array<i32>} : memref<128x256xf32, #tpu.memory_space<vmem>>, vector<128x256xf32>,
    %c0_i32_8 = arith.constant 0 : i32
    %10 = arith.cmpi eq, %arg1, %c0_i32_8 : i32
    %11 = arith.extui %10 : i1 to i32
    %c0_i32_9 = arith.constant 0 : i32
    %12 = arith.cmpi ne, %11, %c0_i32_9 : i32
    scf.if %12 {
      %c0_10 = arith.constant 0 : index
      %c0_11 = arith.constant 0 : index
      %13 = vector.load %arg6[%c0_10, %c0_11] : memref<128x256xf32, #tpu.memory_space<vmem>>, vector<128x256xf32>
      %c0_12 = arith.constant 0 : index
      %c0_13 = arith.constant 0 : index
      %14 = vector.load %arg4[%c0_12, %c0_13] : memref<1x256xf32, #tpu.memory_space<vmem>>, vector<1x256xf32>
      %15 = vector.broadcast %14 : vector<1x256xf32> to vector<128x256xf32>
      %16 = arith.addf %13, %15 : vector<128x256xf32>
      %c0_14 = arith.constant 0 : index
      %c0_15 = arith.constant 0 : index
      %17 = vector.load %arg5[%c0_14, %c0_15] : memref<128x256xf32, #tpu.memory_space<vmem>>, vector<128x256xf32>
      tpu.vector_store %arg5[%c0_14, %c0_15], %16 {strides = array<i32>} : memref<128x256xf32, #tpu.memory_space<vmem>>, vector<128x256xf32>,
    } else {
    }
    return
  }
  func.func @transform_0(%arg0: i32, %arg1: i32) -> (i32, i32) {
    %c0_i32 = arith.constant 0 : i32
    %c0_i32_0 = arith.constant 0 : i32
    return %c0_i32, %arg1 : i32, i32
  }
  func.func @transform_1(%arg0: i32, %arg1: i32) -> (i32, i32) {
    %c0_i32 = arith.constant 0 : i32
    return %arg1, %arg0 : i32, i32
  }
  func.func @transform_2(%arg0: i32, %arg1: i32) -> (i32, i32) {
    %c0_i32 = arith.constant 0 : i32
    %c0_i32_0 = arith.constant 0 : i32
    return %c0_i32, %arg0 : i32, i32
  }
  func.func @transform_3(%arg0: i32, %arg1: i32) -> (i32, i32) {
    %c0_i32 = arith.constant 0 : i32
    %c0_i32_0 = arith.constant 0 : i32
    return %c0_i32, %arg0 : i32, i32
  }
}

module attributes {stable_mosaic.version = 11 : i64} {
  func.func @_linear_kernel(%arg0: i32, %arg1: i32, %arg2: memref<128x512xf32, #tpu.memory_space<vmem>>, %arg3: memref<512x256xbf16, #tpu.memory_space<vmem>>, %arg4: memref<1x256xf32, #tpu.memory_space<vmem>>, %arg5: memref<128x256xf32, #tpu.memory_space<vmem>>, %arg6: memref<128x256xf32, #tpu.memory_space<vmem>>) attributes {dimension_semantics = [#tpu.dimension_semantics<parallel>, #tpu.dimension_semantics<arbitrary>], iteration_bounds = array<i64: 8, 1>, scalar_prefetch = 0 : i64, scratch_operands = 1 : i64, tpu.core_type = #tpu.core_type<tc>, window_params = [{transform_indices = @transform_0, window_bounds = array<i64: 128, 512>}, {transform_indices = @transform_1, window_bounds = array<i64: 512, 256>}, {transform_indices = @transform_2, window_bounds = array<i64: 1, 256>}, {transform_indices = @transform_3, window_bounds = array<i64: 128, 256>}]} {
    %c0_i32 = arith.constant 0 : i32
    %0 = arith.cmpi eq, %arg1, %c0_i32 : i32
    %1 = arith.extui %0 : i1 to i32
    %c0_i32_0 = arith.constant 0 : i32
    %2 = arith.cmpi ne, %1, %c0_i32_0 : i32
    scf.if %2 {
      %cst_10 = arith.constant 0.000000e+00 : f32
      %13 = vector.broadcast %cst_10 : f32 to vector<128x256xf32>
      %c0_11 = arith.constant 0 : index
      %c0_12 = arith.constant 0 : index
      %14 = vector.load %arg6[%c0_11, %c0_12] : memref<128x256xf32, #tpu.memory_space<vmem>>, vector<128x256xf32>
      tpu.vector_store %arg6[%c0_11, %c0_12], %13 {strides = array<i32>} : memref<128x256xf32, #tpu.memory_space<vmem>>, vector<128x256xf32>,
    } else {
    }
    %c0 = arith.constant 0 : index
    %c0_1 = arith.constant 0 : index
    %3 = vector.load %arg6[%c0, %c0_1] : memref<128x256xf32, #tpu.memory_space<vmem>>, vector<128x256xf32>
    %c0_2 = arith.constant 0 : index
    %c0_3 = arith.constant 0 : index
    %4 = vector.load %arg2[%c0_2, %c0_3] : memref<128x512xf32, #tpu.memory_space<vmem>>, vector<128x512xf32>
    %5 = arith.truncf %4 : vector<128x512xf32> to vector<128x512xbf16>
    %c0_4 = arith.constant 0 : index
    %c0_5 = arith.constant 0 : index
    %6 = vector.load %arg3[%c0_4, %c0_5] : memref<512x256xbf16, #tpu.memory_space<vmem>>, vector<512x256xbf16>
    %cst = arith.constant dense<0.000000e+00> : vector<128x256xf32>
    %7 = tpu.matmul %5, %6, %cst {dimension_numbers = #tpu.dot_dimension_numbers<[1], [0], [0], [1], [0, 0, 1, 1], [], []>} : vector<128x512xbf16>, vector<512x256xbf16>, vector<128x256xf32> -> vector<128x256xf32>
    %8 = arith.addf %3, %7 : vector<128x256xf32>
    %c0_6 = arith.constant 0 : index
    %c0_7 = arith.constant 0 : index
    %9 = vector.load %arg6[%c0_6, %c0_7] : memref<128x256xf32, #tpu.memory_space<vmem>>, vector<128x256xf32>
    tpu.vector_store %arg6[%c0_6, %c0_7], %8 {strides = array<i32>} : memref<128x256xf32, #tpu.memory_space<vmem>>, vector<128x256xf32>,
    %c0_i32_8 = arith.constant 0 : i32
    %10 = arith.cmpi eq, %arg1, %c0_i32_8 : i32
    %11 = arith.extui %10 : i1 to i32
    %c0_i32_9 = arith.constant 0 : i32
    %12 = arith.cmpi ne, %11, %c0_i32_9 : i32
    scf.if %12 {
      %c0_10 = arith.constant 0 : index
      %c0_11 = arith.constant 0 : index
      %13 = vector.load %arg6[%c0_10, %c0_11] : memref<128x256xf32, #tpu.memory_space<vmem>>, vector<128x256xf32>
      %c0_12 = arith.constant 0 : index
      %c0_13 = arith.constant 0 : index
      %14 = vector.load %arg4[%c0_12, %c0_13] : memref<1x256xf32, #tpu.memory_space<vmem>>, vector<1x256xf32>
      %15 = vector.broadcast %14 : vector<1x256xf32> to vector<128x256xf32>
      %16 = arith.addf %13, %15 : vector<128x256xf32>
      %c0_14 = arith.constant 0 : index
      %c0_15 = arith.constant 0 : index
      %17 = vector.load %arg5[%c0_14, %c0_15] : memref<128x256xf32, #tpu.memory_space<vmem>>, vector<128x256xf32>
      tpu.vector_store %arg5[%c0_14, %c0_15], %16 {strides = array<i32>} : memref<128x256xf32, #tpu.memory_space<vmem>>, vector<128x256xf32>,
    } else {
    }
    return
  }
  func.func @transform_0(%arg0: i32, %arg1: i32) -> (i32, i32) {
    %c0_i32 = arith.constant 0 : i32
    %c0_i32_0 = arith.constant 0 : i32
    return %c0_i32, %arg1 : i32, i32
  }
  func.func @transform_1(%arg0: i32, %arg1: i32) -> (i32, i32) {
    %c0_i32 = arith.constant 0 : i32
    return %arg1, %arg0 : i32, i32
  }
  func.func @transform_2(%arg0: i32, %arg1: i32) -> (i32, i32) {
    %c0_i32 = arith.constant 0 : i32
    %c0_i32_0 = arith.constant 0 : i32
    return %c0_i32, %arg0 : i32, i32
  }
  func.func @transform_3(%arg0: i32, %arg1: i32) -> (i32, i32) {
    %c0_i32 = arith.constant 0 : i32
    %c0_i32_0 = arith.constant 0 : i32
    return %c0_i32, %arg0 : i32, i32
  }
}

module attributes {stable_mosaic.version = 11 : i64} {
  func.func @_mean_std_kernel(%arg0: memref<8x512xf32, #tpu.memory_space<vmem>>, %arg1: memref<512x256xbf16, #tpu.memory_space<vmem>>, %arg2: memref<1x256xf32, #tpu.memory_space<vmem>>, %arg3: memref<8x128xf32, #tpu.memory_space<vmem>>, %arg4: memref<8x128xf32, #tpu.memory_space<vmem>>) attributes {dimension_semantics = [], scalar_prefetch = 0 : i64, scratch_operands = 0 : i64, tpu.core_type = #tpu.core_type<tc>} {
    %c0 = arith.constant 0 : index
    %c0_0 = arith.constant 0 : index
    %0 = vector.load %arg0[%c0, %c0_0] : memref<8x512xf32, #tpu.memory_space<vmem>>, vector<8x512xf32>
    %1 = arith.truncf %0 : vector<8x512xf32> to vector<8x512xbf16>
    %c0_1 = arith.constant 0 : index
    %c0_2 = arith.constant 0 : index
    %2 = vector.load %arg1[%c0_1, %c0_2] : memref<512x256xbf16, #tpu.memory_space<vmem>>, vector<512x256xbf16>
    %cst = arith.constant dense<0.000000e+00> : vector<8x256xf32>
    %3 = tpu.matmul %1, %2, %cst {dimension_numbers = #tpu.dot_dimension_numbers<[1], [0], [0], [1], [0, 0, 1, 1], [], []>} : vector<8x512xbf16>, vector<512x256xbf16>, vector<8x256xf32> -> vector<8x256xf32>
    %c0_3 = arith.constant 0 : index
    %c0_4 = arith.constant 0 : index
    %4 = vector.load %arg2[%c0_3, %c0_4] : memref<1x256xf32, #tpu.memory_space<vmem>>, vector<1x256xf32>
    %5 = vector.broadcast %4 : vector<1x256xf32> to vector<8x256xf32>
    %6 = arith.addf %3, %5 : vector<8x256xf32>
    %7 = vector.extract_strided_slice %6 {offsets = [0, 0], sizes = [8, 128], strides = [1, 1]} : vector<8x256xf32> to vector<8x128xf32>
    %c0_5 = arith.constant 0 : index
    %c0_6 = arith.constant 0 : index
    %8 = vector.load %arg3[%c0_5, %c0_6] : memref<8x128xf32, #tpu.memory_space<vmem>>, vector<8x128xf32>
    tpu.vector_store %arg3[%c0_5, %c0_6], %7 {strides = array<i32>} : memref<8x128xf32, #tpu.memory_space<vmem>>, vector<8x128xf32>,
    %9 = vector.extract_strided_slice %6 {offsets = [0, 128], sizes = [8, 128], strides = [1, 1]} : vector<8x256xf32> to vector<8x128xf32>
    %cst_7 = arith.constant 0.000000e+00 : f32
    %10 = vector.broadcast %cst_7 : f32 to vector<8x128xf32>
    %11 = arith.maximumf %9, %10 : vector<8x128xf32>
    %12 = math.absf %9 : vector<8x128xf32>
    %cst_8 = arith.constant 0.000000e+00 : f32
    %13 = vector.broadcast %cst_8 : f32 to vector<8x128xf32>
    %14 = arith.subf %13, %12 : vector<8x128xf32>
    %15 = math.exp %14 : vector<8x128xf32>
    %16 = math.log1p %15 : vector<8x128xf32>
    %17 = arith.addf %11, %16 : vector<8x128xf32>
    %c0_9 = arith.constant 0 : index
    %c0_10 = arith.constant 0 : index
    %18 = vector.load %arg4[%c0_9, %c0_10] : memref<8x128xf32, #tpu.memory_space<vmem>>, vector<8x128xf32>
    tpu.vector_store %arg4[%c0_9, %c0_10], %17 {strides = array<i32>} : memref<8x128xf32, #tpu.memory_space<vmem>>, vector<8x128xf32>,
    return
  }
}

module attributes {stable_mosaic.version = 11 : i64} {
  func.func @_decoder_kernel(%arg0: i32, %arg1: i32, %arg2: memref<1x8x128xf32, #tpu.memory_space<vmem>>, %arg3: memref<128x1024xbf16, #tpu.memory_space<vmem>>, %arg4: memref<1x1024xf32, #tpu.memory_space<vmem>>, %arg5: memref<128x512xbf16, #tpu.memory_space<vmem>>, %arg6: memref<128x512xbf16, #tpu.memory_space<vmem>>, %arg7: memref<128x512xbf16, #tpu.memory_space<vmem>>, %arg8: memref<128x512xbf16, #tpu.memory_space<vmem>>, %arg9: memref<1x512xf32, #tpu.memory_space<vmem>>, %arg10: memref<128x128xbf16, #tpu.memory_space<vmem>>, %arg11: memref<1x128xf32, #tpu.memory_space<vmem>>, %arg12: memref<1x1x8x128xf32, #tpu.memory_space<vmem>>, %arg13: memref<8x128xf32, #tpu.memory_space<vmem>>, %arg14: memref<8x128xf32, #tpu.memory_space<vmem>>, %arg15: memref<8x128xf32, #tpu.memory_space<vmem>>, %arg16: memref<8x128xf32, #tpu.memory_space<vmem>>, %arg17: memref<8x512xf32, #tpu.memory_space<vmem>>, %arg18: memref<8x128xf32, #tpu.memory_space<vmem>>) attributes {dimension_semantics = [#tpu.dimension_semantics<arbitrary>, #tpu.dimension_semantics<arbitrary>], iteration_bounds = array<i64: 2, 8>, scalar_prefetch = 0 : i64, scratch_operands = 6 : i64, tpu.core_type = #tpu.core_type<tc>, window_params = [{transform_indices = @transform_0, window_bounds = array<i64: 1, 8, 128>}, {pipeline_mode = #tpu.pipeline_mode<synchronous>, transform_indices = @transform_1, window_bounds = array<i64: 128, 1024>}, {pipeline_mode = #tpu.pipeline_mode<synchronous>, transform_indices = @transform_2, window_bounds = array<i64: 1, 1024>}, {pipeline_mode = #tpu.pipeline_mode<synchronous>, transform_indices = @transform_3, window_bounds = array<i64: 128, 512>}, {pipeline_mode = #tpu.pipeline_mode<synchronous>, transform_indices = @transform_4, window_bounds = array<i64: 128, 512>}, {pipeline_mode = #tpu.pipeline_mode<synchronous>, transform_indices = @transform_5, window_bounds = array<i64: 128, 512>}, {pipeline_mode = #tpu.pipeline_mode<synchronous>, transform_indices = @transform_6, window_bounds = array<i64: 128, 512>}, {pipeline_mode = #tpu.pipeline_mode<synchronous>, transform_indices = @transform_7, window_bounds = array<i64: 1, 512>}, {pipeline_mode = #tpu.pipeline_mode<synchronous>, transform_indices = @transform_8, window_bounds = array<i64: 128, 128>}, {pipeline_mode = #tpu.pipeline_mode<synchronous>, transform_indices = @transform_9, window_bounds = array<i64: 1, 128>}, {transform_indices = @transform_10, window_bounds = array<i64: 1, 1, 8, 128>}]} {
    %c0_i32 = arith.constant 0 : i32
    %0 = arith.cmpi eq, %arg0, %c0_i32 : i32
    %c0_i32_0 = arith.constant 0 : i32
    %1 = arith.cmpi eq, %arg1, %c0_i32_0 : i32
    %2 = arith.andi %0, %1 : i1
    %3 = arith.extui %2 : i1 to i32
    %c0_i32_1 = arith.constant 0 : i32
    %4 = arith.cmpi ne, %3, %c0_i32_1 : i32
    scf.if %4 {
      %cst_56 = arith.constant 0.000000e+00 : f32
      %110 = vector.broadcast %cst_56 : f32 to vector<8x128xf32>
      %c0_57 = arith.constant 0 : index
      %c0_58 = arith.constant 0 : index
      %111 = vector.load %arg18[%c0_57, %c0_58] : memref<8x128xf32, #tpu.memory_space<vmem>>, vector<8x128xf32>
      tpu.vector_store %arg18[%c0_57, %c0_58], %110 {strides = array<i32>} : memref<8x128xf32, #tpu.memory_space<vmem>>, vector<8x128xf32>,
    } else {
    }
    %c0_i32_2 = arith.constant 0 : i32
    %5 = arith.cmpi eq, %arg1, %c0_i32_2 : i32
    %6 = arith.extui %5 : i1 to i32
    %c0_i32_3 = arith.constant 0 : i32
    %7 = arith.cmpi ne, %6, %c0_i32_3 : i32
    scf.if %7 {
      %c0_56 = arith.constant 0 : index
      %c0_57 = arith.constant 0 : index
      %c0_58 = arith.constant 0 : index
      %110 = vector.load %arg2[%c0_56, %c0_57, %c0_58] : memref<1x8x128xf32, #tpu.memory_space<vmem>>, vector<1x8x128xf32>
      %111 = vector.shape_cast %110 : vector<1x8x128xf32> to vector<8x128xf32>
      %112 = arith.truncf %111 : vector<8x128xf32> to vector<8x128xbf16>
      %c0_59 = arith.constant 0 : index
      %c0_60 = arith.constant 0 : index
      %113 = vector.load %arg3[%c0_59, %c0_60] : memref<128x1024xbf16, #tpu.memory_space<vmem>>, vector<128x1024xbf16>
      %cst_61 = arith.constant dense<0.000000e+00> : vector<8x1024xf32>
      %114 = tpu.matmul %112, %113, %cst_61 {dimension_numbers = #tpu.dot_dimension_numbers<[1], [0], [0], [1], [0, 0, 1, 1], [], []>} : vector<8x128xbf16>, vector<128x1024xbf16>, vector<8x1024xf32> -> vector<8x1024xf32>
      %c0_62 = arith.constant 0 : index
      %c0_63 = arith.constant 0 : index
      %115 = vector.load %arg4[%c0_62, %c0_63] : memref<1x1024xf32, #tpu.memory_space<vmem>>, vector<1x1024xf32>
      %116 = vector.broadcast %115 : vector<1x1024xf32> to vector<8x1024xf32>
      %117 = arith.addf %114, %116 : vector<8x1024xf32>
      %118 = vector.extract_strided_slice %117 {offsets = [0, 0], sizes = [8, 512], strides = [1, 1]} : vector<8x1024xf32> to vector<8x512xf32>
      %119 = math.tanh %118 : vector<8x512xf32>
      %120 = vector.extract_strided_slice %119 {offsets = [0, 0], sizes = [8, 128], strides = [1, 1]} : vector<8x512xf32> to vector<8x128xf32>
      %c0_64 = arith.constant 0 : index
      %c0_65 = arith.constant 0 : index
      %121 = vector.load %arg13[%c0_64, %c0_65] : memref<8x128xf32, #tpu.memory_space<vmem>>, vector<8x128xf32>
      tpu.vector_store %arg13[%c0_64, %c0_65], %120 {strides = array<i32>} : memref<8x128xf32, #tpu.memory_space<vmem>>, vector<8x128xf32>,
      %122 = vector.extract_strided_slice %119 {offsets = [0, 128], sizes = [8, 128], strides = [1, 1]} : vector<8x512xf32> to vector<8x128xf32>
      %c0_66 = arith.constant 0 : index
      %c0_67 = arith.constant 0 : index
      %123 = vector.load %arg15[%c0_66, %c0_67] : memref<8x128xf32, #tpu.memory_space<vmem>>, vector<8x128xf32>
      tpu.vector_store %arg15[%c0_66, %c0_67], %122 {strides = array<i32>} : memref<8x128xf32, #tpu.memory_space<vmem>>, vector<8x128xf32>,
      %124 = vector.extract_strided_slice %119 {offsets = [0, 256], sizes = [8, 128], strides = [1, 1]} : vector<8x512xf32> to vector<8x128xf32>
      %c0_68 = arith.constant 0 : index
      %c0_69 = arith.constant 0 : index
      %125 = vector.load %arg14[%c0_68, %c0_69] : memref<8x128xf32, #tpu.memory_space<vmem>>, vector<8x128xf32>
      tpu.vector_store %arg14[%c0_68, %c0_69], %124 {strides = array<i32>} : memref<8x128xf32, #tpu.memory_space<vmem>>, vector<8x128xf32>,
      %126 = vector.extract_strided_slice %119 {offsets = [0, 384], sizes = [8, 128], strides = [1, 1]} : vector<8x512xf32> to vector<8x128xf32>
      %c0_70 = arith.constant 0 : index
      %c0_71 = arith.constant 0 : index
      %127 = vector.load %arg16[%c0_70, %c0_71] : memref<8x128xf32, #tpu.memory_space<vmem>>, vector<8x128xf32>
      tpu.vector_store %arg16[%c0_70, %c0_71], %126 {strides = array<i32>} : memref<8x128xf32, #tpu.memory_space<vmem>>, vector<8x128xf32>,
      %128 = vector.extract_strided_slice %117 {offsets = [0, 512], sizes = [8, 512], strides = [1, 1]} : vector<8x1024xf32> to vector<8x512xf32>
      %c0_72 = arith.constant 0 : index
      %c0_73 = arith.constant 0 : index
      %129 = vector.load %arg17[%c0_72, %c0_73] : memref<8x512xf32, #tpu.memory_space<vmem>>, vector<8x512xf32>
      tpu.vector_store %arg17[%c0_72, %c0_73], %128 {strides = array<i32>} : memref<8x512xf32, #tpu.memory_space<vmem>>, vector<8x512xf32>,
    } else {
    }
    %c0 = arith.constant 0 : index
    %c0_4 = arith.constant 0 : index
    %8 = vector.load %arg17[%c0, %c0_4] : memref<8x512xf32, #tpu.memory_space<vmem>>, vector<8x512xf32>
    %c0_5 = arith.constant 0 : index
    %c0_6 = arith.constant 0 : index
    %9 = vector.load %arg18[%c0_5, %c0_6] : memref<8x128xf32, #tpu.memory_space<vmem>>, vector<8x128xf32>
    %10 = arith.truncf %9 : vector<8x128xf32> to vector<8x128xbf16>
    %c0_7 = arith.constant 0 : index
    %c0_8 = arith.constant 0 : index
    %11 = vector.load %arg5[%c0_7, %c0_8] : memref<128x512xbf16, #tpu.memory_space<vmem>>, vector<128x512xbf16>
    %cst = arith.constant dense<0.000000e+00> : vector<8x512xf32>
    %12 = tpu.matmul %10, %11, %cst {dimension_numbers = #tpu.dot_dimension_numbers<[1], [0], [0], [1], [0, 0, 1, 1], [], []>} : vector<8x128xbf16>, vector<128x512xbf16>, vector<8x512xf32> -> vector<8x512xf32>
    %13 = arith.addf %8, %12 : vector<8x512xf32>
    %c0_9 = arith.constant 0 : index
    %c0_10 = arith.constant 0 : index
    %14 = vector.load %arg13[%c0_9, %c0_10] : memref<8x128xf32, #tpu.memory_space<vmem>>, vector<8x128xf32>
    %15 = arith.truncf %14 : vector<8x128xf32> to vector<8x128xbf16>
    %c0_11 = arith.constant 0 : index
    %c0_12 = arith.constant 0 : index
    %16 = vector.load %arg6[%c0_11, %c0_12] : memref<128x512xbf16, #tpu.memory_space<vmem>>, vector<128x512xbf16>
    %cst_13 = arith.constant dense<0.000000e+00> : vector<8x512xf32>
    %17 = tpu.matmul %15, %16, %cst_13 {dimension_numbers = #tpu.dot_dimension_numbers<[1], [0], [0], [1], [0, 0, 1, 1], [], []>} : vector<8x128xbf16>, vector<128x512xbf16>, vector<8x512xf32> -> vector<8x512xf32>
    %18 = arith.addf %13, %17 : vector<8x512xf32>
    %19 = vector.extract_strided_slice %18 {offsets = [0, 0], sizes = [8, 128], strides = [1, 1]} : vector<8x512xf32> to vector<8x128xf32>
    %20 = arith.negf %19 : vector<8x128xf32>
    %21 = math.exp %20 : vector<8x128xf32>
    %cst_14 = arith.constant 1.000000e+00 : f32
    %22 = vector.broadcast %cst_14 : f32 to vector<8x128xf32>
    %23 = arith.addf %22, %21 : vector<8x128xf32>
    %24 = arith.divf %22, %23 : vector<8x128xf32>
    %25 = vector.extract_strided_slice %18 {offsets = [0, 128], sizes = [8, 128], strides = [1, 1]} : vector<8x512xf32> to vector<8x128xf32>
    %26 = arith.negf %25 : vector<8x128xf32>
    %27 = math.exp %26 : vector<8x128xf32>
    %cst_15 = arith.constant 1.000000e+00 : f32
    %28 = vector.broadcast %cst_15 : f32 to vector<8x128xf32>
    %29 = arith.addf %28, %27 : vector<8x128xf32>
    %30 = arith.divf %28, %29 : vector<8x128xf32>
    %31 = vector.extract_strided_slice %18 {offsets = [0, 256], sizes = [8, 128], strides = [1, 1]} : vector<8x512xf32> to vector<8x128xf32>
    %32 = math.tanh %31 : vector<8x128xf32>
    %33 = vector.extract_strided_slice %18 {offsets = [0, 384], sizes = [8, 128], strides = [1, 1]} : vector<8x512xf32> to vector<8x128xf32>
    %34 = arith.negf %33 : vector<8x128xf32>
    %35 = math.exp %34 : vector<8x128xf32>
    %cst_16 = arith.constant 1.000000e+00 : f32
    %36 = vector.broadcast %cst_16 : f32 to vector<8x128xf32>
    %37 = arith.addf %36, %35 : vector<8x128xf32>
    %38 = arith.divf %36, %37 : vector<8x128xf32>
    %c0_17 = arith.constant 0 : index
    %c0_18 = arith.constant 0 : index
    %39 = vector.load %arg14[%c0_17, %c0_18] : memref<8x128xf32, #tpu.memory_space<vmem>>, vector<8x128xf32>
    %40 = arith.mulf %30, %39 : vector<8x128xf32>
    %41 = arith.mulf %24, %32 : vector<8x128xf32>
    %42 = arith.addf %40, %41 : vector<8x128xf32>
    %43 = math.tanh %42 : vector<8x128xf32>
    %44 = arith.mulf %38, %43 : vector<8x128xf32>
    %c0_19 = arith.constant 0 : index
    %c0_20 = arith.constant 0 : index
    %45 = vector.load %arg14[%c0_19, %c0_20] : memref<8x128xf32, #tpu.memory_space<vmem>>, vector<8x128xf32>
    tpu.vector_store %arg14[%c0_19, %c0_20], %42 {strides = array<i32>} : memref<8x128xf32, #tpu.memory_space<vmem>>, vector<8x128xf32>,
    %c0_21 = arith.constant 0 : index
    %c0_22 = arith.constant 0 : index
    %46 = vector.load %arg13[%c0_21, %c0_22] : memref<8x128xf32, #tpu.memory_space<vmem>>, vector<8x128xf32>
    tpu.vector_store %arg13[%c0_21, %c0_22], %44 {strides = array<i32>} : memref<8x128xf32, #tpu.memory_space<vmem>>, vector<8x128xf32>,
    %c0_23 = arith.constant 0 : index
    %c0_24 = arith.constant 0 : index
    %47 = vector.load %arg9[%c0_23, %c0_24] : memref<1x512xf32, #tpu.memory_space<vmem>>, vector<1x512xf32>
    %48 = arith.truncf %44 : vector<8x128xf32> to vector<8x128xbf16>
    %c0_25 = arith.constant 0 : index
    %c0_26 = arith.constant 0 : index
    %49 = vector.load %arg7[%c0_25, %c0_26] : memref<128x512xbf16, #tpu.memory_space<vmem>>, vector<128x512xbf16>
    %cst_27 = arith.constant dense<0.000000e+00> : vector<8x512xf32>
    %50 = tpu.matmul %48, %49, %cst_27 {dimension_numbers = #tpu.dot_dimension_numbers<[1], [0], [0], [1], [0, 0, 1, 1], [], []>} : vector<8x128xbf16>, vector<128x512xbf16>, vector<8x512xf32> -> vector<8x512xf32>
    %51 = vector.broadcast %47 : vector<1x512xf32> to vector<8x512xf32>
    %52 = arith.addf %51, %50 : vector<8x512xf32>
    %c0_28 = arith.constant 0 : index
    %c0_29 = arith.constant 0 : index
    %53 = vector.load %arg15[%c0_28, %c0_29] : memref<8x128xf32, #tpu.memory_space<vmem>>, vector<8x128xf32>
    %54 = arith.truncf %53 : vector<8x128xf32> to vector<8x128xbf16>
    %c0_30 = arith.constant 0 : index
    %c0_31 = arith.constant 0 : index
    %55 = vector.load %arg8[%c0_30, %c0_31] : memref<128x512xbf16, #tpu.memory_space<vmem>>, vector<128x512xbf16>
    %cst_32 = arith.constant dense<0.000000e+00> : vector<8x512xf32>
    %56 = tpu.matmul %54, %55, %cst_32 {dimension_numbers = #tpu.dot_dimension_numbers<[1], [0], [0], [1], [0, 0, 1, 1], [], []>} : vector<8x128xbf16>, vector<128x512xbf16>, vector<8x512xf32> -> vector<8x512xf32>
    %57 = arith.addf %52, %56 : vector<8x512xf32>
    %58 = vector.extract_strided_slice %57 {offsets = [0, 0], sizes = [8, 128], strides = [1, 1]} : vector<8x512xf32> to vector<8x128xf32>
    %59 = arith.negf %58 : vector<8x128xf32>
    %60 = math.exp %59 : vector<8x128xf32>
    %cst_33 = arith.constant 1.000000e+00 : f32
    %61 = vector.broadcast %cst_33 : f32 to vector<8x128xf32>
    %62 = arith.addf %61, %60 : vector<8x128xf32>
    %63 = arith.divf %61, %62 : vector<8x128xf32>
    %64 = vector.extract_strided_slice %57 {offsets = [0, 128], sizes = [8, 128], strides = [1, 1]} : vector<8x512xf32> to vector<8x128xf32>
    %65 = arith.negf %64 : vector<8x128xf32>
    %66 = math.exp %65 : vector<8x128xf32>
    %cst_34 = arith.constant 1.000000e+00 : f32
    %67 = vector.broadcast %cst_34 : f32 to vector<8x128xf32>
    %68 = arith.addf %67, %66 : vector<8x128xf32>
    %69 = arith.divf %67, %68 : vector<8x128xf32>
    %70 = vector.extract_strided_slice %57 {offsets = [0, 256], sizes = [8, 128], strides = [1, 1]} : vector<8x512xf32> to vector<8x128xf32>
    %71 = math.tanh %70 : vector<8x128xf32>
    %72 = vector.extract_strided_slice %57 {offsets = [0, 384], sizes = [8, 128], strides = [1, 1]} : vector<8x512xf32> to vector<8x128xf32>
    %73 = arith.negf %72 : vector<8x128xf32>
    %74 = math.exp %73 : vector<8x128xf32>
    %cst_35 = arith.constant 1.000000e+00 : f32
    %75 = vector.broadcast %cst_35 : f32 to vector<8x128xf32>
    %76 = arith.addf %75, %74 : vector<8x128xf32>
    %77 = arith.divf %75, %76 : vector<8x128xf32>
    %c0_36 = arith.constant 0 : index
    %c0_37 = arith.constant 0 : index
    %78 = vector.load %arg16[%c0_36, %c0_37] : memref<8x128xf32, #tpu.memory_space<vmem>>, vector<8x128xf32>
    %79 = arith.mulf %69, %78 : vector<8x128xf32>
    %80 = arith.mulf %63, %71 : vector<8x128xf32>
    %81 = arith.addf %79, %80 : vector<8x128xf32>
    %82 = math.tanh %81 : vector<8x128xf32>
    %83 = arith.mulf %77, %82 : vector<8x128xf32>
    %c0_38 = arith.constant 0 : index
    %c0_39 = arith.constant 0 : index
    %84 = vector.load %arg16[%c0_38, %c0_39] : memref<8x128xf32, #tpu.memory_space<vmem>>, vector<8x128xf32>
    tpu.vector_store %arg16[%c0_38, %c0_39], %81 {strides = array<i32>} : memref<8x128xf32, #tpu.memory_space<vmem>>, vector<8x128xf32>,
    %c0_40 = arith.constant 0 : index
    %c0_41 = arith.constant 0 : index
    %85 = vector.load %arg15[%c0_40, %c0_41] : memref<8x128xf32, #tpu.memory_space<vmem>>, vector<8x128xf32>
    tpu.vector_store %arg15[%c0_40, %c0_41], %83 {strides = array<i32>} : memref<8x128xf32, #tpu.memory_space<vmem>>, vector<8x128xf32>,
    %86 = arith.truncf %83 : vector<8x128xf32> to vector<8x128xbf16>
    %c0_42 = arith.constant 0 : index
    %c0_43 = arith.constant 0 : index
    %87 = vector.load %arg10[%c0_42, %c0_43] : memref<128x128xbf16, #tpu.memory_space<vmem>>, vector<128x128xbf16>
    %cst_44 = arith.constant dense<0.000000e+00> : vector<8x128xf32>
    %88 = tpu.matmul %86, %87, %cst_44 {dimension_numbers = #tpu.dot_dimension_numbers<[1], [0], [0], [1], [0, 0, 1, 1], [], []>} : vector<8x128xbf16>, vector<128x128xbf16>, vector<8x128xf32> -> vector<8x128xf32>
    %c0_45 = arith.constant 0 : index
    %c0_46 = arith.constant 0 : index
    %89 = vector.load %arg11[%c0_45, %c0_46] : memref<1x128xf32, #tpu.memory_space<vmem>>, vector<1x128xf32>
    %90 = vector.broadcast %89 : vector<1x128xf32> to vector<8x128xf32>
    %91 = arith.addf %88, %90 : vector<8x128xf32>
    %c0_47 = arith.constant 0 : index
    %c0_48 = arith.constant 0 : index
    %92 = vector.load %arg18[%c0_47, %c0_48] : memref<8x128xf32, #tpu.memory_space<vmem>>, vector<8x128xf32>
    tpu.vector_store %arg18[%c0_47, %c0_48], %91 {strides = array<i32>} : memref<8x128xf32, #tpu.memory_space<vmem>>, vector<8x128xf32>,
    %93 = tpu.iota {dimensions = array<i32: 1>} : vector<8x128xi32>
    %c90_i32 = arith.constant 90 : i32
    %94 = vector.broadcast %c90_i32 : i32 to vector<8x128xi32>
    %95 = arith.cmpi slt, %93, %94 : vector<8x128xi32>
    %cst_49 = arith.constant -1.000000e+30 : f32
    %96 = vector.broadcast %cst_49 : f32 to vector<8x128xf32>
    %97 = arith.select %95, %91, %96 : vector<8x128xi1>, vector<8x128xf32>
    %cst_50 = arith.constant dense<0xFF800000> : vector<8xf32>
    %98 = vector.multi_reduction <maximumf>, %97, %cst_50 [1] : vector<8x128xf32> to vector<8xf32>
    %99 = vector.shape_cast %98 : vector<8xf32> to vector<8x1xf32>
    %100 = vector.broadcast %99 : vector<8x1xf32> to vector<8x128xf32>
    %101 = arith.subf %97, %100 : vector<8x128xf32>
    %102 = math.exp %101 : vector<8x128xf32>
    %cst_51 = arith.constant dense<0.000000e+00> : vector<8xf32>
    %103 = vector.multi_reduction <add>, %102, %cst_51 [1] : vector<8x128xf32> to vector<8xf32>
    %104 = vector.shape_cast %103 : vector<8xf32> to vector<8x1xf32>
    %105 = vector.broadcast %104 : vector<8x1xf32> to vector<8x128xf32>
    %106 = arith.divf %102, %105 : vector<8x128xf32>
    %c0_52 = arith.constant 0 : index
    %c0_53 = arith.constant 0 : index
    %c0_54 = arith.constant 0 : index
    %c0_55 = arith.constant 0 : index
    %107 = vector.load %arg12[%c0_52, %c0_53, %c0_54, %c0_55] : memref<1x1x8x128xf32, #tpu.memory_space<vmem>>, vector<1x1x8x128xf32>
    %108 = vector.shape_cast %107 : vector<1x1x8x128xf32> to vector<8x128xf32>
    %109 = vector.shape_cast %106 : vector<8x128xf32> to vector<1x1x8x128xf32>
    tpu.vector_store %arg12[%c0_52, %c0_53, %c0_54, %c0_55], %109 {strides = array<i32>} : memref<1x1x8x128xf32, #tpu.memory_space<vmem>>, vector<1x1x8x128xf32>,
    return
  }
  func.func @transform_0(%arg0: i32, %arg1: i32) -> (i32, i32, i32) {
    %c0_i32 = arith.constant 0 : i32
    %c0_i32_0 = arith.constant 0 : i32
    %c0_i32_1 = arith.constant 0 : i32
    return %arg0, %c0_i32, %c0_i32_0 : i32, i32, i32
  }
  func.func @transform_1(%arg0: i32, %arg1: i32) -> (i32, i32) {
    %c0_i32 = arith.constant 0 : i32
    %c0_i32_0 = arith.constant 0 : i32
    %c0_i32_1 = arith.constant 0 : i32
    return %c0_i32, %c0_i32_0 : i32, i32
  }
  func.func @transform_2(%arg0: i32, %arg1: i32) -> (i32, i32) {
    %c0_i32 = arith.constant 0 : i32
    %c0_i32_0 = arith.constant 0 : i32
    %c0_i32_1 = arith.constant 0 : i32
    return %c0_i32, %c0_i32_0 : i32, i32
  }
  func.func @transform_3(%arg0: i32, %arg1: i32) -> (i32, i32) {
    %c0_i32 = arith.constant 0 : i32
    %c0_i32_0 = arith.constant 0 : i32
    %c0_i32_1 = arith.constant 0 : i32
    return %c0_i32, %c0_i32_0 : i32, i32
  }
  func.func @transform_4(%arg0: i32, %arg1: i32) -> (i32, i32) {
    %c0_i32 = arith.constant 0 : i32
    %c0_i32_0 = arith.constant 0 : i32
    %c0_i32_1 = arith.constant 0 : i32
    return %c0_i32, %c0_i32_0 : i32, i32
  }
  func.func @transform_5(%arg0: i32, %arg1: i32) -> (i32, i32) {
    %c0_i32 = arith.constant 0 : i32
    %c0_i32_0 = arith.constant 0 : i32
    %c0_i32_1 = arith.constant 0 : i32
    return %c0_i32, %c0_i32_0 : i32, i32
  }
  func.func @transform_6(%arg0: i32, %arg1: i32) -> (i32, i32) {
    %c0_i32 = arith.constant 0 : i32
    %c0_i32_0 = arith.constant 0 : i32
    %c0_i32_1 = arith.constant 0 : i32
    return %c0_i32, %c0_i32_0 : i32, i32
  }
  func.func @transform_7(%arg0: i32, %arg1: i32) -> (i32, i32) {
    %c0_i32 = arith.constant 0 : i32
    %c0_i32_0 = arith.constant 0 : i32
    %c0_i32_1 = arith.constant 0 : i32
    return %c0_i32, %c0_i32_0 : i32, i32
  }
  func.func @transform_8(%arg0: i32, %arg1: i32) -> (i32, i32) {
    %c0_i32 = arith.constant 0 : i32
    %c0_i32_0 = arith.constant 0 : i32
    %c0_i32_1 = arith.constant 0 : i32
    return %c0_i32, %c0_i32_0 : i32, i32
  }
  func.func @transform_9(%arg0: i32, %arg1: i32) -> (i32, i32) {
    %c0_i32 = arith.constant 0 : i32
    %c0_i32_0 = arith.constant 0 : i32
    %c0_i32_1 = arith.constant 0 : i32
    return %c0_i32, %c0_i32_0 : i32, i32
  }
  func.func @transform_10(%arg0: i32, %arg1: i32) -> (i32, i32, i32, i32) {
    %c0_i32 = arith.constant 0 : i32
    %c0_i32_0 = arith.constant 0 : i32
    %c0_i32_1 = arith.constant 0 : i32
    return %arg0, %arg1, %c0_i32, %c0_i32_0 : i32, i32, i32, i32
  }
}

module attributes {stable_mosaic.version = 11 : i64} {
  func.func @_conductor_kernel(%arg0: i32, %arg1: memref<8x128xf32, #tpu.memory_space<vmem>>, %arg2: memref<128x512xbf16, #tpu.memory_space<vmem>>, %arg3: memref<1x512xf32, #tpu.memory_space<vmem>>, %arg4: memref<1x512xf32, #tpu.memory_space<vmem>>, %arg5: memref<128x512xbf16, #tpu.memory_space<vmem>>, %arg6: memref<128x512xbf16, #tpu.memory_space<vmem>>, %arg7: memref<128x512xbf16, #tpu.memory_space<vmem>>, %arg8: memref<1x512xf32, #tpu.memory_space<vmem>>, %arg9: memref<1x8x128xf32, #tpu.memory_space<vmem>>, %arg10: memref<8x128xf32, #tpu.memory_space<vmem>>, %arg11: memref<8x128xf32, #tpu.memory_space<vmem>>, %arg12: memref<8x128xf32, #tpu.memory_space<vmem>>, %arg13: memref<8x128xf32, #tpu.memory_space<vmem>>) attributes {dimension_semantics = [#tpu.dimension_semantics<arbitrary>], iteration_bounds = array<i64: 2>, scalar_prefetch = 0 : i64, scratch_operands = 4 : i64, tpu.core_type = #tpu.core_type<tc>, window_params = [{pipeline_mode = #tpu.pipeline_mode<synchronous>, transform_indices = @transform_0, window_bounds = array<i64: 8, 128>}, {pipeline_mode = #tpu.pipeline_mode<synchronous>, transform_indices = @transform_1, window_bounds = array<i64: 128, 512>}, {pipeline_mode = #tpu.pipeline_mode<synchronous>, transform_indices = @transform_2, window_bounds = array<i64: 1, 512>}, {pipeline_mode = #tpu.pipeline_mode<synchronous>, transform_indices = @transform_3, window_bounds = array<i64: 1, 512>}, {pipeline_mode = #tpu.pipeline_mode<synchronous>, transform_indices = @transform_4, window_bounds = array<i64: 128, 512>}, {pipeline_mode = #tpu.pipeline_mode<synchronous>, transform_indices = @transform_5, window_bounds = array<i64: 128, 512>}, {pipeline_mode = #tpu.pipeline_mode<synchronous>, transform_indices = @transform_6, window_bounds = array<i64: 128, 512>}, {pipeline_mode = #tpu.pipeline_mode<synchronous>, transform_indices = @transform_7, window_bounds = array<i64: 1, 512>}, {transform_indices = @transform_8, window_bounds = array<i64: 1, 8, 128>}]} {
    %c0_i32 = arith.constant 0 : i32
    %0 = arith.cmpi eq, %arg0, %c0_i32 : i32
    %1 = arith.extui %0 : i1 to i32
    %c0_i32_0 = arith.constant 0 : i32
    %2 = arith.cmpi ne, %1, %c0_i32_0 : i32
    scf.if %2 {
      %c0_37 = arith.constant 0 : index
      %c0_38 = arith.constant 0 : index
      %80 = vector.load %arg1[%c0_37, %c0_38] : memref<8x128xf32, #tpu.memory_space<vmem>>, vector<8x128xf32>
      %81 = arith.truncf %80 : vector<8x128xf32> to vector<8x128xbf16>
      %c0_39 = arith.constant 0 : index
      %c0_40 = arith.constant 0 : index
      %82 = vector.load %arg2[%c0_39, %c0_40] : memref<128x512xbf16, #tpu.memory_space<vmem>>, vector<128x512xbf16>
      %cst_41 = arith.constant dense<0.000000e+00> : vector<8x512xf32>
      %83 = tpu.matmul %81, %82, %cst_41 {dimension_numbers = #tpu.dot_dimension_numbers<[1], [0], [0], [1], [0, 0, 1, 1], [], []>} : vector<8x128xbf16>, vector<128x512xbf16>, vector<8x512xf32> -> vector<8x512xf32>
      %c0_42 = arith.constant 0 : index
      %c0_43 = arith.constant 0 : index
      %84 = vector.load %arg3[%c0_42, %c0_43] : memref<1x512xf32, #tpu.memory_space<vmem>>, vector<1x512xf32>
      %85 = vector.broadcast %84 : vector<1x512xf32> to vector<8x512xf32>
      %86 = arith.addf %83, %85 : vector<8x512xf32>
      %87 = math.tanh %86 : vector<8x512xf32>
      %88 = vector.extract_strided_slice %87 {offsets = [0, 0], sizes = [8, 128], strides = [1, 1]} : vector<8x512xf32> to vector<8x128xf32>
      %c0_44 = arith.constant 0 : index
      %c0_45 = arith.constant 0 : index
      %89 = vector.load %arg10[%c0_44, %c0_45] : memref<8x128xf32, #tpu.memory_space<vmem>>, vector<8x128xf32>
      tpu.vector_store %arg10[%c0_44, %c0_45], %88 {strides = array<i32>} : memref<8x128xf32, #tpu.memory_space<vmem>>, vector<8x128xf32>,
      %90 = vector.extract_strided_slice %87 {offsets = [0, 128], sizes = [8, 128], strides = [1, 1]} : vector<8x512xf32> to vector<8x128xf32>
      %c0_46 = arith.constant 0 : index
      %c0_47 = arith.constant 0 : index
      %91 = vector.load %arg12[%c0_46, %c0_47] : memref<8x128xf32, #tpu.memory_space<vmem>>, vector<8x128xf32>
      tpu.vector_store %arg12[%c0_46, %c0_47], %90 {strides = array<i32>} : memref<8x128xf32, #tpu.memory_space<vmem>>, vector<8x128xf32>,
      %92 = vector.extract_strided_slice %87 {offsets = [0, 256], sizes = [8, 128], strides = [1, 1]} : vector<8x512xf32> to vector<8x128xf32>
      %c0_48 = arith.constant 0 : index
      %c0_49 = arith.constant 0 : index
      %93 = vector.load %arg11[%c0_48, %c0_49] : memref<8x128xf32, #tpu.memory_space<vmem>>, vector<8x128xf32>
      tpu.vector_store %arg11[%c0_48, %c0_49], %92 {strides = array<i32>} : memref<8x128xf32, #tpu.memory_space<vmem>>, vector<8x128xf32>,
      %94 = vector.extract_strided_slice %87 {offsets = [0, 384], sizes = [8, 128], strides = [1, 1]} : vector<8x512xf32> to vector<8x128xf32>
      %c0_50 = arith.constant 0 : index
      %c0_51 = arith.constant 0 : index
      %95 = vector.load %arg13[%c0_50, %c0_51] : memref<8x128xf32, #tpu.memory_space<vmem>>, vector<8x128xf32>
      tpu.vector_store %arg13[%c0_50, %c0_51], %94 {strides = array<i32>} : memref<8x128xf32, #tpu.memory_space<vmem>>, vector<8x128xf32>,
    } else {
    }
    %c0 = arith.constant 0 : index
    %c0_1 = arith.constant 0 : index
    %3 = vector.load %arg4[%c0, %c0_1] : memref<1x512xf32, #tpu.memory_space<vmem>>, vector<1x512xf32>
    %c0_2 = arith.constant 0 : index
    %c0_3 = arith.constant 0 : index
    %4 = vector.load %arg10[%c0_2, %c0_3] : memref<8x128xf32, #tpu.memory_space<vmem>>, vector<8x128xf32>
    %5 = arith.truncf %4 : vector<8x128xf32> to vector<8x128xbf16>
    %c0_4 = arith.constant 0 : index
    %c0_5 = arith.constant 0 : index
    %6 = vector.load %arg5[%c0_4, %c0_5] : memref<128x512xbf16, #tpu.memory_space<vmem>>, vector<128x512xbf16>
    %cst = arith.constant dense<0.000000e+00> : vector<8x512xf32>
    %7 = tpu.matmul %5, %6, %cst {dimension_numbers = #tpu.dot_dimension_numbers<[1], [0], [0], [1], [0, 0, 1, 1], [], []>} : vector<8x128xbf16>, vector<128x512xbf16>, vector<8x512xf32> -> vector<8x512xf32>
    %8 = vector.broadcast %3 : vector<1x512xf32> to vector<8x512xf32>
    %9 = arith.addf %8, %7 : vector<8x512xf32>
    %10 = vector.extract_strided_slice %9 {offsets = [0, 0], sizes = [8, 128], strides = [1, 1]} : vector<8x512xf32> to vector<8x128xf32>
    %11 = arith.negf %10 : vector<8x128xf32>
    %12 = math.exp %11 : vector<8x128xf32>
    %cst_6 = arith.constant 1.000000e+00 : f32
    %13 = vector.broadcast %cst_6 : f32 to vector<8x128xf32>
    %14 = arith.addf %13, %12 : vector<8x128xf32>
    %15 = arith.divf %13, %14 : vector<8x128xf32>
    %16 = vector.extract_strided_slice %9 {offsets = [0, 128], sizes = [8, 128], strides = [1, 1]} : vector<8x512xf32> to vector<8x128xf32>
    %17 = arith.negf %16 : vector<8x128xf32>
    %18 = math.exp %17 : vector<8x128xf32>
    %cst_7 = arith.constant 1.000000e+00 : f32
    %19 = vector.broadcast %cst_7 : f32 to vector<8x128xf32>
    %20 = arith.addf %19, %18 : vector<8x128xf32>
    %21 = arith.divf %19, %20 : vector<8x128xf32>
    %22 = vector.extract_strided_slice %9 {offsets = [0, 256], sizes = [8, 128], strides = [1, 1]} : vector<8x512xf32> to vector<8x128xf32>
    %23 = math.tanh %22 : vector<8x128xf32>
    %24 = vector.extract_strided_slice %9 {offsets = [0, 384], sizes = [8, 128], strides = [1, 1]} : vector<8x512xf32> to vector<8x128xf32>
    %25 = arith.negf %24 : vector<8x128xf32>
    %26 = math.exp %25 : vector<8x128xf32>
    %cst_8 = arith.constant 1.000000e+00 : f32
    %27 = vector.broadcast %cst_8 : f32 to vector<8x128xf32>
    %28 = arith.addf %27, %26 : vector<8x128xf32>
    %29 = arith.divf %27, %28 : vector<8x128xf32>
    %c0_9 = arith.constant 0 : index
    %c0_10 = arith.constant 0 : index
    %30 = vector.load %arg11[%c0_9, %c0_10] : memref<8x128xf32, #tpu.memory_space<vmem>>, vector<8x128xf32>
    %31 = arith.mulf %21, %30 : vector<8x128xf32>
    %32 = arith.mulf %15, %23 : vector<8x128xf32>
    %33 = arith.addf %31, %32 : vector<8x128xf32>
    %34 = math.tanh %33 : vector<8x128xf32>
    %35 = arith.mulf %29, %34 : vector<8x128xf32>
    %c0_11 = arith.constant 0 : index
    %c0_12 = arith.constant 0 : index
    %36 = vector.load %arg11[%c0_11, %c0_12] : memref<8x128xf32, #tpu.memory_space<vmem>>, vector<8x128xf32>
    tpu.vector_store %arg11[%c0_11, %c0_12], %33 {strides = array<i32>} : memref<8x128xf32, #tpu.memory_space<vmem>>, vector<8x128xf32>,
    %c0_13 = arith.constant 0 : index
    %c0_14 = arith.constant 0 : index
    %37 = vector.load %arg10[%c0_13, %c0_14] : memref<8x128xf32, #tpu.memory_space<vmem>>, vector<8x128xf32>
    tpu.vector_store %arg10[%c0_13, %c0_14], %35 {strides = array<i32>} : memref<8x128xf32, #tpu.memory_space<vmem>>, vector<8x128xf32>,
    %c0_15 = arith.constant 0 : index
    %c0_16 = arith.constant 0 : index
    %38 = vector.load %arg8[%c0_15, %c0_16] : memref<1x512xf32, #tpu.memory_space<vmem>>, vector<1x512xf32>
    %39 = arith.truncf %35 : vector<8x128xf32> to vector<8x128xbf16>
    %c0_17 = arith.constant 0 : index
    %c0_18 = arith.constant 0 : index
    %40 = vector.load %arg6[%c0_17, %c0_18] : memref<128x512xbf16, #tpu.memory_space<vmem>>, vector<128x512xbf16>
    %cst_19 = arith.constant dense<0.000000e+00> : vector<8x512xf32>
    %41 = tpu.matmul %39, %40, %cst_19 {dimension_numbers = #tpu.dot_dimension_numbers<[1], [0], [0], [1], [0, 0, 1, 1], [], []>} : vector<8x128xbf16>, vector<128x512xbf16>, vector<8x512xf32> -> vector<8x512xf32>
    %42 = vector.broadcast %38 : vector<1x512xf32> to vector<8x512xf32>
    %43 = arith.addf %42, %41 : vector<8x512xf32>
    %c0_20 = arith.constant 0 : index
    %c0_21 = arith.constant 0 : index
    %44 = vector.load %arg12[%c0_20, %c0_21] : memref<8x128xf32, #tpu.memory_space<vmem>>, vector<8x128xf32>
    %45 = arith.truncf %44 : vector<8x128xf32> to vector<8x128xbf16>
    %c0_22 = arith.constant 0 : index
    %c0_23 = arith.constant 0 : index
    %46 = vector.load %arg7[%c0_22, %c0_23] : memref<128x512xbf16, #tpu.memory_space<vmem>>, vector<128x512xbf16>
    %cst_24 = arith.constant dense<0.000000e+00> : vector<8x512xf32>
    %47 = tpu.matmul %45, %46, %cst_24 {dimension_numbers = #tpu.dot_dimension_numbers<[1], [0], [0], [1], [0, 0, 1, 1], [], []>} : vector<8x128xbf16>, vector<128x512xbf16>, vector<8x512xf32> -> vector<8x512xf32>
    %48 = arith.addf %43, %47 : vector<8x512xf32>
    %49 = vector.extract_strided_slice %48 {offsets = [0, 0], sizes = [8, 128], strides = [1, 1]} : vector<8x512xf32> to vector<8x128xf32>
    %50 = arith.negf %49 : vector<8x128xf32>
    %51 = math.exp %50 : vector<8x128xf32>
    %cst_25 = arith.constant 1.000000e+00 : f32
    %52 = vector.broadcast %cst_25 : f32 to vector<8x128xf32>
    %53 = arith.addf %52, %51 : vector<8x128xf32>
    %54 = arith.divf %52, %53 : vector<8x128xf32>
    %55 = vector.extract_strided_slice %48 {offsets = [0, 128], sizes = [8, 128], strides = [1, 1]} : vector<8x512xf32> to vector<8x128xf32>
    %56 = arith.negf %55 : vector<8x128xf32>
    %57 = math.exp %56 : vector<8x128xf32>
    %cst_26 = arith.constant 1.000000e+00 : f32
    %58 = vector.broadcast %cst_26 : f32 to vector<8x128xf32>
    %59 = arith.addf %58, %57 : vector<8x128xf32>
    %60 = arith.divf %58, %59 : vector<8x128xf32>
    %61 = vector.extract_strided_slice %48 {offsets = [0, 256], sizes = [8, 128], strides = [1, 1]} : vector<8x512xf32> to vector<8x128xf32>
    %62 = math.tanh %61 : vector<8x128xf32>
    %63 = vector.extract_strided_slice %48 {offsets = [0, 384], sizes = [8, 128], strides = [1, 1]} : vector<8x512xf32> to vector<8x128xf32>
    %64 = arith.negf %63 : vector<8x128xf32>
    %65 = math.exp %64 : vector<8x128xf32>
    %cst_27 = arith.constant 1.000000e+00 : f32
    %66 = vector.broadcast %cst_27 : f32 to vector<8x128xf32>
    %67 = arith.addf %66, %65 : vector<8x128xf32>
    %68 = arith.divf %66, %67 : vector<8x128xf32>
    %c0_28 = arith.constant 0 : index
    %c0_29 = arith.constant 0 : index
    %69 = vector.load %arg13[%c0_28, %c0_29] : memref<8x128xf32, #tpu.memory_space<vmem>>, vector<8x128xf32>
    %70 = arith.mulf %60, %69 : vector<8x128xf32>
    %71 = arith.mulf %54, %62 : vector<8x128xf32>
    %72 = arith.addf %70, %71 : vector<8x128xf32>
    %73 = math.tanh %72 : vector<8x128xf32>
    %74 = arith.mulf %68, %73 : vector<8x128xf32>
    %c0_30 = arith.constant 0 : index
    %c0_31 = arith.constant 0 : index
    %75 = vector.load %arg13[%c0_30, %c0_31] : memref<8x128xf32, #tpu.memory_space<vmem>>, vector<8x128xf32>
    tpu.vector_store %arg13[%c0_30, %c0_31], %72 {strides = array<i32>} : memref<8x128xf32, #tpu.memory_space<vmem>>, vector<8x128xf32>,
    %c0_32 = arith.constant 0 : index
    %c0_33 = arith.constant 0 : index
    %76 = vector.load %arg12[%c0_32, %c0_33] : memref<8x128xf32, #tpu.memory_space<vmem>>, vector<8x128xf32>
    tpu.vector_store %arg12[%c0_32, %c0_33], %74 {strides = array<i32>} : memref<8x128xf32, #tpu.memory_space<vmem>>, vector<8x128xf32>,
    %c0_34 = arith.constant 0 : index
    %c0_35 = arith.constant 0 : index
    %c0_36 = arith.constant 0 : index
    %77 = vector.load %arg9[%c0_34, %c0_35, %c0_36] : memref<1x8x128xf32, #tpu.memory_space<vmem>>, vector<1x8x128xf32>
    %78 = vector.shape_cast %77 : vector<1x8x128xf32> to vector<8x128xf32>
    %79 = vector.shape_cast %74 : vector<8x128xf32> to vector<1x8x128xf32>
    tpu.vector_store %arg9[%c0_34, %c0_35, %c0_36], %79 {strides = array<i32>} : memref<1x8x128xf32, #tpu.memory_space<vmem>>, vector<1x8x128xf32>,
    return
  }
  func.func @transform_0(%arg0: i32) -> (i32, i32) {
    %c0_i32 = arith.constant 0 : i32
    %c0_i32_0 = arith.constant 0 : i32
    %c0_i32_1 = arith.constant 0 : i32
    return %c0_i32, %c0_i32_0 : i32, i32
  }
  func.func @transform_1(%arg0: i32) -> (i32, i32) {
    %c0_i32 = arith.constant 0 : i32
    %c0_i32_0 = arith.constant 0 : i32
    %c0_i32_1 = arith.constant 0 : i32
    return %c0_i32, %c0_i32_0 : i32, i32
  }
  func.func @transform_2(%arg0: i32) -> (i32, i32) {
    %c0_i32 = arith.constant 0 : i32
    %c0_i32_0 = arith.constant 0 : i32
    %c0_i32_1 = arith.constant 0 : i32
    return %c0_i32, %c0_i32_0 : i32, i32
  }
  func.func @transform_3(%arg0: i32) -> (i32, i32) {
    %c0_i32 = arith.constant 0 : i32
    %c0_i32_0 = arith.constant 0 : i32
    %c0_i32_1 = arith.constant 0 : i32
    return %c0_i32, %c0_i32_0 : i32, i32
  }
  func.func @transform_4(%arg0: i32) -> (i32, i32) {
    %c0_i32 = arith.constant 0 : i32
    %c0_i32_0 = arith.constant 0 : i32
    %c0_i32_1 = arith.constant 0 : i32
    return %c0_i32, %c0_i32_0 : i32, i32
  }
  func.func @transform_5(%arg0: i32) -> (i32, i32) {
    %c0_i32 = arith.constant 0 : i32
    %c0_i32_0 = arith.constant 0 : i32
    %c0_i32_1 = arith.constant 0 : i32
    return %c0_i32, %c0_i32_0 : i32, i32
  }
  func.func @transform_6(%arg0: i32) -> (i32, i32) {
    %c0_i32 = arith.constant 0 : i32
    %c0_i32_0 = arith.constant 0 : i32
    %c0_i32_1 = arith.constant 0 : i32
    return %c0_i32, %c0_i32_0 : i32, i32
  }
  func.func @transform_7(%arg0: i32) -> (i32, i32) {
    %c0_i32 = arith.constant 0 : i32
    %c0_i32_0 = arith.constant 0 : i32
    %c0_i32_1 = arith.constant 0 : i32
    return %c0_i32, %c0_i32_0 : i32, i32
  }
  func.func @transform_8(%arg0: i32) -> (i32, i32, i32) {
    %c0_i32 = arith.constant 0 : i32
    %c0_i32_0 = arith.constant 0 : i32
    %c0_i32_1 = arith.constant 0 : i32
    return %arg0, %c0_i32, %c0_i32_0 : i32, i32, i32
  }
}

</mosaic_0001>

<bundles_post_ra>
// kernel: vae_forward.8
= control target key start
LH: loop header
LB: loop body
LE: loop exit
PB: predicated region body
PF: predicated region fallthrough
CT: control target
= control target key end

     0   :  { %s1676_s9 = smov 0   ;;  %s1678_s10 = smov 0   ;;  %s1899_s0 = inlined_call_operand.vmem [shape: f32[16,8,2048], index: 0, kind: input, shape index: {}]   ;;  %s1900_s1 = inlined_call_operand.vmem [shape: bf16[2,256,1024], index: 1, kind: input, shape index: {}]   ;;  %s1901_s2 = inlined_call_operand.vmem [shape: f32[16,8,512], index: 2, kind: output, shape index: {}]  }
   0x1   :  { %s1680_s11 = smov 0   ;;  %s1682_s12 = smov 0  }
   0x2   :  { %s1684_s13 = smov 0  }
   0x3 LB: > { %s21_s14 = sadd.s32 1, %s1650_s11  ;;  %s24_s15 = sadd.s32 1, %s1654_s12  ;;  %s1658_s13 = sphi %s1684_s13, %s12_s13   ;;  %s1654_s12 = sphi %s1682_s12, %s1905_s12   ;;  %s1650_s11 = sphi %s1680_s11, %s1904_s11   ;;  %s1646_s10 = sphi %s1678_s10, %s1903_s10   ;;  %s1642_s9 = sphi %s1676_s9, %s1902_s9  }
   0x4   : > { %p22_p0 = scmp.ge.s32.totalorder %s21_s14, 16  ;;  %p1400_p1 = scmp.ge.s32.totalorder %s1658_s13, 1 }
   0x5   : > { %p173_p2 = scmp.lt.s32.totalorder %s1658_s13, 33 }
   0x6   : > { %s1907_s14 = smov (%p22_p0, %s21_s14), 0  ;;  %s1909_s15 = smov (!%p22_p0, %s24_s15), %s1654_s12 }
   0x7   : > { %p174_p3 = pnand %p1400_p1, %p173_p2  ;;  %p26_p4 = scmp.ge.s32.totalorder %s1909_s15, 2 }
   0x8   : > { %s218_s16 = ssub.s32 (!%p174_p3), 1, %s1646_s10  ;;  %s220_s17 = ssub.s32 (!%p174_p3), 15, %s1642_s9 }
   0x9   : > { %s1911_s15 = smov (%p26_p4, %s1909_s15), 0  ;;  %177 = sbr.rel (%p174_p3) target bundleno = 406 (0x196), region = 28 }
   0xa   : > { %s219_s18 = smul.u32 (!%p174_p3), %s1642_s9, %s218_s16  ;;  %s1401_s19 = sshll.u32 (!%p174_p3), %s1646_s10, 3 }
   0xb   : > { %s221_s20 = smul.u32 (!%p174_p3), %s1646_s10, %s220_s17  ;;  %p226_p5 = scmp.lt.s32.totalorder (!%p174_p3), %s1401_s19, 15 }
   0xc   : > { %p238_p6 = scmp.lt.s32.totalorder (!%p174_p3), %s1646_s10, 1  ;;  %s1406_s22 = sshll.u32 (!%p174_p3), %s1646_s10, 1 }
   0xd   : > { %s222_s21 = sadd.s32 (!%p174_p3), %s221_s20, %s219_s18  ;;  %p251_p8 = scmp.lt.s32.totalorder (!%p174_p3), %s1406_s22, 3 }
   0xe   : > { %p224_p7 = scmp.lt.s32.totalorder (!%p174_p3), %s222_s21, 15  ;;  %p1409_p9 = scmp.ne.s32.totalorder (!%p174_p3), %s1642_s9, 0 }
  0x10   : > { %s1913_s19 = smov (!%p226_p5, %s1401_s19), 15  ;;  %s1915_s21 = smov (!%p224_p7, %s222_s21), 15 }
  0x11   : > { %s1917_s10 = smov (!%p238_p6, %s1646_s10), 1  ;;  %s1402_s23 = sshll.u32 %s1915_s21, 4  ;;  %v1660_v0 = vmov (!%p1409_p9), 0.0  }
  0x12   : > { %s229_s24 = sadd.s32 %s1402_s23, %s1913_s19  ;;  %s1546_s25 = sshll.u32 %s1917_s10, 10  ;;  %267 = vst [vmem:[#allocation2] sm:$0xff] (!%p1409_p9), %v1660_v0  ;;  %268 = vst [vmem:[#allocation2 + $0x8] sm:$0xff] (!%p1409_p9), %v1660_v0 }
  0x13   : > { %s1403_s26 = sshll.u32 %s229_s24, 3  ;;  %s1721_s29 = scalar_lea.vmem %s1900_s1, %s1546_s25  ;;  %269 = vst [vmem:[#allocation3] sm:$0xff] (!%p1409_p9), %v1660_v0  ;;  %270 = vst [vmem:[#allocation3 + $0x8] sm:$0xff] (!%p1409_p9), %v1660_v0 }
  0x14   : > { %s1726_s4 = scalar_lea.vmem %s1899_s0, %s1403_s26  ;;  %s1407_s5 = sshll.u32 %s1915_s21, 2 }
  0x15   : > { %s1919_s22 = smov (!%p251_p8, %s1406_s22), 3  ;;  %266 = sbr.rel (%p1409_p9) target bundleno = 28 (0x1c), region = 32 }
  0x16   : > { %s254_s6 = sadd.s32 %s1407_s5, %s1919_s22 }
  0x17   : > { %s1408_s7 = sshll.u32 %s254_s6, 3 }
  0x18   : > { %s1731_s17 = scalar_lea.vmem %s1901_s2, %s1408_s7 }
  0x1c PF: > { %v283_v1 = vld [vmem:[%s1721_s29] sm:$0xff]  ;;  %v284_v3 = vld [vmem:[%s1721_s29 + $0x8] sm:$0xff] }
  0x1d   : > { %v287_v2 = vld [vmem:[%s1721_s29 + $0x20] sm:$0xff]  ;;  %v288_v5 = vld [vmem:[%s1721_s29 + $0x28] sm:$0xff] }
  0x1e   : > { %v1411_v4 = vcombine.high %v283_v1, %v287_v2  ;;  %v1410_v6 = vcombine.low %v283_v1, %v287_v2  ;;  %v291_v7 = vld [vmem:[%s1721_s29 + $0x40] sm:$0xff]  ;;  %v1413_v9 = vcombine.high %v284_v3, %v288_v5  ;;  %v1412_v10 = vcombine.low %v284_v3, %v288_v5  ;;  %v292_v12 = vld [vmem:[%s1721_s29 + $0x48] sm:$0xff] }
  0x1f   : > { %v295_v8 = vld [vmem:[%s1721_s29 + $0x60] sm:$0xff]  ;;  %v296_v13 = vld [vmem:[%s1721_s29 + $0x68] sm:$0xff] }
  0x20   : > { %v1419_v11 = vcombine.high %v291_v7, %v295_v8  ;;  %v299_v14 = vld [vmem:[%s1721_s29 + $0x80] sm:$0xff]  ;;  %1051 = vmatprep.subr.bf16.mxu0 %v1411_v4  ;;  %v1421_v15 = vcombine.high %v292_v12, %v296_v13  ;;  %v300_v17 = vld [vmem:[%s1721_s29 + $0x88] sm:$0xff]  ;;  %1092 = vmatprep.subr.bf16.mxu1 %v1413_v9  ;;  %v1418_v19 = vcombine.low %v291_v7, %v295_v8 }
  0x21   : > { %v303_v16 = vld [vmem:[%s1721_s29 + $0xa0] sm:$0xff]  ;;  %v304_v18 = vld [vmem:[%s1721_s29 + $0xa8] sm:$0xff]  ;;  %1052 = vmatpush1.bf16.msra.mxu0 %v1410_v6  ;;  %1093 = vmatpush1.bf16.msra.mxu1 %v1412_v10  ;;  %v1420_v20 = vcombine.low %v292_v12, %v296_v13 }
  0x22   : > { %1053 = vmatprep.subr.bf16.mxu0 %v1419_v11  ;;  %v1427_v21 = vcombine.high %v299_v14, %v303_v16  ;;  %1094 = vmatprep.subr.bf16.mxu1 %v1421_v15  ;;  %v1429_v22 = vcombine.high %v300_v17, %v304_v18  ;;  %v307_v23 = vld [vmem:[%s1721_s29 + $0xc0] sm:$0xff]  ;;  %v308_v25 = vld [vmem:[%s1721_s29 + $0xc8] sm:$0xff]  ;;  %v1426_v27 = vcombine.low %v299_v14, %v303_v16 }
  0x23   : > { %v311_v24 = vld [vmem:[%s1721_s29 + $0xe0] sm:$0xff]  ;;  %v312_v26 = vld [vmem:[%s1721_s29 + $0xe8] sm:$0xff]  ;;  %v1428_v28 = vcombine.low %v300_v17, %v304_v18 }
  0x24   : > { %v1435_v29 = vcombine.high %v307_v23, %v311_v24  ;;  %v1437_v30 = vcombine.high %v308_v25, %v312_v26  ;;  %v315_v31 = vld [vmem:[%s1721_s29 + $0x100] sm:$0xff]  ;;  %v316_v33 = vld [vmem:[%s1721_s29 + $0x108] sm:$0xff]  ;;  %v1434_v35 = vcombine.low %v307_v23, %v311_v24  ;;  %v1436_v36 = vcombine.low %v308_v25, %v312_v26 }
  0x25   : > { %1054 = vmatpush1.bf16.msra.mxu0 %v1418_v19  ;;  %1095 = vmatpush1.bf16.msra.mxu1 %v1420_v20  ;;  %v319_v32 = vld [vmem:[%s1721_s29 + $0x120] sm:$0xff]  ;;  %v320_v34 = vld [vmem:[%s1721_s29 + $0x128] sm:$0xff] }
  0x26   : > { %1055 = vmatprep.subr.bf16.mxu0 %v1427_v21  ;;  %1096 = vmatprep.subr.bf16.mxu1 %v1429_v22  ;;  %v1443_v37 = vcombine.high %v315_v31, %v319_v32  ;;  %v1445_v38 = vcombine.high %v316_v33, %v320_v34  ;;  %v323_v39 = vld [vmem:[%s1721_s29 + $0x140] sm:$0xff]  ;;  %v324_v41 = vld [vmem:[%s1721_s29 + $0x148] sm:$0xff]  ;;  %v1442_v43 = vcombine.low %v315_v31, %v319_v32 }
  0x27   : > { %v327_v40 = vld [vmem:[%s1721_s29 + $0x160] sm:$0xff]  ;;  %v328_v42 = vld [vmem:[%s1721_s29 + $0x168] sm:$0xff]  ;;  %v1444_v44 = vcombine.low %v316_v33, %v320_v34 }
  0x28   : > { %v1451_v45 = vcombine.high %v323_v39, %v327_v40  ;;  %v1453_v46 = vcombine.high %v324_v41, %v328_v42  ;;  %v331_v47 = vld [vmem:[%s1721_s29 + $0x180] sm:$0xff]  ;;  %v332_v49 = vld [vmem:[%s1721_s29 + $0x188] sm:$0xff]  ;;  %v1450_v51 = vcombine.low %v323_v39, %v327_v40  ;;  %v1452_v52 = vcombine.low %v324_v41, %v328_v42 }
  0x29   : > { %1056 = vmatpush1.bf16.msra.mxu0 %v1426_v27  ;;  %1097 = vmatpush1.bf16.msra.mxu1 %v1428_v28  ;;  %v335_v48 = vld [vmem:[%s1721_s29 + $0x1a0] sm:$0xff]  ;;  %v336_v50 = vld [vmem:[%s1721_s29 + $0x1a8] sm:$0xff] }
  0x2a   : > { %1057 = vmatprep.subr.bf16.mxu0 %v1435_v29  ;;  %1098 = vmatprep.subr.bf16.mxu1 %v1437_v30  ;;  %v1459_v53 = vcombine.high %v331_v47, %v335_v48  ;;  %v280_v54 = vld [vmem:[#allocation2 + $0x8] sm:$0xff]  ;;  %v1461_v55 = vcombine.high %v332_v49, %v336_v50  ;;  %v339_v56 = vld [vmem:[%s1721_s29 + $0x1c0] sm:$0xff]  ;;  %v1458_v61 = vcombine.low %v331_v47, %v335_v48 }
  0x2b   : > { %v343_v57 = vld [vmem:[%s1721_s29 + $0x1e0] sm:$0xff]  ;;  %v1764_v58 = vpack.c.bf16 %v280_v54, %v280_v54  ;;  %v340_v59 = vld [vmem:[%s1721_s29 + $0x1c8] sm:$0xff]  ;;  %v1460_v62 = vcombine.low %v332_v49, %v336_v50 }
  0x2c   : > { %v344_v60 = vld [vmem:[%s1721_s29 + $0x1e8] sm:$0xff]  ;;  %v1467_v63 = vcombine.high %v339_v56, %v343_v57  ;;  %v347_v1 = vld [vmem:[%s1721_s29 + $0x200] sm:$0xff]  ;;  %v1466_v5 = vcombine.low %v339_v56, %v343_v57 }
  0x2d   : > { %1058 = vmatpush1.bf16.msra.mxu0 %v1434_v35  ;;  %1099 = vmatpush1.bf16.msra.mxu1 %v1436_v36  ;;  %v1469_v0 = vcombine.high %v340_v59, %v344_v60  ;;  %v351_v2 = vld [vmem:[%s1721_s29 + $0x220] sm:$0xff]  ;;  %v348_v3 = vld [vmem:[%s1721_s29 + $0x208] sm:$0xff]  ;;  %v1468_v6 = vcombine.low %v340_v59, %v344_v60 }
  0x2e   : > { %1059 = vmatprep.subr.bf16.mxu0 %v1443_v37  ;;  %1100 = vmatprep.subr.bf16.mxu1 %v1445_v38  ;;  %v352_v4 = vld [vmem:[%s1721_s29 + $0x228] sm:$0xff]  ;;  %v1475_v7 = vcombine.high %v347_v1, %v351_v2  ;;  %v355_v9 = vld [vmem:[%s1721_s29 + $0x240] sm:$0xff]  ;;  %v1474_v13 = vcombine.low %v347_v1, %v351_v2  ;;  %v285_v2 = vld [vmem:[%s1721_s29 + $0x10] sm:$0xff] }
  0x2f   : > { %1083 = vmatprep.mubr.bf16.mxu0 %v1764_v58  ;;  %1124 = vmatprep.mubr.bf16.mxu1 %v1764_v58  ;;  %v1477_v8 = vcombine.high %v348_v3, %v352_v4  ;;  %v359_v10 = vld [vmem:[%s1721_s29 + $0x260] sm:$0xff]  ;;  %v356_v11 = vld [vmem:[%s1721_s29 + $0x248] sm:$0xff]  ;;  %v1476_v14 = vcombine.low %v348_v3, %v352_v4  ;;  %v289_v3 = vld [vmem:[%s1721_s29 + $0x30] sm:$0xff] }
  0x30   : > { %v360_v12 = vld [vmem:[%s1721_s29 + $0x268] sm:$0xff]  ;;  %v1483_v15 = vcombine.high %v355_v9, %v359_v10  ;;  %v363_v17 = vld [vmem:[%s1721_s29 + $0x280] sm:$0xff]  ;;  %v1482_v21 = vcombine.low %v355_v9, %v359_v10  ;;  %v286_v4 = vld [vmem:[%s1721_s29 + $0x18] sm:$0xff]  ;;  %v1415_v9 = vcombine.high %v285_v2, %v289_v3 }
  0x31   : > { %1060 = vmatpush1.bf16.msra.mxu0 %v1442_v43  ;;  %1101 = vmatpush1.bf16.msra.mxu1 %v1444_v44  ;;  %v1485_v16 = vcombine.high %v356_v11, %v360_v12  ;;  %v367_v18 = vld [vmem:[%s1721_s29 + $0x2a0] sm:$0xff]  ;;  %v364_v19 = vld [vmem:[%s1721_s29 + $0x288] sm:$0xff]  ;;  %v1484_v22 = vcombine.low %v356_v11, %v360_v12  ;;  %v293_v11 = vld [vmem:[%s1721_s29 + $0x50] sm:$0xff] }
  0x32   : > { %1061 = vmatprep.subr.bf16.mxu0 %v1451_v45  ;;  %1102 = vmatprep.subr.bf16.mxu1 %v1453_v46  ;;  %v368_v20 = vld [vmem:[%s1721_s29 + $0x2a8] sm:$0xff]  ;;  %v1491_v23 = vcombine.high %v363_v17, %v367_v18  ;;  %v371_v25 = vld [vmem:[%s1721_s29 + $0x2c0] sm:$0xff]  ;;  %v1490_v29 = vcombine.low %v363_v17, %v367_v18  ;;  %v297_v12 = vld [vmem:[%s1721_s29 + $0x70] sm:$0xff] }
  0x33   : > { %v1493_v24 = vcombine.high %v364_v19, %v368_v20  ;;  %v375_v26 = vld [vmem:[%s1721_s29 + $0x2e0] sm:$0xff]  ;;  %v372_v27 = vld [vmem:[%s1721_s29 + $0x2c8] sm:$0xff]  ;;  %v1492_v30 = vcombine.low %v364_v19, %v368_v20  ;;  %v1423_v18 = vcombine.high %v293_v11, %v297_v12  ;;  %v301_v20 = vld [vmem:[%s1721_s29 + $0x90] sm:$0xff] }
  0x34   : > { %v376_v28 = vld [vmem:[%s1721_s29 + $0x2e8] sm:$0xff]  ;;  %v1499_v31 = vcombine.high %v371_v25, %v375_v26  ;;  %v379_v33 = vld [vmem:[%s1721_s29 + $0x300] sm:$0xff]  ;;  %v1498_v37 = vcombine.low %v371_v25, %v375_v26 }
  0x35   : > { %1062 = vmatpush1.bf16.msra.mxu0 %v1450_v51  ;;  %1103 = vmatpush1.bf16.msra.mxu1 %v1452_v52  ;;  %v1501_v32 = vcombine.high %v372_v27, %v376_v28  ;;  %v383_v34 = vld [vmem:[%s1721_s29 + $0x320] sm:$0xff]  ;;  %v380_v35 = vld [vmem:[%s1721_s29 + $0x308] sm:$0xff]  ;;  %v1500_v38 = vcombine.low %v372_v27, %v376_v28  ;;  %v309_v28 = vld [vmem:[%s1721_s29 + $0xd0] sm:$0xff] }
  0x36   : > { %1063 = vmatprep.subr.bf16.mxu0 %v1459_v53  ;;  %1104 = vmatprep.subr.bf16.mxu1 %v1461_v55  ;;  %v384_v36 = vld [vmem:[%s1721_s29 + $0x328] sm:$0xff]  ;;  %v1507_v39 = vcombine.high %v379_v33, %v383_v34  ;;  %v387_v41 = vld [vmem:[%s1721_s29 + $0x340] sm:$0xff]  ;;  %v1506_v45 = vcombine.low %v379_v33, %v383_v34 }
  0x37   : > { %v1509_v40 = vcombine.high %v380_v35, %v384_v36  ;;  %v391_v42 = vld [vmem:[%s1721_s29 + $0x360] sm:$0xff]  ;;  %v388_v43 = vld [vmem:[%s1721_s29 + $0x348] sm:$0xff]  ;;  %v1508_v46 = vcombine.low %v380_v35, %v384_v36  ;;  %v317_v36 = vld [vmem:[%s1721_s29 + $0x110] sm:$0xff] }
  0x38   : > { %v392_v44 = vld [vmem:[%s1721_s29 + $0x368] sm:$0xff]  ;;  %v1515_v47 = vcombine.high %v387_v41, %v391_v42  ;;  %v395_v49 = vld [vmem:[%s1721_s29 + $0x380] sm:$0xff]  ;;  %v1514_v53 = vcombine.low %v387_v41, %v391_v42 }
  0x39   : > { %1064 = vmatpush1.bf16.msra.mxu0 %v1458_v61  ;;  %1105 = vmatpush1.bf16.msra.mxu1 %v1460_v62  ;;  %v1517_v48 = vcombine.high %v388_v43, %v392_v44  ;;  %v399_v50 = vld [vmem:[%s1721_s29 + $0x3a0] sm:$0xff]  ;;  %v396_v51 = vld [vmem:[%s1721_s29 + $0x388] sm:$0xff]  ;;  %v1516_v54 = vcombine.low %v388_v43, %v392_v44  ;;  %v325_v43 = vld [vmem:[%s1721_s29 + $0x150] sm:$0xff] }
  0x3a   : > { %1065 = vmatprep.subr.bf16.mxu0 %v1467_v63  ;;  %1106 = vmatprep.subr.bf16.mxu1 %v1469_v0  ;;  %v400_v52 = vld [vmem:[%s1721_s29 + $0x3a8] sm:$0xff]  ;;  %v1523_v55 = vcombine.high %v395_v49, %v399_v50  ;;  %v403_v57 = vld [vmem:[%s1721_s29 + $0x3c0] sm:$0xff]  ;;  %v1522_v62 = vcombine.low %v395_v49, %v399_v50  ;;  %v329_v44 = vld [vmem:[%s1721_s29 + $0x170] sm:$0xff] }
  0x3b   : > { %v1525_v56 = vcombine.high %v396_v51, %v400_v52  ;;  %v407_v59 = vld [vmem:[%s1721_s29 + $0x3e0] sm:$0xff]  ;;  %v404_v60 = vld [vmem:[%s1721_s29 + $0x3c8] sm:$0xff]  ;;  %v1524_v63 = vcombine.low %v396_v51, %v400_v52  ;;  %v1455_v49 = vcombine.high %v325_v43, %v329_v44  ;;  %v333_v51 = vld [vmem:[%s1721_s29 + $0x190] sm:$0xff] }
  0x3c   : > { %v408_v61 = vld [vmem:[%s1721_s29 + $0x3e8] sm:$0xff]  ;;  %v1531_v0 = vcombine.high %v403_v57, %v407_v59  ;;  %v337_v52 = vld [vmem:[%s1721_s29 + $0x1b0] sm:$0xff] }
  0x3d   : > { %1066 = vmatpush1.bf16.msra.mxu0 %v1466_v5  ;;  %1107 = vmatpush1.bf16.msra.mxu1 %v1468_v6  ;;  %v1533_v1 = vcombine.high %v404_v60, %v408_v61  ;;  %v290_v5 = vld [vmem:[%s1721_s29 + $0x38] sm:$0xff]  ;;  %v1530_v6 = vcombine.low %v403_v57, %v407_v59  ;;  %v1463_v57 = vcombine.high %v333_v51, %v337_v52 }
  0x3e   : > { %1067 = vmatprep.subr.bf16.mxu0 %v1475_v7  ;;  %1108 = vmatprep.subr.bf16.mxu1 %v1477_v8  ;;  %v279_v7 = vld [vmem:[#allocation2] sm:$0xff]  ;;  %v1532_v8 = vcombine.low %v404_v60, %v408_v61  ;;  %v1417_v10 = vcombine.high %v286_v4, %v290_v5  ;;  %v1416_v17 = vcombine.low %v286_v4, %v290_v5  ;;  %v341_v60 = vld [vmem:[%s1721_s29 + $0x1d0] sm:$0xff] }
  0x3f   : > { %v345_v61 = vld [vmem:[%s1721_s29 + $0x1f0] sm:$0xff] }
  0x40   : > { %v349_v4 = vld [vmem:[%s1721_s29 + $0x210] sm:$0xff] }
  0x41   : > { %1068 = vmatpush1.bf16.msra.mxu0 %v1474_v13  ;;  %1109 = vmatpush1.bf16.msra.mxu1 %v1476_v14  ;;  %v1808_v13 = vpack.c.bf16 %v279_v7, %v279_v7  ;;  %v294_v14 = vld [vmem:[%s1721_s29 + $0x58] sm:$0xff]  ;;  %v353_v5 = vld [vmem:[%s1721_s29 + $0x230] sm:$0xff] }
  0x42   : > { %1069 = vmatprep.subr.bf16.mxu0 %v1483_v15  ;;  %1110 = vmatprep.subr.bf16.mxu1 %v1485_v16  ;;  %v298_v15 = vld [vmem:[%s1721_s29 + $0x78] sm:$0xff]  ;;  %v1414_v16 = vcombine.low %v285_v2, %v289_v3  ;;  %v1471_v2 = vcombine.high %v341_v60, %v345_v61 }
  0x43   : > { %v1425_v19 = vcombine.high %v294_v14, %v298_v15  ;;  %v1424_v25 = vcombine.low %v294_v14, %v298_v15  ;;  %v354_v7 = vld [vmem:[%s1721_s29 + $0x238] sm:$0xff]  ;;  %v361_v14 = vld [vmem:[%s1721_s29 + $0x270] sm:$0xff] }
  0x44   : > { %v358_v15 = vld [vmem:[%s1721_s29 + $0x258] sm:$0xff] }
  0x45   : > { %1070 = vmatpush1.bf16.msra.mxu0 %v1482_v21  ;;  %1111 = vmatpush1.bf16.msra.mxu1 %v1484_v22  ;;  %v305_v21 = vld [vmem:[%s1721_s29 + $0xb0] sm:$0xff]  ;;  %v302_v22 = vld [vmem:[%s1721_s29 + $0x98] sm:$0xff] }
  0x46   : > { %1071 = vmatprep.subr.bf16.mxu0 %v1491_v23  ;;  %1112 = vmatprep.subr.bf16.mxu1 %v1493_v24  ;;  %v306_v23 = vld [vmem:[%s1721_s29 + $0xb8] sm:$0xff]  ;;  %v1422_v24 = vcombine.low %v293_v11, %v297_v12  ;;  %v1431_v26 = vcombine.high %v301_v20, %v305_v21  ;;  %v357_v12 = vld [vmem:[%s1721_s29 + $0x250] sm:$0xff] }
  0x47   : > { %v1433_v27 = vcombine.high %v302_v22, %v306_v23  ;;  %v1432_v33 = vcombine.low %v302_v22, %v306_v23  ;;  %v369_v22 = vld [vmem:[%s1721_s29 + $0x2b0] sm:$0xff]  ;;  %v366_v23 = vld [vmem:[%s1721_s29 + $0x298] sm:$0xff] }
  0x49   : > { %1072 = vmatpush1.bf16.msra.mxu0 %v1490_v29  ;;  %1113 = vmatpush1.bf16.msra.mxu1 %v1492_v30  ;;  %v313_v29 = vld [vmem:[%s1721_s29 + $0xf0] sm:$0xff]  ;;  %v310_v30 = vld [vmem:[%s1721_s29 + $0xd8] sm:$0xff] }
  0x4a   : > { %1073 = vmatprep.subr.bf16.mxu0 %v1499_v31  ;;  %1114 = vmatprep.subr.bf16.mxu1 %v1501_v32  ;;  %v314_v31 = vld [vmem:[%s1721_s29 + $0xf8] sm:$0xff]  ;;  %v1430_v32 = vcombine.low %v301_v20, %v305_v21  ;;  %v1439_v34 = vcombine.high %v309_v28, %v313_v29  ;;  %v365_v21 = vld [vmem:[%s1721_s29 + $0x290] sm:$0xff] }
  0x4b   : > { %v1441_v35 = vcombine.high %v310_v30, %v314_v31 }
  0x4d   : > { %1074 = vmatpush1.bf16.msra.mxu0 %v1498_v37  ;;  %1115 = vmatpush1.bf16.msra.mxu1 %v1500_v38  ;;  %v321_v37 = vld [vmem:[%s1721_s29 + $0x130] sm:$0xff]  ;;  %v318_v38 = vld [vmem:[%s1721_s29 + $0x118] sm:$0xff] }
  0x4e   : > { %1075 = vmatprep.subr.bf16.mxu0 %v1507_v39  ;;  %1116 = vmatprep.subr.bf16.mxu1 %v1509_v40  ;;  %v322_v39 = vld [vmem:[%s1721_s29 + $0x138] sm:$0xff]  ;;  %v1438_v40 = vcombine.low %v309_v28, %v313_v29  ;;  %v1447_v41 = vcombine.high %v317_v36, %v321_v37  ;;  %v373_v29 = vld [vmem:[%s1721_s29 + $0x2d0] sm:$0xff] }
  0x4f   : > { %v1449_v42 = vcombine.high %v318_v38, %v322_v39 }
  0x51   : > { %1076 = vmatpush1.bf16.msra.mxu0 %v1506_v45  ;;  %1117 = vmatpush1.bf16.msra.mxu1 %v1508_v46  ;;  %v326_v45 = vld [vmem:[%s1721_s29 + $0x158] sm:$0xff] }
  0x52   : > { %1077 = vmatprep.subr.bf16.mxu0 %v1515_v47  ;;  %1118 = vmatprep.subr.bf16.mxu1 %v1517_v48  ;;  %v330_v46 = vld [vmem:[%s1721_s29 + $0x178] sm:$0xff]  ;;  %v1446_v47 = vcombine.low %v317_v36, %v321_v37  ;;  %v1448_v48 = vcombine.low %v318_v38, %v322_v39  ;;  %v381_v37 = vld [vmem:[%s1721_s29 + $0x310] sm:$0xff] }
  0x53   : > { %v1457_v50 = vcombine.high %v326_v45, %v330_v46  ;;  %v385_v38 = vld [vmem:[%s1721_s29 + $0x330] sm:$0xff]  ;;  %v382_v39 = vld [vmem:[%s1721_s29 + $0x318] sm:$0xff] }
  0x55   : > { %1078 = vmatpush1.bf16.msra.mxu0 %v1514_v53  ;;  %1119 = vmatpush1.bf16.msra.mxu1 %v1516_v54  ;;  %v334_v53 = vld [vmem:[%s1721_s29 + $0x198] sm:$0xff] }
  0x56   : > { %1079 = vmatprep.subr.bf16.mxu0 %v1523_v55  ;;  %1120 = vmatprep.subr.bf16.mxu1 %v1525_v56  ;;  %v338_v54 = vld [vmem:[%s1721_s29 + $0x1b8] sm:$0xff]  ;;  %v1454_v55 = vcombine.low %v325_v43, %v329_v44  ;;  %v1456_v56 = vcombine.low %v326_v45, %v330_v46  ;;  %v389_v44 = vld [vmem:[%s1721_s29 + $0x350] sm:$0xff] }
  0x57   : > { %v1465_v59 = vcombine.high %v334_v53, %v338_v54  ;;  %v393_v45 = vld [vmem:[%s1721_s29 + $0x370] sm:$0xff]  ;;  %v390_v46 = vld [vmem:[%s1721_s29 + $0x358] sm:$0xff] }
  0x59   : > { %1080 = vmatpush1.bf16.msra.mxu0 %v1522_v62  ;;  %1121 = vmatpush1.bf16.msra.mxu1 %v1524_v63  ;;  %v342_v62 = vld [vmem:[%s1721_s29 + $0x1d8] sm:$0xff] }
  0x5a   : > { %1081 = vmatprep.subr.bf16.mxu0 %v1531_v0  ;;  %1122 = vmatprep.subr.bf16.mxu1 %v1533_v1  ;;  %v346_v63 = vld [vmem:[%s1721_s29 + $0x1f8] sm:$0xff]  ;;  %v1462_v0 = vcombine.low %v333_v51, %v337_v52  ;;  %v1464_v1 = vcombine.low %v334_v53, %v338_v54  ;;  %v397_v52 = vld [vmem:[%s1721_s29 + $0x390] sm:$0xff] }
  0x5b   : > { %v1473_v3 = vcombine.high %v342_v62, %v346_v63  ;;  %v401_v53 = vld [vmem:[%s1721_s29 + $0x3b0] sm:$0xff]  ;;  %v398_v54 = vld [vmem:[%s1721_s29 + $0x398] sm:$0xff] }
  0x5d   : > { %1082 = vmatpush1.bf16.msra.mxu0 %v1530_v6  ;;  %1123 = vmatpush1.bf16.msra.mxu1 %v1532_v8  ;;  %v350_v6 = vld [vmem:[%s1721_s29 + $0x218] sm:$0xff]  ;;  %v1470_v8 = vcombine.low %v341_v60, %v345_v61  ;;  %v405_v61 = vld [vmem:[%s1721_s29 + $0x3d0] sm:$0xff] }
  0x5e   : > { %1133 = vmatprep.subr.bf16.mxu0 %v1415_v9  ;;  %1174 = vmatprep.subr.bf16.mxu1 %v1417_v10  ;;  %v1472_v9 = vcombine.low %v342_v62, %v346_v63  ;;  %v1479_v10 = vcombine.high %v349_v4, %v353_v5  ;;  %v1481_v11 = vcombine.high %v350_v6, %v354_v7  ;;  %v409_v62 = vld [vmem:[%s1721_s29 + $0x3f0] sm:$0xff]  ;;  %v406_v63 = vld [vmem:[%s1721_s29 + $0x3d8] sm:$0xff] }
  0x60   : > { %1084 = vmatmul.mubr.bf16.vlgmr.msra.gmra.mrb[0].mxu0 %v1808_v13  ;;  %1125 = vmatmul.mubr.bf16.vlgmr.msra.gmra.mrb[0].mxu1 %v1808_v13 }
  0x61   : > { %1134 = vmatpush1.bf16.msra.mxu0 %v1414_v16  ;;  %1175 = vmatpush1.bf16.msra.mxu1 %v1416_v17  ;;  %v362_v16 = vld [vmem:[%s1721_s29 + $0x278] sm:$0xff]  ;;  %v1478_v17 = vcombine.low %v349_v4, %v353_v5  ;;  %v1534_v5 = vcombine.low %v405_v61, %v409_v62 }
  0x62   : > { %1135 = vmatprep.subr.bf16.mxu0 %v1423_v18  ;;  %1176 = vmatprep.subr.bf16.mxu1 %v1425_v19  ;;  %v1480_v18 = vcombine.low %v350_v6, %v354_v7  ;;  %v1487_v19 = vcombine.high %v357_v12, %v361_v14  ;;  %v1489_v20 = vcombine.high %v358_v15, %v362_v16 }
  0x63   : > { %1165 = vmatprep.mubr.bf16.mxu0 %v1764_v58  ;;  %1206 = vmatprep.mubr.bf16.mxu1 %v1764_v58  ;;  %v1440_v58 = vcombine.low %v310_v30, %v314_v31  ;;  %v377_v30 = vld [vmem:[%s1721_s29 + $0x2f0] sm:$0xff]  ;;  %v374_v31 = vld [vmem:[%s1721_s29 + $0x2d8] sm:$0xff] }
  0x65   : > { %1136 = vmatpush1.bf16.msra.mxu0 %v1422_v24  ;;  %1177 = vmatpush1.bf16.msra.mxu1 %v1424_v25  ;;  %v370_v24 = vld [vmem:[%s1721_s29 + $0x2b8] sm:$0xff]  ;;  %v1486_v25 = vcombine.low %v357_v12, %v361_v14 }
  0x66   : > { %1137 = vmatprep.subr.bf16.mxu0 %v1431_v26  ;;  %1178 = vmatprep.subr.bf16.mxu1 %v1433_v27  ;;  %v1488_v26 = vcombine.low %v358_v15, %v362_v16  ;;  %v1495_v27 = vcombine.high %v365_v21, %v369_v22  ;;  %v1497_v28 = vcombine.high %v366_v23, %v370_v24  ;;  %v271_v16 = vld [vmem:[%s1726_s4] sm:$0xff] }
  0x69   : > { %1138 = vmatpush1.bf16.msra.mxu0 %v1430_v32  ;;  %1179 = vmatpush1.bf16.msra.mxu1 %v1432_v33  ;;  %v378_v32 = vld [vmem:[%s1721_s29 + $0x2f8] sm:$0xff]  ;;  %v1494_v33 = vcombine.low %v365_v21, %v369_v22 }
  0x6a   : > { %1139 = vmatprep.subr.bf16.mxu0 %v1439_v34  ;;  %1180 = vmatprep.subr.bf16.mxu1 %v1441_v35  ;;  %v1496_v34 = vcombine.low %v366_v23, %v370_v24  ;;  %v1503_v35 = vcombine.high %v373_v29, %v377_v30  ;;  %v1505_v36 = vcombine.high %v374_v31, %v378_v32 }
  0x6d   : > { %1140 = vmatpush1.bf16.msra.mxu0 %v1438_v40  ;;  %1181 = vmatpush1.bf16.msra.mxu1 %v1440_v58  ;;  %v386_v40 = vld [vmem:[%s1721_s29 + $0x338] sm:$0xff]  ;;  %v1502_v58 = vcombine.low %v373_v29, %v377_v30 }
  0x6e   : > { %1141 = vmatprep.subr.bf16.mxu0 %v1447_v41  ;;  %1182 = vmatprep.subr.bf16.mxu1 %v1449_v42  ;;  %v1504_v41 = vcombine.low %v374_v31, %v378_v32  ;;  %v1511_v42 = vcombine.high %v381_v37, %v385_v38  ;;  %v1513_v43 = vcombine.high %v382_v39, %v386_v40 }
  0x71   : > { %1142 = vmatpush1.bf16.msra.mxu0 %v1446_v47  ;;  %1183 = vmatpush1.bf16.msra.mxu1 %v1448_v48  ;;  %v394_v47 = vld [vmem:[%s1721_s29 + $0x378] sm:$0xff]  ;;  %v1510_v48 = vcombine.low %v381_v37, %v385_v38  ;;  %v276_v37 = vld [vmem:[%s1726_s4 + $0x28] sm:$0xff] }
  0x72   : > { %1143 = vmatprep.subr.bf16.mxu0 %v1455_v49  ;;  %1184 = vmatprep.subr.bf16.mxu1 %v1457_v50  ;;  %v1512_v49 = vcombine.low %v382_v39, %v386_v40  ;;  %v1519_v50 = vcombine.high %v389_v44, %v393_v45  ;;  %v1521_v51 = vcombine.high %v390_v46, %v394_v47  ;;  %v278_v39 = vld [vmem:[%s1726_s4 + $0x38] sm:$0xff] }
  0x75   : > { %1144 = vmatpush1.bf16.msra.mxu0 %v1454_v55  ;;  %1185 = vmatpush1.bf16.msra.mxu1 %v1456_v56  ;;  %v402_v55 = vld [vmem:[%s1721_s29 + $0x3b8] sm:$0xff]  ;;  %v1518_v56 = vcombine.low %v389_v44, %v393_v45 }
  0x76   : > { %1145 = vmatprep.subr.bf16.mxu0 %v1463_v57  ;;  %1186 = vmatprep.subr.bf16.mxu1 %v1465_v59  ;;  %v1520_v57 = vcombine.low %v390_v46, %v394_v47  ;;  %v1527_v59 = vcombine.high %v397_v52, %v401_v53  ;;  %v1529_v60 = vcombine.high %v398_v54, %v402_v55 }
  0x79   : > { %1146 = vmatpush1.bf16.msra.mxu0 %v1462_v0  ;;  %1187 = vmatpush1.bf16.msra.mxu1 %v1464_v1  ;;  %v410_v0 = vld [vmem:[%s1721_s29 + $0x3f8] sm:$0xff]  ;;  %v1526_v1 = vcombine.low %v397_v52, %v401_v53 }
  0x7a   : > { %1147 = vmatprep.subr.bf16.mxu0 %v1471_v2  ;;  %1188 = vmatprep.subr.bf16.mxu1 %v1473_v3  ;;  %v1528_v2 = vcombine.low %v398_v54, %v402_v55  ;;  %v1535_v3 = vcombine.high %v405_v61, %v409_v62  ;;  %v1537_v4 = vcombine.high %v406_v63, %v410_v0  ;;  %v1261_v55 = vld [vmem:[#allocation3] sm:$0xff] }
  0x7b   : > { %v1536_v6 = vcombine.low %v406_v63, %v410_v0 }
  0x7d   : > { %1148 = vmatpush1.bf16.msra.mxu0 %v1470_v8  ;;  %1189 = vmatpush1.bf16.msra.mxu1 %v1472_v9 }
  0x7e   : > { %1149 = vmatprep.subr.bf16.mxu0 %v1479_v10  ;;  %1190 = vmatprep.subr.bf16.mxu1 %v1481_v11 }
  0x81   : > { %1150 = vmatpush1.bf16.msra.mxu0 %v1478_v17  ;;  %1191 = vmatpush1.bf16.msra.mxu1 %v1480_v18  ;;  %v273_v17 = vld [vmem:[%s1726_s4 + $0x10] sm:$0xff]  ;;  %v272_v18 = vld [vmem:[%s1726_s4 + $0x8] sm:$0xff] }
  0x82   : > { %1151 = vmatprep.subr.bf16.mxu0 %v1487_v19  ;;  %1192 = vmatprep.subr.bf16.mxu1 %v1489_v20  ;;  %v274_v20 = vld [vmem:[%s1726_s4 + $0x18] sm:$0xff] }
  0x85   : > { %1152 = vmatpush1.bf16.msra.mxu0 %v1486_v25  ;;  %1193 = vmatpush1.bf16.msra.mxu1 %v1488_v26 }
  0x86   : > { %1153 = vmatprep.subr.bf16.mxu0 %v1495_v27  ;;  %1194 = vmatprep.subr.bf16.mxu1 %v1497_v28 }
  0x89   : > { %1154 = vmatpush1.bf16.msra.mxu0 %v1494_v33  ;;  %1195 = vmatpush1.bf16.msra.mxu1 %v1496_v34 }
  0x8a   : > { %1155 = vmatprep.subr.bf16.mxu0 %v1503_v35  ;;  %1196 = vmatprep.subr.bf16.mxu1 %v1505_v36  ;;  %v275_v35 = vld [vmem:[%s1726_s4 + $0x20] sm:$0xff]  ;;  %v277_v36 = vld [vmem:[%s1726_s4 + $0x30] sm:$0xff] }
  0x8d   : > { %1156 = vmatpush1.bf16.msra.mxu0 %v1502_v58  ;;  %1197 = vmatpush1.bf16.msra.mxu1 %v1504_v41 }
  0x8e   : > { %1157 = vmatprep.subr.bf16.mxu0 %v1511_v42  ;;  %1198 = vmatprep.subr.bf16.mxu1 %v1513_v43 }
  0x91   : > { %1158 = vmatpush1.bf16.msra.mxu0 %v1510_v48  ;;  %1199 = vmatpush1.bf16.msra.mxu1 %v1512_v49 }
  0x92   : > { %1159 = vmatprep.subr.bf16.mxu0 %v1519_v50  ;;  %1200 = vmatprep.subr.bf16.mxu1 %v1521_v51 }
  0x95   : > { %1160 = vmatpush1.bf16.msra.mxu0 %v1518_v56  ;;  %1201 = vmatpush1.bf16.msra.mxu1 %v1520_v57  ;;  %v1262_v57 = vld [vmem:[#allocation3 + $0x8] sm:$0xff] }
  0x96   : > { %1161 = vmatprep.subr.bf16.mxu0 %v1527_v59  ;;  %1202 = vmatprep.subr.bf16.mxu1 %v1529_v60 }
  0x99   : > { %1162 = vmatpush1.bf16.msra.mxu0 %v1526_v1  ;;  %1203 = vmatpush1.bf16.msra.mxu1 %v1528_v2 }
  0x9a   : > { %1163 = vmatprep.subr.bf16.mxu0 %v1535_v3  ;;  %1204 = vmatprep.subr.bf16.mxu1 %v1537_v4 }
  0x9d   : > { %1164 = vmatpush1.bf16.msra.mxu0 %v1534_v5  ;;  %1205 = vmatpush1.bf16.msra.mxu1 %v1536_v6 }
  0xa0   : > { %1166 = vmatmul.mubr.bf16.vlgmr.msra.gmra.mrb[4].mxu0 %v1808_v13  ;;  %1207 = vmatmul.mubr.bf16.vlgmr.msra.gmra.mrb[4].mxu1 %v1808_v13 }
 0x133   : > { %v1085_v7 = vpop.f32.mrb[0].mxu0  ;;  %v1126_v8 = vpop.f32.mrb[0].mxu1 }
 0x134   : > { %v1087_v9 = vpop.f32.mrb[1].mxu0  ;;  %v1128_v10 = vpop.f32.mrb[1].mxu1  ;;  %v1215_v19 = vadd.f32 %v1085_v7, %v271_v16  ;;  %v1217_v21 = vadd.f32 %v1126_v8, %v273_v17 }
 0x135   : > { %v1089_v11 = vpop.f32.mrb[2].mxu0  ;;  %v1130_v12 = vpop.f32.mrb[2].mxu1  ;;  %v1216_v22 = vadd.f32 %v1087_v9, %v272_v18  ;;  %v1218_v23 = vadd.f32 %v1128_v10, %v274_v20 }
 0x136   : > { %v1090_v14 = vpop.f32.mrb[3].mxu0  ;;  %v1131_v15 = vpop.f32.mrb[3].mxu1  ;;  %v1538_v24 = vmul.f32 -1.442695, %v1215_v19  ;;  %v1540_v25 = vmul.f32 -1.442695, %v1217_v21 }
 0x137   : > { %v1539_v13 = vmul.f32 -1.442695, %v1216_v22  ;;  %v1541_v26 = vmul.f32 -1.442695, %v1218_v23 }
 0x138   : > { %1588 = vpow2.f32 %v1538_v24 }
 0x139   : > { %1590 = vpow2.f32 %v1540_v25 }
 0x13a   : > { %1592 = vpow2.f32 %v1539_v13 }
 0x13b   : > { %1594 = vpow2.f32 %v1541_v26 }
 0x142   : > { %v1589_v27 = vpop.eup %1588 }
 0x143   : > { %v1591_v28 = vpop.eup %1590  ;;  %v1229_v31 = vadd.f32 1.0, %v1589_v27 }
 0x144   : > { %v1593_v29 = vpop.eup %1592  ;;  %v1241_v32 = vadd.f32 1.0, %v1591_v28 }
 0x145   : > { %v1595_v30 = vpop.eup %1594  ;;  %v1230_v33 = vadd.f32 1.0, %v1593_v29  ;;  %1596 = vrcp.f32 %v1229_v31 }
 0x146   : > { %v1242_v34 = vadd.f32 1.0, %v1595_v30  ;;  %1598 = vrcp.f32 %v1241_v32 }
 0x147   : > { %1600 = vrcp.f32 %v1230_v33 }
 0x148   : > { %1602 = vrcp.f32 %v1242_v34 }
 0x14f   : > { %v1597_v52 = vpop.eup %1596 }
 0x150   : > { %v1599_v53 = vpop.eup %1598 }
 0x151   : > { %v1601_v54 = vpop.eup %1600  ;;  %v1263_v61 = vmul.f32 %v1599_v53, %v1261_v55 }
 0x152   : > { %v1603_v56 = vpop.eup %1602 }
 0x153   : > { %v1264_v63 = vmul.f32 %v1603_v56, %v1262_v57 }
 0x173   : > { %v1167_v38 = vpop.f32.mrb[4].mxu0  ;;  %v1208_v58 = vpop.f32.mrb[4].mxu1 }
 0x174   : > { %v1219_v40 = vadd.f32 %v1167_v38, %v275_v35  ;;  %v1169_v41 = vpop.f32.mrb[5].mxu0  ;;  %v1221_v42 = vadd.f32 %v1208_v58, %v277_v36  ;;  %v1210_v44 = vpop.f32.mrb[5].mxu1 }
 0x175   : > { %v1220_v43 = vadd.f32 %v1169_v41, %v276_v37  ;;  %v1171_v45 = vpop.f32.mrb[6].mxu0  ;;  %v1222_v46 = vadd.f32 %v1210_v44, %v278_v39  ;;  %v1212_v47 = vpop.f32.mrb[6].mxu1 }
 0x176   : > { %1604 = vtanh.f32 %v1219_v40  ;;  %v1172_v48 = vpop.f32.mrb[7].mxu0  ;;  %v1542_v49 = vmul.f32 -1.442695, %v1221_v42  ;;  %v1213_v50 = vpop.f32.mrb[7].mxu1 }
 0x177   : > { %1606 = vtanh.f32 %v1220_v43  ;;  %v1543_v51 = vmul.f32 -1.442695, %v1222_v46 }
 0x178   : > { %1608 = vpow2.f32 %v1542_v49 }
 0x179   : > { %1610 = vpow2.f32 %v1543_v51 }
 0x180   : > { %v1605_v59 = vpop.eup %1604 }
 0x181   : > { %v1607_v60 = vpop.eup %1606  ;;  %v1265_v62 = vmul.f32 %v1605_v59, %v1597_v52 }
 0x182   : > { %v1266_v0 = vmul.f32 %v1607_v60, %v1601_v54  ;;  %v1609_v1 = vpop.eup %1608 }
 0x183   : > { %v1267_v2 = vadd.f32 %v1265_v62, %v1263_v61  ;;  %v1611_v3 = vpop.eup %1610  ;;  %v1255_v4 = vadd.f32 1.0, %v1609_v1 }
 0x184   : > { %v1268_v5 = vadd.f32 %v1266_v0, %v1264_v63  ;;  %v1256_v6 = vadd.f32 1.0, %v1611_v3 }
 0x185   : > { %1612 = vtanh.f32 %v1267_v2  ;;  %1273 = vst [vmem:[#allocation3] sm:$0xff] %v1267_v2 }
 0x186   : > { %1614 = vrcp.f32 %v1255_v4  ;;  %1274 = vst [vmem:[#allocation3 + $0x8] sm:$0xff] %v1268_v5 }
 0x187   : > { %1616 = vtanh.f32 %v1268_v5 }
 0x188   : > { %1618 = vrcp.f32 %v1256_v6 }
 0x18f   : > { %v1613_v7 = vpop.eup %1612 }
 0x190   : > { %v1615_v8 = vpop.eup %1614 }
 0x191   : > { %v1617_v9 = vpop.eup %1616  ;;  %v1271_v10 = vmul.f32 %v1615_v8, %v1613_v7 }
 0x192   : > { %v1619_v11 = vpop.eup %1618 }
 0x193   : > { %1275 = vst [vmem:[#allocation2] sm:$0xff] %v1271_v10  ;;  %1277 = vst [vmem:[%s1731_s17] sm:$0xff] %v1271_v10  ;;  %v1272_v12 = vmul.f32 %v1619_v11, %v1617_v9 }
 0x195   : > { %1276 = vst [vmem:[#allocation2 + $0x8] sm:$0xff] %v1272_v12  ;;  %1278 = vst [vmem:[%s1731_s17 + $0x8] sm:$0xff] %v1272_v12 }
 0x196 PF: > { %s12_s13 = sadd.s32 1, %s1658_s13   ;;  %s1902_s9 = smov %s1650_s11 }
 0x197   : > { %p9_p10 = scmp.ge.s32.totalorder %s12_s13, 34   ;;  %s1903_s10 = smov %s1654_s12 }
 0x198   : > { %s1904_s11 = smov %s1907_s14  ;;  %s1905_s12 = smov %s1911_s15 }
 0x199   :  { %11 = sbr.rel (!%p9_p10) target bundleno = 3 (0x3), region = 65 }

// kernel: vae_forward.7
= control target key start
LH: loop header
LB: loop body
LE: loop exit
PB: predicated region body
PF: predicated region fallthrough
CT: control target
= control target key end

     0   :  { %8 = vsyncpa [#allocation4], 0  ;;  %s1614_s0 = inlined_call_operand.vmem [shape: f32[128,128], index: 0, kind: input, shape index: {}]   ;;  %s1615_s1 = inlined_call_operand.hbm [shape: bf16[128,2048], index: 1, kind: input, shape index: {}]   ;;  %s1616_s2 = inlined_call_operand.hbm [shape: f32[1,2048], index: 2, kind: input, shape index: {}]   ;;  %s1617_s3 = inlined_call_operand.vmem [shape: f32[128,2048], index: 3, kind: output, shape index: {}]  }
   0x1   :  { %10 = vsyncpa [#allocation4 + $0x1], 0 }
   0x2   :  { %11 = vsyncpa [#allocation6], 0 }
   0x3   :  { %13 = vsyncpa [#allocation6 + $0x1], 0  ;;  %s1223_s12 = smov 0   ;;  %s1225_s13 = smov 0  }
   0x4   :  { %s1227_s14 = smov 0   ;;  %s1229_s15 = smov 0  }
   0x5   :  { %s1231_s16 = smov 0   ;;  %s1233_s17 = smov 0  }
   0x6 LB: > { %s938_s18 = sadd.s32 4294967295, %s1195_s17   ;;  %s31_s19 = sadd.s32 1, %s1191_s16  ;;  %s1195_s17 = sphi %s1233_s17, %s19_s17   ;;  %s1191_s16 = sphi %s1231_s16, %s1632_s16   ;;  %s1187_s15 = sphi %s1229_s15, %s1631_s15   ;;  %s1183_s14 = sphi %s1227_s14, %s1630_s14   ;;  %s1179_s13 = sphi %s1225_s13, %s1629_s13   ;;  %s1175_s12 = sphi %s1223_s12, %s1628_s12  }
   0x7   : > { %p33_p0 = scmp.ge.s32.totalorder %s31_s19, 8  ;;  %s66_s20 = sadd.s32 1, %s1183_s14 }
   0x8   : > { %p73_p1 = scmp.ne.s32.totalorder %s1183_s14, %s1179_s13  ;;  %p74_p2 = scmp.eq.s32.totalorder %s1195_s17, 0 }
   0x9   : > { %s1634_s19 = smov (%p33_p0, %s31_s19), 0  ;;  %p79_p4 = scmp.ne.s32.totalorder %s1179_s13, %s1175_s12 }
   0xa   : > { %p1259_p3 = por %p74_p2, %p73_p1  ;;  %s62_s22 = ssub.s32 %s1191_s16, %s1634_s19 }
   0xb   : > { %p80_p5 = scmp.eq.s32.totalorder %s938_s18, 0  ;;  %p64_p6 = scmp.eq.s32.totalorder %s62_s22, 0 }
   0xc   : > { %p129_p7 = scmp.eq.s32.totalorder %s938_s18, 7  ;;  %p1004_p10 = scmp.lt.s32.totalorder %s1195_s17, 8 }
   0xd   : > { %p1266_p8 = por %p80_p5, %p79_p4  ;;  %s1279_s26 = sand.u32 1, %s1183_s14  }
   0xe   : > { %s1271_s24 = scalar_select %p64_p6, %s1183_s14, %s66_s20  }
   0xf   : > { %s1620_s23 = scalar_select %p1266_p8, 1, 0 }
  0x10   : > { %p1273_p9 = por %p129_p7, %p73_p1  ;;  %s974_s27 = sshll.u32 %s1191_s16, 7 }
  0x11   : > { %s943_s28 = sshll.u32 %s1279_s26, 7  ;;  %s1286_s4 = scalar_lea.hbm %s1615_s1, %s974_s27 }
  0x12   : > { %s1621_s25 = scalar_select %p1273_p9, 1, 0 }
  0x13   : > { %s166_s5 = scalar_lea.vmem [#allocation3], %s943_s28  ;;  %p1290_p11 = pnand %p1004_p10, %p1259_p3 }
  0x14   : > { %s176_s6 = sshll.u32 %s166_s5, 4  ;;  %s163_s8 = scalar_lea.sflag [#allocation4], %s1279_s26  ;;  %s1294_s6 = int_to_ptr.vmem [resolvable:$true] %s176_s6 }
  0x15   : > { %s1081_s9 = scalar_lea.hbm %s1286_s4, 2048  ;;  %p1083_p0 = pneg %p1290_p11 }
  0x16   : > { %p1082_p13 = scmp.ne.s32.totalorder %s1286_s4, %s1081_s9  ;;  %s1086_s12 = scalar_lea.hbm %s1615_s1, 16384 }
  0x17   : > { %p1087_p3 = scmp.lt.u32.totalorder %s1286_s4, %s1615_s1  ;;  %p1088_p4 = scmp.lt.u32.totalorder %s1086_s12, %s1081_s9 }
  0x18   : > { %p1084_p1 = pnand %p1083_p0, %p1082_p13  ;;  %p1090_p6 = scmp.lt.u32.totalorder %s1081_s9, %s1286_s4 }
  0x19   : > { %p1089_p5 = por %p1088_p4, %p1087_p3 }
  0x1a   : > { %p1085_p2 = pneg %p1084_p1 }
  0x1b   : > { %p1091_p7 = por %p1090_p6, %p1089_p5 }
  0x1d   : > { %p1092_p10 = pnand %p1091_p7, %p1085_p2 }
  0x1f   : > { %1095 = shalt.err (!%p1092_p10)
}
  0x20   : > { %s1096_s21 = scalar_lea.vmem %s1294_s6, 2048  ;;  %s1197_s22 = smov [#allocation3]  }
  0x21   : > { %p1097_p13 = scmp.ne.s32.totalorder %s1294_s6, %s1096_s21  ;;  %s1101_s27 = sshll.u32 %s1197_s22, 4  ;;  %s1102_s27 = int_to_ptr.vmem [resolvable:$false] %s1101_s27 }
  0x22   : > { %s1103_s28 = scalar_lea.vmem %s1102_s27, 4096  ;;  %p1104_p9 = scmp.lt.s32.totalorder %s1294_s6, %s1102_s27 }
  0x23   : > { %p1099_p1 = pnand %p1097_p13, %p1083_p0  ;;  %p1105_p3 = scmp.lt.s32.totalorder %s1103_s28, %s1096_s21 }
  0x25   : > { %p1100_p12 = pneg %p1099_p1  ;;  %p1106_p4 = por %p1105_p3, %p1104_p9 }
  0x27   : > { %p1107_p5 = pnand %p1106_p4, %p1100_p12 }
  0x29   : > { %1110 = shalt.err (!%p1107_p5)
}
  0x2a   : > { %s1198_s29 = smov 1024   ;;  %s1199_s30 = smov 128  }
  0x2b   : > { %s1200_s5 = smov 8   ;;  %p203_p2 = scmp.lt.s32.totalorder %s1195_s17, 9 }
  0x2c   : > { %1000 = dma.hbm_to_vmem [thread:$0]  (!%p1290_p11), %s1286_s4, 2048, %s1294_s6, %s163_s8, %s1198_s29, %s1199_s30, %s1200_s5  }
  0x2d   : > { %s946_s9 = sshll.u32 %s1279_s26, 1  ;;  %s975_s10 = sshll.u32 %s1191_s16, 5 }
  0x2e   : > { %p1623_p9 = scmp.ge.s32.totalorder %s1195_s17, 1  ;;  %s1337_s20 = scalar_lea.hbm %s1616_s2, %s975_s10 }
  0x2f   : > { %s190_s21 = scalar_lea.vmem [#allocation5], %s946_s9  ;;  %s187_s4 = scalar_lea.sflag [#allocation6], %s1279_s26 }
  0x30   : > { %p1330_p12 = pnand %p1623_p9, %p203_p2  ;;  %s198_s22 = sshll.u32 %s190_s21, 4  ;;  %s199_s22 = int_to_ptr.vmem [resolvable:$true] %s198_s22 }
  0x31   : > { %s1111_s6 = scalar_lea.hbm %s1337_s20, 32  ;;  %s1116_s28 = scalar_lea.hbm %s1616_s2, 256 }
  0x32   : > { %s1624_s11 = scalar_select %p1330_p12, 1, 0 }
  0x33   : > { %p1112_p6 = scmp.ne.s32.totalorder %s1337_s20, %s1111_s6  ;;  %p1117_p13 = scmp.lt.u32.totalorder %s1337_s20, %s1616_s2 }
  0x34   : > { %p1118_p1 = scmp.lt.u32.totalorder %s1116_s28, %s1111_s6  ;;  %p1120_p4 = scmp.lt.u32.totalorder %s1111_s6, %s1337_s20 }
  0x35   : > { %p1114_p7 = pnand %p1112_p6, %p1083_p0 }
  0x36   : > { %p1119_p3 = por %p1118_p1, %p1117_p13 }
  0x37   : > { %p1115_p10 = pneg %p1114_p7 }
  0x38   : > { %p1121_p5 = por %p1120_p4, %p1119_p3 }
  0x3a   : > { %p1122_p2 = pnand %p1121_p5, %p1115_p10 }
  0x3c   : > { %1125 = shalt.err (!%p1122_p2)
}
  0x3d   : > { %s1126_s26 = scalar_lea.vmem %s199_s22, 32  ;;  %s1201_s5 = smov [#allocation5]  }
  0x3e   : > { %p1127_p9 = scmp.ne.s32.totalorder %s199_s22, %s1126_s26  ;;  %s1131_s9 = sshll.u32 %s1201_s5, 4  ;;  %s1132_s9 = int_to_ptr.vmem [resolvable:$false] %s1131_s9 }
  0x3f   : > { %s1133_s10 = scalar_lea.vmem %s1132_s9, 64  ;;  %p1134_p8 = scmp.lt.s32.totalorder %s199_s22, %s1132_s9 }
  0x40   : > { %p1129_p6 = pnand %p1127_p9, %p1083_p0  ;;  %p1135_p12 = scmp.lt.s32.totalorder %s1133_s10, %s1126_s26 }
  0x42   : > { %p1130_p7 = pneg %p1129_p6  ;;  %p1136_p1 = por %p1135_p12, %p1134_p8 }
  0x44   : > { %p1137_p13 = pnand %p1136_p1, %p1130_p7 }
  0x46   : > { %1140 = shalt.err (!%p1137_p13)
}
  0x47   : > { %1003 = dma.hbm_to_vmem [thread:$0]  (!%p1290_p11), %s1337_s20, 32, %s199_s22, %s187_s4  }
  0x48   : > { %p1625_p10 = scmp.ne.s32.totalorder %s1624_s11, 0 }
  0x49   : > { %s1362_s12 = sand.u32 (!%p1625_p10), 1, %s1179_s13   ;;  %p1626_p8 = scmp.ne.s32.totalorder (!%p1625_p10), %s1620_s23, 0 }
  0x4a   : > { %207 = sbr.rel (%p1625_p10) target bundleno = 370 (0x172), region = 32  ;;  %s950_s18 = sshll.u32 (!%p1625_p10), %s1362_s12, 7 }
  0x4b   : > { %s210_s21 = scalar_lea.sflag (!%p1625_p10), [#allocation4], %s1362_s12  ;;  %s1366_s6 = scalar_lea.vmem (!%p1625_p10), [#allocation3], %s950_s18 }
  0x51   : > { %1166 = dma.done.wait (%p1626_p8), %s210_s21, 2048  }
  0x52   : > { %1168 = vsyncadd (%p1626_p8), %s210_s21, 4294965248  ;;  %s951_s7 = sshll.u32 %s1362_s12, 1  ;;  %s219_s11 = scalar_lea.sflag [#allocation6], %s1362_s12 }
  0x53   : > { %s1374_s20 = scalar_lea.vmem [#allocation5], %s951_s7 }
  0x54   : > { %1170 = dma.done.wait (%p1626_p8), %s219_s11, 32  }
  0x55   : > { %1172 = vsyncadd (%p1626_p8), %s219_s11, 4294967264  ;;  %v1202_v0 = vmov 0   ;;  %v1057_v1 = vld [vmem:[%s1366_s6 + $0x4] ss:$8 sps:$4 sm:$0xff]   ;;  %v1059_v2 = vld [vmem:[%s1366_s6] ss:$8 sps:$4 sm:$0xff]   ;;  %v664_v41 = vlaneseq }
  0x56   : > { %482 = vmatprep.mubr.bf16.mxu0 %v1202_v0  ;;  %522 = vmatprep.mubr.bf16.mxu1 %v1202_v0  ;;  %v1060_v3 = vld [vmem:[%s1366_s6 + $0x14] ss:$8 sps:$4 sm:$0xff]   ;;  %v1062_v4 = vld [vmem:[%s1366_s6 + $0x10] ss:$8 sps:$4 sm:$0xff]   ;;  %v1063_v5 = vld [vmem:[%s1366_s6 + $0x24] ss:$8 sps:$4 sm:$0xff]  }
  0x57   : > { %450 = vmatprep.subr.bf16.mxu0 %v1057_v1  ;;  %977 = vmatprep.subr.bf16.mxu1 %v1057_v1  ;;  %v1065_v6 = vld [vmem:[%s1366_s6 + $0x20] ss:$8 sps:$4 sm:$0xff]   ;;  %v1066_v7 = vld [vmem:[%s1366_s6 + $0x34] ss:$8 sps:$4 sm:$0xff]   ;;  %v1068_v8 = vld [vmem:[%s1366_s6 + $0x30] ss:$8 sps:$4 sm:$0xff]  }
  0x58   : > { %451 = vmatpush1.bf16.msra.mxu0 %v1059_v2  ;;  %985 = vmatpush1.bf16.msra.mxu1 %v1059_v2  ;;  %v1069_v9 = vld [vmem:[%s1366_s6 + $0x44] ss:$8 sps:$4 sm:$0xff]   ;;  %v1071_v10 = vld [vmem:[%s1366_s6 + $0x40] ss:$8 sps:$4 sm:$0xff]   ;;  %v1072_v11 = vld [vmem:[%s1366_s6 + $0x54] ss:$8 sps:$4 sm:$0xff]  }
  0x59   : > { %452 = vmatprep.subr.bf16.mxu0 %v1060_v3  ;;  %978 = vmatprep.subr.bf16.mxu1 %v1060_v3  ;;  %v1074_v12 = vld [vmem:[%s1366_s6 + $0x50] ss:$8 sps:$4 sm:$0xff]   ;;  %v1075_v13 = vld [vmem:[%s1366_s6 + $0x64] ss:$8 sps:$4 sm:$0xff]   ;;  %v1077_v14 = vld [vmem:[%s1366_s6 + $0x60] ss:$8 sps:$4 sm:$0xff]  }
  0x5a   : > { %v1078_v15 = vld [vmem:[%s1366_s6 + $0x74] ss:$8 sps:$4 sm:$0xff]   ;;  %v1080_v16 = vld [vmem:[%s1366_s6 + $0x70] ss:$8 sps:$4 sm:$0xff]   ;;  %v330_v17 = vld [vmem:[%s1614_s0] sm:$0xff]  ;;  %v665_v42 = vshrl.u32 %v664_v41, 7 }
  0x5b   : > { %v331_v18 = vld [vmem:[%s1614_s0 + $0x8] sm:$0xff]  ;;  %v338_v19 = vld [vmem:[%s1614_s0 + $0x40] sm:$0xff]  ;;  %v332_v23 = vld [vmem:[%s1614_s0 + $0x10] sm:$0xff]  ;;  %s952_s7 = sshll.u32 %s1362_s12, 8  ;;  %p1627_p11 = scmp.ne.s32.totalorder %s1621_s25, 0 }
  0x5c   : > { %453 = vmatpush1.bf16.msra.mxu0 %v1062_v4  ;;  %986 = vmatpush1.bf16.msra.mxu1 %v1062_v4  ;;  %v339_v20 = vld [vmem:[%s1614_s0 + $0x48] sm:$0xff]  ;;  %v346_v21 = vpack.c.bf16 %v331_v18, %v330_v17  ;;  %v333_v24 = vld [vmem:[%s1614_s0 + $0x18] sm:$0xff]  ;;  %v340_v25 = vld [vmem:[%s1614_s0 + $0x50] sm:$0xff]  ;;  %v666_v43 = vsub.s32 0, %v665_v42  ;;  %v670_v45 = vsub.s32 1, %v665_v42  ;;  %s976_s12 = sshll.u32 (%p1627_p11), %s1187_s15, 4 }
  0x5d   : > { %454 = vmatprep.subr.bf16.mxu0 %v1063_v5  ;;  %979 = vmatprep.subr.bf16.mxu1 %v1063_v5  ;;  %v350_v22 = vpack.c.bf16 %v339_v20, %v338_v19  ;;  %v341_v26 = vld [vmem:[%s1614_s0 + $0x58] sm:$0xff]  ;;  %v347_v27 = vpack.c.bf16 %v333_v24, %v332_v23  ;;  %v334_v29 = vld [vmem:[%s1614_s0 + $0x20] sm:$0xff]  ;;  %v335_v30 = vld [vmem:[%s1614_s0 + $0x28] sm:$0xff]  ;;  %s1533_s22 = scalar_lea.vmem (%p1627_p11), %s1617_s3, %s976_s12 }
  0x5e   : > { %v351_v28 = vpack.c.bf16 %v341_v26, %v340_v25  ;;  %v342_v31 = vld [vmem:[%s1614_s0 + $0x60] sm:$0xff]  ;;  %v343_v32 = vld [vmem:[%s1614_s0 + $0x68] sm:$0xff]  ;;  %v348_v33 = vpack.c.bf16 %v335_v30, %v334_v29  ;;  %v336_v35 = vld [vmem:[%s1614_s0 + $0x30] sm:$0xff] }
  0x5f   : > { %v352_v34 = vpack.c.bf16 %v343_v32, %v342_v31  ;;  %v337_v36 = vld [vmem:[%s1614_s0 + $0x38] sm:$0xff]  ;;  %v344_v37 = vld [vmem:[%s1614_s0 + $0x70] sm:$0xff]  ;;  %v662_v44 = vld [vmem:[%s1374_s20] sm:$0x3]  ;;  %s1462_s20 = scalar_lea.vmem [#allocation7], %s952_s7 }
  0x60   : > { %455 = vmatpush1.bf16.msra.mxu0 %v1065_v6  ;;  %987 = vmatpush1.bf16.msra.mxu1 %v1065_v6  ;;  %v345_v38 = vld [vmem:[%s1614_s0 + $0x78] sm:$0xff]  ;;  %v349_v39 = vpack.c.bf16 %v337_v36, %v336_v35  ;;  %v1454_v46 = vrot.slane %v662_v44, %v666_v43  ;;  %v1456_v47 = vrot.slane %v662_v44, %v670_v45 }
  0x61   : > { %456 = vmatprep.subr.bf16.mxu0 %v1066_v7  ;;  %980 = vmatprep.subr.bf16.mxu1 %v1066_v7  ;;  %v353_v40 = vpack.c.bf16 %v345_v38, %v344_v37 }
  0x64   : > { %457 = vmatpush1.bf16.msra.mxu0 %v1068_v8  ;;  %988 = vmatpush1.bf16.msra.mxu1 %v1068_v8 }
  0x65   : > { %458 = vmatprep.subr.bf16.mxu0 %v1069_v9  ;;  %981 = vmatprep.subr.bf16.mxu1 %v1069_v9 }
  0x68   : > { %459 = vmatpush1.bf16.msra.mxu0 %v1071_v10  ;;  %989 = vmatpush1.bf16.msra.mxu1 %v1071_v10 }
  0x69   : > { %460 = vmatprep.subr.bf16.mxu0 %v1072_v11  ;;  %982 = vmatprep.subr.bf16.mxu1 %v1072_v11 }
  0x6c   : > { %461 = vmatpush1.bf16.msra.mxu0 %v1074_v12  ;;  %990 = vmatpush1.bf16.msra.mxu1 %v1074_v12 }
  0x6d   : > { %462 = vmatprep.subr.bf16.mxu0 %v1075_v13  ;;  %983 = vmatprep.subr.bf16.mxu1 %v1075_v13 }
  0x70   : > { %463 = vmatpush1.bf16.msra.mxu0 %v1077_v14  ;;  %991 = vmatpush1.bf16.msra.mxu1 %v1077_v14 }
  0x71   : > { %464 = vmatprep.subr.bf16.mxu0 %v1078_v15  ;;  %984 = vmatprep.subr.bf16.mxu1 %v1078_v15 }
  0x74   : > { %465 = vmatpush1.bf16.msra.mxu0 %v1080_v16  ;;  %992 = vmatpush1.bf16.msra.mxu1 %v1080_v16 }
  0x77   : > { %483 = vmatmul.mubr.bf16.vlgmr.msra.gmra.mrb[0].mxu0 %v346_v21  ;;  %523 = vmatmul.mubr.bf16.vlgmr.msra.gmra.mrb[0].mxu1 %v350_v22 }
  0x78   : > { %492 = vmatprep.mubr.bf16.mxu0 %v1202_v0  ;;  %532 = vmatprep.mubr.bf16.mxu1 %v1202_v0 }
  0x7f   : > { %493 = vmatmul.mubr.bf16.gmra.mrb[4].mxu0 %v347_v27  ;;  %533 = vmatmul.mubr.bf16.gmra.mrb[4].mxu1 %v351_v28 }
  0x80   : > { %502 = vmatprep.mubr.bf16.mxu0 %v1202_v0  ;;  %542 = vmatprep.mubr.bf16.mxu1 %v1202_v0 }
  0x87   : > { %503 = vmatmul.mubr.bf16.gmra.mrb[8].mxu0 %v348_v33  ;;  %543 = vmatmul.mubr.bf16.gmra.mrb[8].mxu1 %v352_v34 }
  0x88   : > { %512 = vmatprep.mubr.bf16.mxu0 %v1202_v0  ;;  %552 = vmatprep.mubr.bf16.mxu1 %v1202_v0 }
  0x8f   : > { %513 = vmatmul.mubr.bf16.gmra.mrb[12].mxu0 %v349_v39  ;;  %553 = vmatmul.mubr.bf16.gmra.mrb[12].mxu1 %v353_v40 }
 0x14a   : > { %v484_v48 = vpop.f32.mrb[0].mxu0  ;;  %v524_v49 = vpop.f32.mrb[0].mxu1 }
 0x14b   : > { %v674_v50 = vadd.f32 %v1454_v46, %v484_v48  ;;  %v690_v51 = vadd.f32 %v1454_v46, %v524_v49  ;;  %v486_v52 = vpop.f32.mrb[1].mxu0  ;;  %v526_v53 = vpop.f32.mrb[1].mxu1 }
 0x14c   : > { %v675_v54 = vadd.f32 %v1456_v47, %v486_v52  ;;  %v691_v55 = vadd.f32 %v1456_v47, %v526_v53  ;;  %v488_v56 = vpop.f32.mrb[2].mxu0  ;;  %v528_v57 = vpop.f32.mrb[2].mxu1 }
 0x14d   : > { %706 = vst [vmem:[%s1462_s20] sm:$0xff] %v674_v50  ;;  %722 = vst [vmem:[%s1462_s20 + $0x80] sm:$0xff] %v690_v51  ;;  %v676_v58 = vadd.f32 %v1454_v46, %v488_v56  ;;  %v692_v59 = vadd.f32 %v1454_v46, %v528_v57  ;;  %v490_v60 = vpop.f32.mrb[3].mxu0  ;;  %v530_v61 = vpop.f32.mrb[3].mxu1 }
 0x14e   : > { %707 = vst [vmem:[%s1462_s20 + $0x8] sm:$0xff] %v675_v54  ;;  %723 = vst [vmem:[%s1462_s20 + $0x88] sm:$0xff] %v691_v55  ;;  %v677_v62 = vadd.f32 %v1456_v47, %v490_v60  ;;  %v693_v63 = vadd.f32 %v1456_v47, %v530_v61 }
 0x14f   : > { %708 = vst [vmem:[%s1462_s20 + $0x10] sm:$0xff] %v676_v58  ;;  %724 = vst [vmem:[%s1462_s20 + $0x90] sm:$0xff] %v692_v59 }
 0x150   : > { %709 = vst [vmem:[%s1462_s20 + $0x18] sm:$0xff] %v677_v62  ;;  %725 = vst [vmem:[%s1462_s20 + $0x98] sm:$0xff] %v693_v63 }
 0x152   : > { %v494_v0 = vpop.f32.mrb[4].mxu0  ;;  %v534_v1 = vpop.f32.mrb[4].mxu1 }
 0x153   : > { %v678_v2 = vadd.f32 %v1454_v46, %v494_v0  ;;  %v694_v3 = vadd.f32 %v1454_v46, %v534_v1  ;;  %v496_v4 = vpop.f32.mrb[5].mxu0  ;;  %v536_v5 = vpop.f32.mrb[5].mxu1 }
 0x154   : > { %v679_v6 = vadd.f32 %v1456_v47, %v496_v4  ;;  %v695_v7 = vadd.f32 %v1456_v47, %v536_v5  ;;  %v498_v8 = vpop.f32.mrb[6].mxu0  ;;  %v538_v9 = vpop.f32.mrb[6].mxu1  ;;  %v792_v0 = vld [vmem:[%s1462_s20 + $0x80] sm:$0xff] (%p1627_p11) }
 0x155   : > { %710 = vst [vmem:[%s1462_s20 + $0x20] sm:$0xff] %v678_v2  ;;  %726 = vst [vmem:[%s1462_s20 + $0xa0] sm:$0xff] %v694_v3  ;;  %v680_v10 = vadd.f32 %v1454_v46, %v498_v8  ;;  %v696_v11 = vadd.f32 %v1454_v46, %v538_v9  ;;  %v500_v12 = vpop.f32.mrb[7].mxu0  ;;  %v540_v13 = vpop.f32.mrb[7].mxu1  ;;  %v794_v1 = vld [vmem:[%s1462_s20 + $0x88] sm:$0xff] (%p1627_p11) }
 0x156   : > { %711 = vst [vmem:[%s1462_s20 + $0x28] sm:$0xff] %v679_v6  ;;  %727 = vst [vmem:[%s1462_s20 + $0xa8] sm:$0xff] %v695_v7  ;;  %v681_v14 = vadd.f32 %v1456_v47, %v500_v12  ;;  %v697_v15 = vadd.f32 %v1456_v47, %v540_v13  ;;  %v764_v50 = vld [vmem:[%s1462_s20 + $0x10] sm:$0xff] (%p1627_p11) }
 0x157   : > { %712 = vst [vmem:[%s1462_s20 + $0x30] sm:$0xff] %v680_v10  ;;  %728 = vst [vmem:[%s1462_s20 + $0xb0] sm:$0xff] %v696_v11  ;;  %v766_v51 = vld [vmem:[%s1462_s20 + $0x18] sm:$0xff] (%p1627_p11)  ;;  %v796_v2 = vld [vmem:[%s1462_s20 + $0x90] sm:$0xff] (%p1627_p11) }
 0x158   : > { %713 = vst [vmem:[%s1462_s20 + $0x38] sm:$0xff] %v681_v14  ;;  %729 = vst [vmem:[%s1462_s20 + $0xb8] sm:$0xff] %v697_v15  ;;  %v798_v3 = vld [vmem:[%s1462_s20 + $0x98] sm:$0xff] (%p1627_p11) }
 0x159   : > { %765 = vst [vmem:[%s1533_s22 + $0x80] sm:$0xff] (%p1627_p11), %v764_v50  ;;  %767 = vst [vmem:[%s1533_s22 + $0x88] sm:$0xff] (%p1627_p11), %v766_v51 }
 0x15a   : > { %v504_v16 = vpop.f32.mrb[8].mxu0  ;;  %v544_v17 = vpop.f32.mrb[8].mxu1  ;;  %793 = vst [vmem:[%s1533_s22 + $0x400] sm:$0xff] (%p1627_p11), %v792_v0  ;;  %795 = vst [vmem:[%s1533_s22 + $0x408] sm:$0xff] (%p1627_p11), %v794_v1 }
 0x15b   : > { %v682_v18 = vadd.f32 %v1454_v46, %v504_v16  ;;  %v698_v19 = vadd.f32 %v1454_v46, %v544_v17  ;;  %v506_v20 = vpop.f32.mrb[9].mxu0  ;;  %v546_v21 = vpop.f32.mrb[9].mxu1  ;;  %797 = vst [vmem:[%s1533_s22 + $0x480] sm:$0xff] (%p1627_p11), %v796_v2  ;;  %799 = vst [vmem:[%s1533_s22 + $0x488] sm:$0xff] (%p1627_p11), %v798_v3 }
 0x15c   : > { %v683_v22 = vadd.f32 %v1456_v47, %v506_v20  ;;  %v699_v23 = vadd.f32 %v1456_v47, %v546_v21  ;;  %v508_v24 = vpop.f32.mrb[10].mxu0  ;;  %v548_v25 = vpop.f32.mrb[10].mxu1  ;;  %v768_v52 = vld [vmem:[%s1462_s20 + $0x20] sm:$0xff] (%p1627_p11) }
 0x15d   : > { %714 = vst [vmem:[%s1462_s20 + $0x40] sm:$0xff] %v682_v18  ;;  %730 = vst [vmem:[%s1462_s20 + $0xc0] sm:$0xff] %v698_v19  ;;  %v684_v26 = vadd.f32 %v1454_v46, %v508_v24  ;;  %v700_v27 = vadd.f32 %v1454_v46, %v548_v25  ;;  %v510_v28 = vpop.f32.mrb[11].mxu0  ;;  %v550_v29 = vpop.f32.mrb[11].mxu1  ;;  %v770_v53 = vld [vmem:[%s1462_s20 + $0x28] sm:$0xff] (%p1627_p11)  ;;  %v800_v4 = vld [vmem:[%s1462_s20 + $0xa0] sm:$0xff] (%p1627_p11) }
 0x15e   : > { %715 = vst [vmem:[%s1462_s20 + $0x48] sm:$0xff] %v683_v22  ;;  %731 = vst [vmem:[%s1462_s20 + $0xc8] sm:$0xff] %v699_v23  ;;  %v685_v30 = vadd.f32 %v1456_v47, %v510_v28  ;;  %v701_v31 = vadd.f32 %v1456_v47, %v550_v29  ;;  %v772_v54 = vld [vmem:[%s1462_s20 + $0x30] sm:$0xff] (%p1627_p11)  ;;  %v802_v5 = vld [vmem:[%s1462_s20 + $0xa8] sm:$0xff] (%p1627_p11) }
 0x15f   : > { %716 = vst [vmem:[%s1462_s20 + $0x50] sm:$0xff] %v684_v26  ;;  %732 = vst [vmem:[%s1462_s20 + $0xd0] sm:$0xff] %v700_v27  ;;  %v774_v55 = vld [vmem:[%s1462_s20 + $0x38] sm:$0xff] (%p1627_p11)  ;;  %v804_v6 = vld [vmem:[%s1462_s20 + $0xb0] sm:$0xff] (%p1627_p11) }
 0x160   : > { %717 = vst [vmem:[%s1462_s20 + $0x58] sm:$0xff] %v685_v30  ;;  %733 = vst [vmem:[%s1462_s20 + $0xd8] sm:$0xff] %v701_v31  ;;  %v806_v7 = vld [vmem:[%s1462_s20 + $0xb8] sm:$0xff] (%p1627_p11) }
 0x161   : > { %769 = vst [vmem:[%s1533_s22 + $0x100] sm:$0xff] (%p1627_p11), %v768_v52  ;;  %771 = vst [vmem:[%s1533_s22 + $0x108] sm:$0xff] (%p1627_p11), %v770_v53 }
 0x162   : > { %v514_v32 = vpop.f32.mrb[12].mxu0  ;;  %v554_v33 = vpop.f32.mrb[12].mxu1  ;;  %744 = sbr.rel (!%p1627_p11) target bundleno = 370 (0x172), region = 52  ;;  %773 = vst [vmem:[%s1533_s22 + $0x180] sm:$0xff] (%p1627_p11), %v772_v54  ;;  %775 = vst [vmem:[%s1533_s22 + $0x188] sm:$0xff] (%p1627_p11), %v774_v55 }
 0x163   : > { %v686_v34 = vadd.f32 %v1454_v46, %v514_v32  ;;  %v702_v35 = vadd.f32 %v1454_v46, %v554_v33  ;;  %v516_v36 = vpop.f32.mrb[13].mxu0  ;;  %v556_v37 = vpop.f32.mrb[13].mxu1  ;;  %801 = vst [vmem:[%s1533_s22 + $0x500] sm:$0xff] (%p1627_p11), %v800_v4  ;;  %803 = vst [vmem:[%s1533_s22 + $0x508] sm:$0xff] (%p1627_p11), %v802_v5 }
 0x164   : > { %v687_v38 = vadd.f32 %v1456_v47, %v516_v36  ;;  %v703_v39 = vadd.f32 %v1456_v47, %v556_v37  ;;  %v518_v40 = vpop.f32.mrb[14].mxu0  ;;  %v558_v41 = vpop.f32.mrb[14].mxu1  ;;  %v776_v56 = vld [vmem:[%s1462_s20 + $0x40] sm:$0xff] (%p1627_p11)  ;;  %805 = vst [vmem:[%s1533_s22 + $0x580] sm:$0xff] (%p1627_p11), %v804_v6  ;;  %807 = vst [vmem:[%s1533_s22 + $0x588] sm:$0xff] (%p1627_p11), %v806_v7 }
 0x165   : > { %718 = vst [vmem:[%s1462_s20 + $0x60] sm:$0xff] %v686_v34  ;;  %734 = vst [vmem:[%s1462_s20 + $0xe0] sm:$0xff] %v702_v35  ;;  %v688_v42 = vadd.f32 %v1454_v46, %v518_v40  ;;  %v704_v43 = vadd.f32 %v1454_v46, %v558_v41  ;;  %v520_v44 = vpop.f32.mrb[15].mxu0  ;;  %v560_v45 = vpop.f32.mrb[15].mxu1  ;;  %v760_v46 = vld [vmem:[%s1462_s20] sm:$0xff] (%p1627_p11)  ;;  %v778_v57 = vld [vmem:[%s1462_s20 + $0x48] sm:$0xff] (%p1627_p11) }
 0x166   : > { %719 = vst [vmem:[%s1462_s20 + $0x68] sm:$0xff] %v687_v38  ;;  %735 = vst [vmem:[%s1462_s20 + $0xe8] sm:$0xff] %v703_v39  ;;  %v689_v48 = vadd.f32 %v1456_v47, %v520_v44  ;;  %v705_v49 = vadd.f32 %v1456_v47, %v560_v45  ;;  %v762_v47 = vld [vmem:[%s1462_s20 + $0x8] sm:$0xff] (%p1627_p11)  ;;  %v780_v58 = vld [vmem:[%s1462_s20 + $0x50] sm:$0xff] (%p1627_p11) }
 0x167   : > { %720 = vst [vmem:[%s1462_s20 + $0x70] sm:$0xff] %v688_v42  ;;  %736 = vst [vmem:[%s1462_s20 + $0xf0] sm:$0xff] %v704_v43  ;;  %v782_v59 = vld [vmem:[%s1462_s20 + $0x58] sm:$0xff] (%p1627_p11)  ;;  %v808_v8 = vld [vmem:[%s1462_s20 + $0xc0] sm:$0xff] (%p1627_p11) }
 0x168   : > { %721 = vst [vmem:[%s1462_s20 + $0x78] sm:$0xff] %v689_v48  ;;  %737 = vst [vmem:[%s1462_s20 + $0xf8] sm:$0xff] %v705_v49  ;;  %v810_v9 = vld [vmem:[%s1462_s20 + $0xc8] sm:$0xff] (%p1627_p11)  ;;  %v812_v10 = vld [vmem:[%s1462_s20 + $0xd0] sm:$0xff] (%p1627_p11) }
 0x169   : > { %761 = vst [vmem:[%s1533_s22] sm:$0xff] %v760_v46  ;;  %763 = vst [vmem:[%s1533_s22 + $0x8] sm:$0xff] %v762_v47  ;;  %v814_v11 = vld [vmem:[%s1462_s20 + $0xd8] sm:$0xff] }
 0x16a   : > { %777 = vst [vmem:[%s1533_s22 + $0x200] sm:$0xff] %v776_v56  ;;  %779 = vst [vmem:[%s1533_s22 + $0x208] sm:$0xff] %v778_v57 }
 0x16b   : > { %781 = vst [vmem:[%s1533_s22 + $0x280] sm:$0xff] %v780_v58  ;;  %783 = vst [vmem:[%s1533_s22 + $0x288] sm:$0xff] %v782_v59 }
 0x16c   : > { %v784_v60 = vld [vmem:[%s1462_s20 + $0x60] sm:$0xff]  ;;  %809 = vst [vmem:[%s1533_s22 + $0x600] sm:$0xff] %v808_v8  ;;  %811 = vst [vmem:[%s1533_s22 + $0x608] sm:$0xff] %v810_v9 }
 0x16d   : > { %v786_v61 = vld [vmem:[%s1462_s20 + $0x68] sm:$0xff]  ;;  %785 = vst [vmem:[%s1533_s22 + $0x300] sm:$0xff] %v784_v60  ;;  %813 = vst [vmem:[%s1533_s22 + $0x680] sm:$0xff] %v812_v10  ;;  %v816_v12 = vld [vmem:[%s1462_s20 + $0xe0] sm:$0xff] }
 0x16e   : > { %v788_v62 = vld [vmem:[%s1462_s20 + $0x70] sm:$0xff]  ;;  %787 = vst [vmem:[%s1533_s22 + $0x308] sm:$0xff] %v786_v61  ;;  %v818_v13 = vld [vmem:[%s1462_s20 + $0xe8] sm:$0xff]  ;;  %815 = vst [vmem:[%s1533_s22 + $0x688] sm:$0xff] %v814_v11 }
 0x16f   : > { %789 = vst [vmem:[%s1533_s22 + $0x380] sm:$0xff] %v788_v62  ;;  %v790_v63 = vld [vmem:[%s1462_s20 + $0x78] sm:$0xff]  ;;  %817 = vst [vmem:[%s1533_s22 + $0x700] sm:$0xff] %v816_v12  ;;  %v820_v14 = vld [vmem:[%s1462_s20 + $0xf0] sm:$0xff] }
 0x170   : > { %791 = vst [vmem:[%s1533_s22 + $0x388] sm:$0xff] %v790_v63  ;;  %819 = vst [vmem:[%s1533_s22 + $0x708] sm:$0xff] %v818_v13  ;;  %v822_v15 = vld [vmem:[%s1462_s20 + $0xf8] sm:$0xff] }
 0x171   : > { %821 = vst [vmem:[%s1533_s22 + $0x780] sm:$0xff] %v820_v14  ;;  %823 = vst [vmem:[%s1533_s22 + $0x788] sm:$0xff] %v822_v15 }
 0x172 PF: > { %s19_s17 = sadd.s32 1, %s1195_s17   ;;  %s1628_s12 = smov %s1179_s13 }
 0x173   : > { %p16_p0 = scmp.ge.s32.totalorder %s19_s17, 10   ;;  %s1629_s13 = smov %s1183_s14 }
 0x174   : > { %s1630_s14 = smov %s1271_s24  ;;  %s1631_s15 = smov %s1191_s16 }
 0x175   : > { %s1632_s16 = smov %s1634_s19  ;;  %18 = sbr.rel (!%p16_p0) target bundleno = 6 (0x6), region = 119 }
 0x17c   :  { %839 = vsyncpa [#allocation4], 1 }
 0x17d   :  { %841 = vsyncpa [#allocation4 + $0x1], 1 }
 0x17e   :  { %842 = vsyncpa [#allocation6], 1 }
 0x17f   :  { %844 = vsyncpa [#allocation6 + $0x1], 1 }

// kernel: vae_forward.11
= control target key start
LH: loop header
LB: loop body
LE: loop exit
PB: predicated region body
PF: predicated region fallthrough
CT: control target
= control target key end

     0   :  { %s933_s1 = inlined_call_operand.vmem [shape: bf16[512,256], index: 1, kind: input, shape index: {}]   ;;  %s934_s0 = inlined_call_operand.vmem [shape: f32[8,512], index: 0, kind: input, shape index: {}]   ;;  %s935_s2 = inlined_call_operand.vmem [shape: f32[1,256], index: 2, kind: input, shape index: {}]   ;;  %s936_s3 = inlined_call_operand.vmem [shape: f32[8,128], index: 3, kind: output, shape index: {0}]   ;;  %s937_s4 = inlined_call_operand.vmem [shape: f32[8,128], index: 4, kind: output, shape index: {1}]  }
   0x1   :  { %v595_v0 = vld [vmem:[%s933_s1 + $0x4] ss:$8 sps:$4 sm:$0xff]   ;;  %v599_v2 = vld [vmem:[%s933_s1] ss:$8 sps:$4 sm:$0xff]   ;;  %v601_v4 = vld [vmem:[%s933_s1 + $0x14] ss:$8 sps:$4 sm:$0xff]  }
   0x2   :  { %v597_v1 = vld [vmem:[%s933_s1 + $0x104] ss:$8 sps:$4 sm:$0xff]   ;;  %420 = vmatprep.subr.bf16.mxu1 %v595_v0  ;;  %v600_v3 = vld [vmem:[%s933_s1 + $0x100] ss:$8 sps:$4 sm:$0xff]   ;;  %v603_v5 = vld [vmem:[%s933_s1 + $0x114] ss:$8 sps:$4 sm:$0xff]  }
   0x3   :  { %461 = vmatprep.subr.bf16.mxu0 %v597_v1  ;;  %421 = vmatpush1.bf16.msra.mxu1 %v599_v2  ;;  %v605_v6 = vld [vmem:[%s933_s1 + $0x10] ss:$8 sps:$4 sm:$0xff]   ;;  %v607_v8 = vld [vmem:[%s933_s1 + $0x24] ss:$8 sps:$4 sm:$0xff]   ;;  %v611_v10 = vld [vmem:[%s933_s1 + $0x20] ss:$8 sps:$4 sm:$0xff]  }
   0x4   :  { %462 = vmatpush1.bf16.msra.mxu0 %v600_v3  ;;  %422 = vmatprep.subr.bf16.mxu1 %v601_v4  ;;  %v606_v7 = vld [vmem:[%s933_s1 + $0x110] ss:$8 sps:$4 sm:$0xff]   ;;  %v609_v9 = vld [vmem:[%s933_s1 + $0x124] ss:$8 sps:$4 sm:$0xff]   ;;  %v612_v11 = vld [vmem:[%s933_s1 + $0x120] ss:$8 sps:$4 sm:$0xff]  }
   0x5   :  { %463 = vmatprep.subr.bf16.mxu0 %v603_v5  ;;  %v613_v12 = vld [vmem:[%s933_s1 + $0x34] ss:$8 sps:$4 sm:$0xff]   ;;  %v617_v14 = vld [vmem:[%s933_s1 + $0x30] ss:$8 sps:$4 sm:$0xff]   ;;  %v619_v16 = vld [vmem:[%s933_s1 + $0x44] ss:$8 sps:$4 sm:$0xff]  }
   0x6   :  { %v615_v13 = vld [vmem:[%s933_s1 + $0x134] ss:$8 sps:$4 sm:$0xff]   ;;  %v618_v15 = vld [vmem:[%s933_s1 + $0x130] ss:$8 sps:$4 sm:$0xff]   ;;  %v621_v17 = vld [vmem:[%s933_s1 + $0x144] ss:$8 sps:$4 sm:$0xff]  }
   0x7   :  { %423 = vmatpush1.bf16.msra.mxu1 %v605_v6  ;;  %v623_v18 = vld [vmem:[%s933_s1 + $0x40] ss:$8 sps:$4 sm:$0xff]   ;;  %v625_v20 = vld [vmem:[%s933_s1 + $0x54] ss:$8 sps:$4 sm:$0xff]   ;;  %v629_v22 = vld [vmem:[%s933_s1 + $0x50] ss:$8 sps:$4 sm:$0xff]  }
   0x8   :  { %464 = vmatpush1.bf16.msra.mxu0 %v606_v7  ;;  %424 = vmatprep.subr.bf16.mxu1 %v607_v8  ;;  %v624_v19 = vld [vmem:[%s933_s1 + $0x140] ss:$8 sps:$4 sm:$0xff]   ;;  %v627_v21 = vld [vmem:[%s933_s1 + $0x154] ss:$8 sps:$4 sm:$0xff]   ;;  %v630_v23 = vld [vmem:[%s933_s1 + $0x150] ss:$8 sps:$4 sm:$0xff]   ;;  %v90_v8 = vlaneseq }
   0x9   :  { %465 = vmatprep.subr.bf16.mxu0 %v609_v9  ;;  %v631_v24 = vld [vmem:[%s933_s1 + $0x64] ss:$8 sps:$4 sm:$0xff]   ;;  %v635_v26 = vld [vmem:[%s933_s1 + $0x60] ss:$8 sps:$4 sm:$0xff]   ;;  %v637_v28 = vld [vmem:[%s933_s1 + $0x74] ss:$8 sps:$4 sm:$0xff]  }
   0xa   :  { %v633_v25 = vld [vmem:[%s933_s1 + $0x164] ss:$8 sps:$4 sm:$0xff]   ;;  %v636_v27 = vld [vmem:[%s933_s1 + $0x160] ss:$8 sps:$4 sm:$0xff]   ;;  %v639_v29 = vld [vmem:[%s933_s1 + $0x174] ss:$8 sps:$4 sm:$0xff]  }
   0xb   :  { %425 = vmatpush1.bf16.msra.mxu1 %v611_v10  ;;  %v641_v30 = vld [vmem:[%s933_s1 + $0x70] ss:$8 sps:$4 sm:$0xff]   ;;  %v643_v32 = vld [vmem:[%s933_s1 + $0x84] ss:$8 sps:$4 sm:$0xff]   ;;  %v647_v34 = vld [vmem:[%s933_s1 + $0x80] ss:$8 sps:$4 sm:$0xff]  }
   0xc   :  { %466 = vmatpush1.bf16.msra.mxu0 %v612_v11  ;;  %426 = vmatprep.subr.bf16.mxu1 %v613_v12  ;;  %v642_v31 = vld [vmem:[%s933_s1 + $0x170] ss:$8 sps:$4 sm:$0xff]   ;;  %v645_v33 = vld [vmem:[%s933_s1 + $0x184] ss:$8 sps:$4 sm:$0xff]   ;;  %v648_v35 = vld [vmem:[%s933_s1 + $0x180] ss:$8 sps:$4 sm:$0xff]  }
   0xd   :  { %467 = vmatprep.subr.bf16.mxu0 %v615_v13  ;;  %v649_v36 = vld [vmem:[%s933_s1 + $0x94] ss:$8 sps:$4 sm:$0xff]   ;;  %v653_v38 = vld [vmem:[%s933_s1 + $0x90] ss:$8 sps:$4 sm:$0xff]   ;;  %v655_v40 = vld [vmem:[%s933_s1 + $0xa4] ss:$8 sps:$4 sm:$0xff]  }
   0xe   :  { %v651_v37 = vld [vmem:[%s933_s1 + $0x194] ss:$8 sps:$4 sm:$0xff]   ;;  %v654_v39 = vld [vmem:[%s933_s1 + $0x190] ss:$8 sps:$4 sm:$0xff]   ;;  %v657_v41 = vld [vmem:[%s933_s1 + $0x1a4] ss:$8 sps:$4 sm:$0xff]  }
   0xf   :  { %427 = vmatpush1.bf16.msra.mxu1 %v617_v14  ;;  %v659_v42 = vld [vmem:[%s933_s1 + $0xa0] ss:$8 sps:$4 sm:$0xff]   ;;  %v661_v44 = vld [vmem:[%s933_s1 + $0xb4] ss:$8 sps:$4 sm:$0xff]   ;;  %v665_v49 = vld [vmem:[%s933_s1 + $0xb0] ss:$8 sps:$4 sm:$0xff]  }
  0x10   :  { %468 = vmatpush1.bf16.msra.mxu0 %v618_v15  ;;  %428 = vmatprep.subr.bf16.mxu1 %v619_v16  ;;  %v660_v43 = vld [vmem:[%s933_s1 + $0x1a0] ss:$8 sps:$4 sm:$0xff]   ;;  %v663_v45 = vld [vmem:[%s933_s1 + $0x1b4] ss:$8 sps:$4 sm:$0xff]   ;;  %v666_v50 = vld [vmem:[%s933_s1 + $0x1b0] ss:$8 sps:$4 sm:$0xff]  }
  0x11   :  { %469 = vmatprep.subr.bf16.mxu0 %v621_v17  ;;  %v17_v46 = vld [vmem:[%s934_s0 + $0x8] sm:$0xff]  ;;  %v19_v48 = vld [vmem:[%s934_s0 + $0x18] sm:$0xff]  ;;  %v16_v4 = vld [vmem:[%s934_s0] sm:$0xff]  ;;  %v91_v9 = vshrl.u32 %v90_v8, 7 }
  0x12   :  { %v21_v47 = vpack.c.bf16 %v17_v46, %v17_v46  ;;  %v23_v51 = vpack.c.bf16 %v19_v48, %v19_v48  ;;  %v667_v52 = vld [vmem:[%s933_s1 + $0xc4] ss:$8 sps:$4 sm:$0xff]   ;;  %v671_v54 = vld [vmem:[%s933_s1 + $0xc0] ss:$8 sps:$4 sm:$0xff]   ;;  %v673_v56 = vld [vmem:[%s933_s1 + $0xd4] ss:$8 sps:$4 sm:$0xff]   ;;  %v20_v6 = vpack.c.bf16 %v16_v4, %v16_v4 }
  0x13   :  { %429 = vmatpush1.bf16.msra.mxu1 %v623_v18  ;;  %v669_v53 = vld [vmem:[%s933_s1 + $0x1c4] ss:$8 sps:$4 sm:$0xff]   ;;  %v672_v55 = vld [vmem:[%s933_s1 + $0x1c0] ss:$8 sps:$4 sm:$0xff]   ;;  %v675_v57 = vld [vmem:[%s933_s1 + $0x1d4] ss:$8 sps:$4 sm:$0xff]  }
  0x14   :  { %470 = vmatpush1.bf16.msra.mxu0 %v624_v19  ;;  %430 = vmatprep.subr.bf16.mxu1 %v625_v20  ;;  %v677_v58 = vld [vmem:[%s933_s1 + $0xd0] ss:$8 sps:$4 sm:$0xff]   ;;  %v679_v60 = vld [vmem:[%s933_s1 + $0xe4] ss:$8 sps:$4 sm:$0xff]   ;;  %v683_v62 = vld [vmem:[%s933_s1 + $0xe0] ss:$8 sps:$4 sm:$0xff]  }
  0x15   :  { %471 = vmatprep.subr.bf16.mxu0 %v627_v21  ;;  %452 = vmatprep.mubr.bf16.mxu1 %v21_v47  ;;  %v678_v59 = vld [vmem:[%s933_s1 + $0x1d0] ss:$8 sps:$4 sm:$0xff]   ;;  %v681_v61 = vld [vmem:[%s933_s1 + $0x1e4] ss:$8 sps:$4 sm:$0xff]   ;;  %v684_v63 = vld [vmem:[%s933_s1 + $0x1e0] ss:$8 sps:$4 sm:$0xff]  }
  0x16   :  { %493 = vmatprep.mubr.bf16.mxu0 %v23_v51  ;;  %v685_v0 = vld [vmem:[%s933_s1 + $0xf4] ss:$8 sps:$4 sm:$0xff]   ;;  %v689_v2 = vld [vmem:[%s933_s1 + $0xf0] ss:$8 sps:$4 sm:$0xff]   ;;  %v92_v10 = vsub.s32 0, %v91_v9  ;;  %v96_v12 = vsub.s32 1, %v91_v9 }
  0x17   :  { %431 = vmatpush1.bf16.msra.mxu1 %v629_v22  ;;  %v687_v1 = vld [vmem:[%s933_s1 + $0x1f4] ss:$8 sps:$4 sm:$0xff]   ;;  %v690_v3 = vld [vmem:[%s933_s1 + $0x1f0] ss:$8 sps:$4 sm:$0xff]   ;;  %v88_v11 = vld [vmem:[%s935_s2] sm:$0x3] }
  0x18   :  { %472 = vmatpush1.bf16.msra.mxu0 %v630_v23  ;;  %432 = vmatprep.subr.bf16.mxu1 %v631_v24  ;;  %v18_v5 = vld [vmem:[%s934_s0 + $0x10] sm:$0xff]  ;;  %v93_v13 = vrot.slane %v88_v11, %v92_v10  ;;  %v97_v14 = vrot.slane %v88_v11, %v96_v12 }
  0x19   :  { %473 = vmatprep.subr.bf16.mxu0 %v633_v25  ;;  %v22_v7 = vpack.c.bf16 %v18_v5, %v18_v5 }
  0x1b   :  { %433 = vmatpush1.bf16.msra.mxu1 %v635_v26 }
  0x1c   :  { %474 = vmatpush1.bf16.msra.mxu0 %v636_v27  ;;  %434 = vmatprep.subr.bf16.mxu1 %v637_v28 }
  0x1d   :  { %475 = vmatprep.subr.bf16.mxu0 %v639_v29 }
  0x1f   :  { %435 = vmatpush1.bf16.msra.mxu1 %v641_v30 }
  0x20   :  { %476 = vmatpush1.bf16.msra.mxu0 %v642_v31  ;;  %436 = vmatprep.subr.bf16.mxu1 %v643_v32 }
  0x21   :  { %477 = vmatprep.subr.bf16.mxu0 %v645_v33 }
  0x23   :  { %437 = vmatpush1.bf16.msra.mxu1 %v647_v34 }
  0x24   :  { %478 = vmatpush1.bf16.msra.mxu0 %v648_v35  ;;  %438 = vmatprep.subr.bf16.mxu1 %v649_v36 }
  0x25   :  { %479 = vmatprep.subr.bf16.mxu0 %v651_v37 }
  0x27   :  { %439 = vmatpush1.bf16.msra.mxu1 %v653_v38 }
  0x28   :  { %480 = vmatpush1.bf16.msra.mxu0 %v654_v39  ;;  %440 = vmatprep.subr.bf16.mxu1 %v655_v40 }
  0x29   :  { %481 = vmatprep.subr.bf16.mxu0 %v657_v41 }
  0x2b   :  { %441 = vmatpush1.bf16.msra.mxu1 %v659_v42 }
  0x2c   :  { %482 = vmatpush1.bf16.msra.mxu0 %v660_v43  ;;  %442 = vmatprep.subr.bf16.mxu1 %v661_v44 }
  0x2d   :  { %483 = vmatprep.subr.bf16.mxu0 %v663_v45 }
  0x2f   :  { %443 = vmatpush1.bf16.msra.mxu1 %v665_v49 }
  0x30   :  { %484 = vmatpush1.bf16.msra.mxu0 %v666_v50  ;;  %444 = vmatprep.subr.bf16.mxu1 %v667_v52 }
  0x31   :  { %485 = vmatprep.subr.bf16.mxu0 %v669_v53 }
  0x33   :  { %445 = vmatpush1.bf16.msra.mxu1 %v671_v54 }
  0x34   :  { %486 = vmatpush1.bf16.msra.mxu0 %v672_v55  ;;  %446 = vmatprep.subr.bf16.mxu1 %v673_v56 }
  0x35   :  { %487 = vmatprep.subr.bf16.mxu0 %v675_v57 }
  0x37   :  { %447 = vmatpush1.bf16.msra.mxu1 %v677_v58 }
  0x38   :  { %488 = vmatpush1.bf16.msra.mxu0 %v678_v59  ;;  %448 = vmatprep.subr.bf16.mxu1 %v679_v60 }
  0x39   :  { %489 = vmatprep.subr.bf16.mxu0 %v681_v61 }
  0x3b   :  { %449 = vmatpush1.bf16.msra.mxu1 %v683_v62 }
  0x3c   :  { %490 = vmatpush1.bf16.msra.mxu0 %v684_v63  ;;  %450 = vmatprep.subr.bf16.mxu1 %v685_v0 }
  0x3d   :  { %491 = vmatprep.subr.bf16.mxu0 %v687_v1 }
  0x3f   :  { %451 = vmatpush1.bf16.msra.mxu1 %v689_v2 }
  0x40   :  { %492 = vmatpush1.bf16.msra.mxu0 %v690_v3 }
  0x42   :  { %453 = vmatmul.mubr.bf16.vlgmr.msra.gmra.mrb[0].mxu1 %v20_v6 }
  0x43   :  { %494 = vmatmul.mubr.bf16.vlgmr.msra.gmra.mrb[0].mxu0 %v22_v7 }
 0x115   :  { %v454_v15 = vpop.f32.mrb[0].mxu1 }
 0x116   :  { %v495_v16 = vpop.f32.mrb[0].mxu0  ;;  %v455_v17 = vadd.f32 %v454_v15, %v93_v13  ;;  %v456_v18 = vpop.f32.mrb[1].mxu1 }
 0x117   :  { %v497_v19 = vpop.f32.mrb[1].mxu0  ;;  %v457_v20 = vadd.f32 %v456_v18, %v97_v14  ;;  %v458_v21 = vpop.f32.mrb[2].mxu1 }
 0x118   :  { %v499_v22 = vpop.f32.mrb[2].mxu0  ;;  %v496_v23 = vadd.f32 %v495_v16, %v455_v17  ;;  %v459_v24 = vpop.f32.mrb[3].mxu1 }
 0x119   :  { %v500_v25 = vpop.f32.mrb[3].mxu0  ;;  %v498_v26 = vadd.f32 %v497_v19, %v457_v20 }
 0x11a   :  { %502 = vst [vmem:[%s936_s3] sm:$0xff] %v496_v23 }
 0x11b   :  { %v504_v27 = vand.u32 2147483647, %v498_v26  ;;  %v503_v38 = vmax.f32 %v498_v26, 0.0 }
 0x11d   :  { %v505_v28 = vsub.f32 0.0, %v504_v27 }
 0x11f   :  { %v506_v29 = vmul.f32 1.442695, %v505_v28 }
 0x121   :  { %691 = vpow2.f32 %v506_v29 }
 0x12b   :  { %v692_v30 = vpop.eup %691 }
 0x12c   :  { %v508_v31 = vadd.f32 1.0, %v692_v30  ;;  %v511_v32 = vmul.f32 -0.5, %v692_v30  ;;  %v514_v34 = vand.u32 2147483647, %v692_v30 }
 0x12e   :  { %693 = vlog2.f32 %v508_v31  ;;  %v512_v33 = vadd.f32 1.0, %v511_v32  ;;  %vm515_vm0 = vcmp.lt.f32.partialorder %v514_v34, 0.0004427343 }
 0x130   :  { %v513_v37 = vmul.f32 %v692_v30, %v512_v33 }
 0x138   :  { %v694_v35 = vpop.eup %693 }
 0x139   :  { %v510_v36 = vmul.f32 0.6931472, %v694_v35 }
 0x13b   :  { %v516_v39 = vsel %vm515_vm0, %v513_v37, %v510_v36 }
 0x13c   :  { %v517_v40 = vadd.f32 %v516_v39, %v503_v38 }
 0x13e   :  { %518 = vst [vmem:[%s937_s4] sm:$0xff] %v517_v40 }

// kernel: vae_forward.9
= control target key start
LH: loop header
LB: loop body
LE: loop exit
PB: predicated region body
PF: predicated region fallthrough
CT: control target
= control target key end

     0   :  { %s1954_s12 = smov 0   ;;  %s1956_s13 = smov 0   ;;  %s2560_s0 = inlined_call_operand.vmem [shape: f32[128,512], index: 0, kind: input, shape index: {}]   ;;  %s2561_s1 = inlined_call_operand.vmem [shape: bf16[512,2048], index: 1, kind: input, shape index: {}]   ;;  %s2562_s2 = inlined_call_operand.vmem [shape: f32[1,2048], index: 2, kind: input, shape index: {}]   ;;  %s2563_s3 = inlined_call_operand.vmem [shape: f32[128,2048], index: 3, kind: output, shape index: {}]  }
   0x1   :  { %s1958_s14 = smov 0   ;;  %s1960_s15 = smov 0  }
   0x2   :  { %s1962_s16 = smov 0  }
   0x3 LB: > { %s25_s17 = sadd.s32 1, %s1928_s15  ;;  %s1643_s18 = sadd.s32 4294967295, %s1932_s16   ;;  %s1932_s16 = sphi %s1962_s16, %s13_s16   ;;  %s1928_s15 = sphi %s1960_s15, %s2568_s15   ;;  %s1924_s14 = sphi %s1958_s14, %s2567_s14   ;;  %s1920_s13 = sphi %s1956_s13, %s2566_s13   ;;  %s1916_s12 = sphi %s1954_s12, %s2565_s12  }
   0x4   : > { %p27_p0 = scmp.ge.s32.totalorder %s25_s17, 8  ;;  %p67_p1 = scmp.ne.s32.totalorder %s1920_s13, %s1916_s12 }
   0x5   : > { %p68_p2 = scmp.eq.s32.totalorder %s1932_s16, 0  ;;  %p123_p4 = scmp.eq.s32.totalorder %s1643_s18, 7 }
   0x6   : > { %s2570_s17 = smov (%p27_p0, %s25_s17), 0  ;;  %s60_s20 = sadd.s32 1, %s1920_s13 }
   0x7   : > { %p69_p3 = por %p68_p2, %p67_p1  ;;  %s56_s19 = ssub.s32 %s1928_s15, %s2570_s17 }
   0x8   : > { %p58_p5 = scmp.eq.s32.totalorder %s56_s19, 0  ;;  %p1989_p6 = por %p123_p4, %p67_p1 }
   0x9   : > { %p1647_p7 = scmp.ge.s32.totalorder %s1932_s16, 8 }
   0xa   : > { %s1994_s22 = scalar_select %p58_p5, %s1920_s13, %s60_s20  }
   0xb   : > { %154 = sbr.rel (%p1647_p7) target bundleno = 86 (0x56), region = 20 }
  0x12   : > { %157 = sbr.rel (!%p69_p3) target bundleno = 86 (0x56), region = 24  ;;  %s159_s23 = sand.u32 (%p69_p3), 1, %s1920_s13  }
  0x13   : > { %s1724_s24 = sshll.u32 (%p69_p3), %s1928_s15, 3  ;;  %s1648_s25 = sshll.u32 (%p69_p3), %s159_s23, 9 }
  0x14   : > { %s2002_s28 = scalar_lea.vmem (%p69_p3), %s2561_s1, %s1724_s24  ;;  %s2007_s29 = scalar_lea.vmem (%p69_p3), [#allocation3], %s1648_s25 }
  0x15   : > { %v321_v0 = vld [vmem:[%s2002_s28] sm:$0xff] (%p69_p3) }
  0x16   : > { %v323_v1 = vld [vmem:[%s2002_s28 + $0x40] sm:$0xff] (%p69_p3)  ;;  %322 = vst [vmem:[%s2007_s29] sm:$0xff] (%p69_p3), %v321_v0 }
  0x17   : > { %v325_v2 = vld [vmem:[%s2002_s28 + $0x80] sm:$0xff] (%p69_p3)  ;;  %324 = vst [vmem:[%s2007_s29 + $0x8] sm:$0xff] (%p69_p3), %v323_v1 }
  0x18   : > { %326 = vst [vmem:[%s2007_s29 + $0x10] sm:$0xff] (%p69_p3), %v325_v2  ;;  %v327_v3 = vld [vmem:[%s2002_s28 + $0xc0] sm:$0xff] (%p69_p3) }
  0x19   : > { %v329_v4 = vld [vmem:[%s2002_s28 + $0x100] sm:$0xff]  ;;  %328 = vst [vmem:[%s2007_s29 + $0x18] sm:$0xff] %v327_v3 }
  0x1a   : > { %v331_v5 = vld [vmem:[%s2002_s28 + $0x140] sm:$0xff]  ;;  %330 = vst [vmem:[%s2007_s29 + $0x20] sm:$0xff] %v329_v4 }
  0x1b   : > { %332 = vst [vmem:[%s2007_s29 + $0x28] sm:$0xff] %v331_v5  ;;  %v333_v6 = vld [vmem:[%s2002_s28 + $0x180] sm:$0xff] }
  0x1c   : > { %v335_v7 = vld [vmem:[%s2002_s28 + $0x1c0] sm:$0xff]  ;;  %334 = vst [vmem:[%s2007_s29 + $0x30] sm:$0xff] %v333_v6 }
  0x1d   : > { %v337_v8 = vld [vmem:[%s2002_s28 + $0x200] sm:$0xff]  ;;  %336 = vst [vmem:[%s2007_s29 + $0x38] sm:$0xff] %v335_v7 }
  0x1e   : > { %338 = vst [vmem:[%s2007_s29 + $0x40] sm:$0xff] %v337_v8  ;;  %v339_v9 = vld [vmem:[%s2002_s28 + $0x240] sm:$0xff] }
  0x1f   : > { %v341_v10 = vld [vmem:[%s2002_s28 + $0x280] sm:$0xff]  ;;  %340 = vst [vmem:[%s2007_s29 + $0x48] sm:$0xff] %v339_v9 }
  0x20   : > { %v343_v11 = vld [vmem:[%s2002_s28 + $0x2c0] sm:$0xff]  ;;  %342 = vst [vmem:[%s2007_s29 + $0x50] sm:$0xff] %v341_v10 }
  0x21   : > { %344 = vst [vmem:[%s2007_s29 + $0x58] sm:$0xff] %v343_v11  ;;  %v345_v12 = vld [vmem:[%s2002_s28 + $0x300] sm:$0xff] }
  0x22   : > { %v347_v13 = vld [vmem:[%s2002_s28 + $0x340] sm:$0xff]  ;;  %346 = vst [vmem:[%s2007_s29 + $0x60] sm:$0xff] %v345_v12 }
  0x23   : > { %v349_v14 = vld [vmem:[%s2002_s28 + $0x380] sm:$0xff]  ;;  %348 = vst [vmem:[%s2007_s29 + $0x68] sm:$0xff] %v347_v13 }
  0x24   : > { %350 = vst [vmem:[%s2007_s29 + $0x70] sm:$0xff] %v349_v14  ;;  %v351_v15 = vld [vmem:[%s2002_s28 + $0x3c0] sm:$0xff] }
  0x25   : > { %v353_v16 = vld [vmem:[%s2002_s28 + $0x400] sm:$0xff]  ;;  %352 = vst [vmem:[%s2007_s29 + $0x78] sm:$0xff] %v351_v15 }
  0x26   : > { %v355_v17 = vld [vmem:[%s2002_s28 + $0x440] sm:$0xff]  ;;  %354 = vst [vmem:[%s2007_s29 + $0x80] sm:$0xff] %v353_v16 }
  0x27   : > { %356 = vst [vmem:[%s2007_s29 + $0x88] sm:$0xff] %v355_v17  ;;  %v357_v18 = vld [vmem:[%s2002_s28 + $0x480] sm:$0xff] }
  0x28   : > { %v359_v19 = vld [vmem:[%s2002_s28 + $0x4c0] sm:$0xff]  ;;  %358 = vst [vmem:[%s2007_s29 + $0x90] sm:$0xff] %v357_v18 }
  0x29   : > { %v361_v20 = vld [vmem:[%s2002_s28 + $0x500] sm:$0xff]  ;;  %360 = vst [vmem:[%s2007_s29 + $0x98] sm:$0xff] %v359_v19 }
  0x2a   : > { %362 = vst [vmem:[%s2007_s29 + $0xa0] sm:$0xff] %v361_v20  ;;  %v363_v21 = vld [vmem:[%s2002_s28 + $0x540] sm:$0xff] }
  0x2b   : > { %v365_v22 = vld [vmem:[%s2002_s28 + $0x580] sm:$0xff]  ;;  %364 = vst [vmem:[%s2007_s29 + $0xa8] sm:$0xff] %v363_v21 }
  0x2c   : > { %v367_v23 = vld [vmem:[%s2002_s28 + $0x5c0] sm:$0xff]  ;;  %366 = vst [vmem:[%s2007_s29 + $0xb0] sm:$0xff] %v365_v22 }
  0x2d   : > { %368 = vst [vmem:[%s2007_s29 + $0xb8] sm:$0xff] %v367_v23  ;;  %v369_v24 = vld [vmem:[%s2002_s28 + $0x600] sm:$0xff] }
  0x2e   : > { %v371_v25 = vld [vmem:[%s2002_s28 + $0x640] sm:$0xff]  ;;  %370 = vst [vmem:[%s2007_s29 + $0xc0] sm:$0xff] %v369_v24 }
  0x2f   : > { %v373_v26 = vld [vmem:[%s2002_s28 + $0x680] sm:$0xff]  ;;  %372 = vst [vmem:[%s2007_s29 + $0xc8] sm:$0xff] %v371_v25 }
  0x30   : > { %374 = vst [vmem:[%s2007_s29 + $0xd0] sm:$0xff] %v373_v26  ;;  %v375_v27 = vld [vmem:[%s2002_s28 + $0x6c0] sm:$0xff] }
  0x31   : > { %v377_v28 = vld [vmem:[%s2002_s28 + $0x700] sm:$0xff]  ;;  %376 = vst [vmem:[%s2007_s29 + $0xd8] sm:$0xff] %v375_v27 }
  0x32   : > { %v379_v29 = vld [vmem:[%s2002_s28 + $0x740] sm:$0xff]  ;;  %378 = vst [vmem:[%s2007_s29 + $0xe0] sm:$0xff] %v377_v28 }
  0x33   : > { %380 = vst [vmem:[%s2007_s29 + $0xe8] sm:$0xff] %v379_v29  ;;  %v381_v30 = vld [vmem:[%s2002_s28 + $0x780] sm:$0xff] }
  0x34   : > { %v383_v31 = vld [vmem:[%s2002_s28 + $0x7c0] sm:$0xff]  ;;  %382 = vst [vmem:[%s2007_s29 + $0xf0] sm:$0xff] %v381_v30 }
  0x35   : > { %v385_v32 = vld [vmem:[%s2002_s28 + $0x800] sm:$0xff]  ;;  %384 = vst [vmem:[%s2007_s29 + $0xf8] sm:$0xff] %v383_v31 }
  0x36   : > { %386 = vst [vmem:[%s2007_s29 + $0x100] sm:$0xff] %v385_v32  ;;  %v387_v33 = vld [vmem:[%s2002_s28 + $0x840] sm:$0xff] }
  0x37   : > { %v389_v34 = vld [vmem:[%s2002_s28 + $0x880] sm:$0xff]  ;;  %388 = vst [vmem:[%s2007_s29 + $0x108] sm:$0xff] %v387_v33 }
  0x38   : > { %v391_v35 = vld [vmem:[%s2002_s28 + $0x8c0] sm:$0xff]  ;;  %390 = vst [vmem:[%s2007_s29 + $0x110] sm:$0xff] %v389_v34 }
  0x39   : > { %392 = vst [vmem:[%s2007_s29 + $0x118] sm:$0xff] %v391_v35  ;;  %v393_v36 = vld [vmem:[%s2002_s28 + $0x900] sm:$0xff] }
  0x3a   : > { %v395_v37 = vld [vmem:[%s2002_s28 + $0x940] sm:$0xff]  ;;  %394 = vst [vmem:[%s2007_s29 + $0x120] sm:$0xff] %v393_v36 }
  0x3b   : > { %v397_v38 = vld [vmem:[%s2002_s28 + $0x980] sm:$0xff]  ;;  %396 = vst [vmem:[%s2007_s29 + $0x128] sm:$0xff] %v395_v37 }
  0x3c   : > { %398 = vst [vmem:[%s2007_s29 + $0x130] sm:$0xff] %v397_v38  ;;  %v399_v39 = vld [vmem:[%s2002_s28 + $0x9c0] sm:$0xff] }
  0x3d   : > { %v401_v40 = vld [vmem:[%s2002_s28 + $0xa00] sm:$0xff]  ;;  %400 = vst [vmem:[%s2007_s29 + $0x138] sm:$0xff] %v399_v39 }
  0x3e   : > { %v403_v41 = vld [vmem:[%s2002_s28 + $0xa40] sm:$0xff]  ;;  %402 = vst [vmem:[%s2007_s29 + $0x140] sm:$0xff] %v401_v40 }
  0x3f   : > { %404 = vst [vmem:[%s2007_s29 + $0x148] sm:$0xff] %v403_v41  ;;  %v405_v42 = vld [vmem:[%s2002_s28 + $0xa80] sm:$0xff] }
  0x40   : > { %v407_v43 = vld [vmem:[%s2002_s28 + $0xac0] sm:$0xff]  ;;  %406 = vst [vmem:[%s2007_s29 + $0x150] sm:$0xff] %v405_v42 }
  0x41   : > { %v409_v44 = vld [vmem:[%s2002_s28 + $0xb00] sm:$0xff]  ;;  %408 = vst [vmem:[%s2007_s29 + $0x158] sm:$0xff] %v407_v43 }
  0x42   : > { %410 = vst [vmem:[%s2007_s29 + $0x160] sm:$0xff] %v409_v44  ;;  %v411_v45 = vld [vmem:[%s2002_s28 + $0xb40] sm:$0xff] }
  0x43   : > { %v413_v46 = vld [vmem:[%s2002_s28 + $0xb80] sm:$0xff]  ;;  %412 = vst [vmem:[%s2007_s29 + $0x168] sm:$0xff] %v411_v45 }
  0x44   : > { %v415_v47 = vld [vmem:[%s2002_s28 + $0xbc0] sm:$0xff]  ;;  %414 = vst [vmem:[%s2007_s29 + $0x170] sm:$0xff] %v413_v46 }
  0x45   : > { %416 = vst [vmem:[%s2007_s29 + $0x178] sm:$0xff] %v415_v47  ;;  %v417_v48 = vld [vmem:[%s2002_s28 + $0xc00] sm:$0xff] }
  0x46   : > { %v419_v49 = vld [vmem:[%s2002_s28 + $0xc40] sm:$0xff]  ;;  %418 = vst [vmem:[%s2007_s29 + $0x180] sm:$0xff] %v417_v48 }
  0x47   : > { %v421_v50 = vld [vmem:[%s2002_s28 + $0xc80] sm:$0xff]  ;;  %420 = vst [vmem:[%s2007_s29 + $0x188] sm:$0xff] %v419_v49 }
  0x48   : > { %422 = vst [vmem:[%s2007_s29 + $0x190] sm:$0xff] %v421_v50  ;;  %v423_v51 = vld [vmem:[%s2002_s28 + $0xcc0] sm:$0xff] }
  0x49   : > { %v425_v52 = vld [vmem:[%s2002_s28 + $0xd00] sm:$0xff]  ;;  %424 = vst [vmem:[%s2007_s29 + $0x198] sm:$0xff] %v423_v51 }
  0x4a   : > { %v427_v53 = vld [vmem:[%s2002_s28 + $0xd40] sm:$0xff]  ;;  %426 = vst [vmem:[%s2007_s29 + $0x1a0] sm:$0xff] %v425_v52 }
  0x4b   : > { %428 = vst [vmem:[%s2007_s29 + $0x1a8] sm:$0xff] %v427_v53  ;;  %v429_v54 = vld [vmem:[%s2002_s28 + $0xd80] sm:$0xff] }
  0x4c   : > { %v431_v55 = vld [vmem:[%s2002_s28 + $0xdc0] sm:$0xff]  ;;  %430 = vst [vmem:[%s2007_s29 + $0x1b0] sm:$0xff] %v429_v54 }
  0x4d   : > { %v433_v56 = vld [vmem:[%s2002_s28 + $0xe00] sm:$0xff]  ;;  %432 = vst [vmem:[%s2007_s29 + $0x1b8] sm:$0xff] %v431_v55 }
  0x4e   : > { %434 = vst [vmem:[%s2007_s29 + $0x1c0] sm:$0xff] %v433_v56  ;;  %v435_v57 = vld [vmem:[%s2002_s28 + $0xe40] sm:$0xff] }
  0x4f   : > { %v437_v58 = vld [vmem:[%s2002_s28 + $0xe80] sm:$0xff]  ;;  %436 = vst [vmem:[%s2007_s29 + $0x1c8] sm:$0xff] %v435_v57 }
  0x50   : > { %v439_v59 = vld [vmem:[%s2002_s28 + $0xec0] sm:$0xff]  ;;  %438 = vst [vmem:[%s2007_s29 + $0x1d0] sm:$0xff] %v437_v58 }
  0x51   : > { %440 = vst [vmem:[%s2007_s29 + $0x1d8] sm:$0xff] %v439_v59  ;;  %v441_v60 = vld [vmem:[%s2002_s28 + $0xf00] sm:$0xff] }
  0x52   : > { %v443_v61 = vld [vmem:[%s2002_s28 + $0xf40] sm:$0xff]  ;;  %442 = vst [vmem:[%s2007_s29 + $0x1e0] sm:$0xff] %v441_v60 }
  0x53   : > { %v445_v62 = vld [vmem:[%s2002_s28 + $0xf80] sm:$0xff]  ;;  %444 = vst [vmem:[%s2007_s29 + $0x1e8] sm:$0xff] %v443_v61 }
  0x54   : > { %446 = vst [vmem:[%s2007_s29 + $0x1f0] sm:$0xff] %v445_v62  ;;  %v447_v63 = vld [vmem:[%s2002_s28 + $0xfc0] sm:$0xff] }
  0x55   : > { %448 = vst [vmem:[%s2007_s29 + $0x1f8] sm:$0xff] %v447_v63 }
  0x56 PF: > { %p1651_p8 = scmp.ge.s32.totalorder %s1932_s16, 1  ;;  %p461_p9 = scmp.lt.s32.totalorder %s1932_s16, 9 }
  0x58   : > { %p462_p10 = pnand %p1651_p8, %p461_p9 }
  0x59   : > { %s468_s30 = sand.u32 (!%p462_p10), 1, %s1916_s12   ;;  %v582_v0 = vld [vmem:[%s2560_s0 + $0x8] sm:$0xff] (!%p462_p10)  ;;  %v584_v2 = vld [vmem:[%s2560_s0 + $0x18] sm:$0xff] (!%p462_p10)  ;;  %s1654_s8 = sshll.u32 (!%p462_p10), %s1924_s14, 1 }
  0x5a   : > { %465 = sbr.rel (%p462_p10) target bundleno = 442 (0x1ba), region = 66  ;;  %v586_v1 = vld [vmem:[%s2560_s0 + $0x28] sm:$0xff] (!%p462_p10)  ;;  %s1652_s10 = sshll.u32 (!%p462_p10), %s468_s30, 9  ;;  %v588_v4 = vld [vmem:[%s2560_s0 + $0x38] sm:$0xff] (!%p462_p10) }
  0x5b   : > { %v646_v3 = vpack.c.bf16 (!%p462_p10), %v586_v1, %v582_v0  ;;  %v648_v5 = vpack.c.bf16 (!%p462_p10), %v588_v4, %v584_v2  ;;  %s2151_s19 = scalar_lea.vmem (!%p462_p10), [#allocation3], %s1652_s10  ;;  %v581_v4 = vld [vmem:[%s2560_s0] sm:$0xff] (!%p462_p10)  ;;  %p508_p11 = scmp.lt.s32.totalorder (!%p462_p10), %s1654_s8, 15 }
  0x5c   : > { %v1798_v6 = vld [vmem:[%s2151_s19 + $0x4] ss:$8 sps:$4 sm:$0xff] (!%p462_p10)   ;;  %v1802_v8 = vld [vmem:[%s2151_s19] ss:$8 sps:$4 sm:$0xff] (!%p462_p10)   ;;  %v1804_v10 = vld [vmem:[%s2151_s19 + $0x14] ss:$8 sps:$4 sm:$0xff] (!%p462_p10)  }
  0x5d   : > { %1093 = vmatprep.mubr.bf16.mxu1 (!%p462_p10), %v646_v3  ;;  %v1800_v7 = vld [vmem:[%s2151_s19 + $0x104] ss:$8 sps:$4 sm:$0xff] (!%p462_p10)   ;;  %1206 = vmatprep.mubr.bf16.mxu0 (!%p462_p10), %v648_v5  ;;  %v1803_v9 = vld [vmem:[%s2151_s19 + $0x100] ss:$8 sps:$4 sm:$0xff] (!%p462_p10)   ;;  %v1806_v11 = vld [vmem:[%s2151_s19 + $0x114] ss:$8 sps:$4 sm:$0xff] (!%p462_p10)  }
  0x5e   : > { %1061 = vmatprep.subr.bf16.mxu1 (!%p462_p10), %v1798_v6  ;;  %1174 = vmatprep.subr.bf16.mxu0 (!%p462_p10), %v1800_v7  ;;  %v1808_v12 = vld [vmem:[%s2151_s19 + $0x10] ss:$8 sps:$4 sm:$0xff] (!%p462_p10)   ;;  %v1810_v14 = vld [vmem:[%s2151_s19 + $0x24] ss:$8 sps:$4 sm:$0xff] (!%p462_p10)   ;;  %v1814_v16 = vld [vmem:[%s2151_s19 + $0x20] ss:$8 sps:$4 sm:$0xff] (!%p462_p10)  }
  0x5f   : > { %1062 = vmatpush1.bf16.msra.mxu1 (!%p462_p10), %v1802_v8  ;;  %1175 = vmatpush1.bf16.msra.mxu0 (!%p462_p10), %v1803_v9  ;;  %v1809_v13 = vld [vmem:[%s2151_s19 + $0x110] ss:$8 sps:$4 sm:$0xff] (!%p462_p10)   ;;  %v1812_v15 = vld [vmem:[%s2151_s19 + $0x124] ss:$8 sps:$4 sm:$0xff] (!%p462_p10)   ;;  %v1815_v17 = vld [vmem:[%s2151_s19 + $0x120] ss:$8 sps:$4 sm:$0xff] (!%p462_p10)  }
  0x60   : > { %1063 = vmatprep.subr.bf16.mxu1 (!%p462_p10), %v1804_v10  ;;  %1176 = vmatprep.subr.bf16.mxu0 (!%p462_p10), %v1806_v11  ;;  %v1816_v18 = vld [vmem:[%s2151_s19 + $0x34] ss:$8 sps:$4 sm:$0xff] (!%p462_p10)   ;;  %v1820_v20 = vld [vmem:[%s2151_s19 + $0x30] ss:$8 sps:$4 sm:$0xff] (!%p462_p10)   ;;  %v1822_v22 = vld [vmem:[%s2151_s19 + $0x44] ss:$8 sps:$4 sm:$0xff] (!%p462_p10)  }
  0x61   : > { %v1818_v19 = vld [vmem:[%s2151_s19 + $0x134] ss:$8 sps:$4 sm:$0xff]   ;;  %v1821_v21 = vld [vmem:[%s2151_s19 + $0x130] ss:$8 sps:$4 sm:$0xff]   ;;  %v1824_v23 = vld [vmem:[%s2151_s19 + $0x144] ss:$8 sps:$4 sm:$0xff]  }
  0x62   : > { %v1826_v24 = vld [vmem:[%s2151_s19 + $0x40] ss:$8 sps:$4 sm:$0xff]   ;;  %v1828_v26 = vld [vmem:[%s2151_s19 + $0x54] ss:$8 sps:$4 sm:$0xff]   ;;  %v1832_v28 = vld [vmem:[%s2151_s19 + $0x50] ss:$8 sps:$4 sm:$0xff]  }
  0x63   : > { %1064 = vmatpush1.bf16.msra.mxu1 %v1808_v12  ;;  %1177 = vmatpush1.bf16.msra.mxu0 %v1809_v13  ;;  %v1827_v25 = vld [vmem:[%s2151_s19 + $0x140] ss:$8 sps:$4 sm:$0xff]   ;;  %v1830_v27 = vld [vmem:[%s2151_s19 + $0x154] ss:$8 sps:$4 sm:$0xff]   ;;  %v1833_v29 = vld [vmem:[%s2151_s19 + $0x150] ss:$8 sps:$4 sm:$0xff]  }
  0x64   : > { %1065 = vmatprep.subr.bf16.mxu1 %v1810_v14  ;;  %1178 = vmatprep.subr.bf16.mxu0 %v1812_v15  ;;  %v1834_v30 = vld [vmem:[%s2151_s19 + $0x64] ss:$8 sps:$4 sm:$0xff]   ;;  %v1838_v32 = vld [vmem:[%s2151_s19 + $0x60] ss:$8 sps:$4 sm:$0xff]   ;;  %v1840_v34 = vld [vmem:[%s2151_s19 + $0x74] ss:$8 sps:$4 sm:$0xff]  }
  0x65   : > { %v1836_v31 = vld [vmem:[%s2151_s19 + $0x164] ss:$8 sps:$4 sm:$0xff]   ;;  %v1839_v33 = vld [vmem:[%s2151_s19 + $0x160] ss:$8 sps:$4 sm:$0xff]   ;;  %v1842_v35 = vld [vmem:[%s2151_s19 + $0x174] ss:$8 sps:$4 sm:$0xff]  }
  0x66   : > { %v1844_v36 = vld [vmem:[%s2151_s19 + $0x70] ss:$8 sps:$4 sm:$0xff]   ;;  %v1846_v38 = vld [vmem:[%s2151_s19 + $0x84] ss:$8 sps:$4 sm:$0xff]   ;;  %v1850_v40 = vld [vmem:[%s2151_s19 + $0x80] ss:$8 sps:$4 sm:$0xff]  }
  0x67   : > { %1066 = vmatpush1.bf16.msra.mxu1 %v1814_v16  ;;  %1179 = vmatpush1.bf16.msra.mxu0 %v1815_v17  ;;  %v1845_v37 = vld [vmem:[%s2151_s19 + $0x170] ss:$8 sps:$4 sm:$0xff]   ;;  %v1848_v39 = vld [vmem:[%s2151_s19 + $0x184] ss:$8 sps:$4 sm:$0xff]   ;;  %v1851_v41 = vld [vmem:[%s2151_s19 + $0x180] ss:$8 sps:$4 sm:$0xff]  }
  0x68   : > { %1067 = vmatprep.subr.bf16.mxu1 %v1816_v18  ;;  %1180 = vmatprep.subr.bf16.mxu0 %v1818_v19  ;;  %v1852_v42 = vld [vmem:[%s2151_s19 + $0x94] ss:$8 sps:$4 sm:$0xff]   ;;  %v1856_v44 = vld [vmem:[%s2151_s19 + $0x90] ss:$8 sps:$4 sm:$0xff]   ;;  %v1858_v46 = vld [vmem:[%s2151_s19 + $0xa4] ss:$8 sps:$4 sm:$0xff]  }
  0x69   : > { %v1854_v43 = vld [vmem:[%s2151_s19 + $0x194] ss:$8 sps:$4 sm:$0xff]   ;;  %v1857_v45 = vld [vmem:[%s2151_s19 + $0x190] ss:$8 sps:$4 sm:$0xff]   ;;  %v1860_v47 = vld [vmem:[%s2151_s19 + $0x1a4] ss:$8 sps:$4 sm:$0xff]  }
  0x6a   : > { %v1862_v48 = vld [vmem:[%s2151_s19 + $0xa0] ss:$8 sps:$4 sm:$0xff]   ;;  %v1864_v50 = vld [vmem:[%s2151_s19 + $0xb4] ss:$8 sps:$4 sm:$0xff]   ;;  %v1868_v52 = vld [vmem:[%s2151_s19 + $0xb0] ss:$8 sps:$4 sm:$0xff]  }
  0x6b   : > { %1068 = vmatpush1.bf16.msra.mxu1 %v1820_v20  ;;  %1181 = vmatpush1.bf16.msra.mxu0 %v1821_v21  ;;  %v1863_v49 = vld [vmem:[%s2151_s19 + $0x1a0] ss:$8 sps:$4 sm:$0xff]   ;;  %v1866_v51 = vld [vmem:[%s2151_s19 + $0x1b4] ss:$8 sps:$4 sm:$0xff]   ;;  %v1869_v53 = vld [vmem:[%s2151_s19 + $0x1b0] ss:$8 sps:$4 sm:$0xff]  }
  0x6c   : > { %1069 = vmatprep.subr.bf16.mxu1 %v1822_v22  ;;  %1182 = vmatprep.subr.bf16.mxu0 %v1824_v23  ;;  %v1870_v54 = vld [vmem:[%s2151_s19 + $0xc4] ss:$8 sps:$4 sm:$0xff]   ;;  %v1874_v56 = vld [vmem:[%s2151_s19 + $0xc0] ss:$8 sps:$4 sm:$0xff]   ;;  %v1876_v58 = vld [vmem:[%s2151_s19 + $0xd4] ss:$8 sps:$4 sm:$0xff]  }
  0x6d   : > { %v1872_v55 = vld [vmem:[%s2151_s19 + $0x1c4] ss:$8 sps:$4 sm:$0xff]   ;;  %v1875_v57 = vld [vmem:[%s2151_s19 + $0x1c0] ss:$8 sps:$4 sm:$0xff]   ;;  %v1878_v59 = vld [vmem:[%s2151_s19 + $0x1d4] ss:$8 sps:$4 sm:$0xff]  }
  0x6e   : > { %v1880_v60 = vld [vmem:[%s2151_s19 + $0xd0] ss:$8 sps:$4 sm:$0xff]   ;;  %v1882_v62 = vld [vmem:[%s2151_s19 + $0xe4] ss:$8 sps:$4 sm:$0xff]   ;;  %v1886_v0 = vld [vmem:[%s2151_s19 + $0xe0] ss:$8 sps:$4 sm:$0xff]  }
  0x6f   : > { %1070 = vmatpush1.bf16.msra.mxu1 %v1826_v24  ;;  %1183 = vmatpush1.bf16.msra.mxu0 %v1827_v25  ;;  %v1881_v61 = vld [vmem:[%s2151_s19 + $0x1d0] ss:$8 sps:$4 sm:$0xff]   ;;  %v1884_v63 = vld [vmem:[%s2151_s19 + $0x1e4] ss:$8 sps:$4 sm:$0xff]   ;;  %v1887_v1 = vld [vmem:[%s2151_s19 + $0x1e0] ss:$8 sps:$4 sm:$0xff]  }
  0x70   : > { %1071 = vmatprep.subr.bf16.mxu1 %v1828_v26  ;;  %1184 = vmatprep.subr.bf16.mxu0 %v1830_v27  ;;  %v1888_v2 = vld [vmem:[%s2151_s19 + $0xf4] ss:$8 sps:$4 sm:$0xff]   ;;  %v585_v5 = vld [vmem:[%s2560_s0 + $0x20] sm:$0xff]  ;;  %v1892_v8 = vld [vmem:[%s2151_s19 + $0xf0] ss:$8 sps:$4 sm:$0xff]   ;;  %s2572_s8 = smov (!%p508_p11, %s1654_s8), 15 }
  0x71   : > { %v1890_v3 = vld [vmem:[%s2151_s19 + $0x1f4] ss:$8 sps:$4 sm:$0xff]   ;;  %v1893_v9 = vld [vmem:[%s2151_s19 + $0x1f0] ss:$8 sps:$4 sm:$0xff]   ;;  %v590_v10 = vld [vmem:[%s2560_s0 + $0x48] sm:$0xff]  ;;  %v645_v14 = vpack.c.bf16 %v585_v5, %v581_v4  ;;  %s510_s11 = scalar_lea.vmem %s2562_s2, %s2572_s8  ;;  %s1653_s18 = sshll.u32 %s468_s30, 8 }
  0x72   : > { %v583_v6 = vld [vmem:[%s2560_s0 + $0x10] sm:$0xff]  ;;  %v594_v11 = vld [vmem:[%s2560_s0 + $0x68] sm:$0xff]  ;;  %v592_v12 = vld [vmem:[%s2560_s0 + $0x58] sm:$0xff]  ;;  %s2409_s12 = scalar_lea.vmem [#allocation4], %s1653_s18  ;;  %s1725_s30 = sshll.u32 (%p1989_p6), %s1924_s14, 4 }
  0x73   : > { %1072 = vmatpush1.bf16.msra.mxu1 %v1832_v28  ;;  %1185 = vmatpush1.bf16.msra.mxu0 %v1833_v29  ;;  %v587_v7 = vld [vmem:[%s2560_s0 + $0x30] sm:$0xff]  ;;  %v596_v13 = vld [vmem:[%s2560_s0 + $0x78] sm:$0xff]  ;;  %v650_v16 = vpack.c.bf16 %v594_v11, %v590_v10  ;;  %v589_v18 = vld [vmem:[%s2560_s0 + $0x40] sm:$0xff]  ;;  %s2482_s23 = scalar_lea.vmem (%p1989_p6), %s2563_s3, %s1725_s30 }
  0x74   : > { %1073 = vmatprep.subr.bf16.mxu1 %v1834_v30  ;;  %1186 = vmatprep.subr.bf16.mxu0 %v1836_v31  ;;  %v647_v15 = vpack.c.bf16 %v587_v7, %v583_v6  ;;  %v652_v17 = vpack.c.bf16 %v596_v13, %v592_v12  ;;  %v593_v19 = vld [vmem:[%s2560_s0 + $0x60] sm:$0xff]  ;;  %v591_v20 = vld [vmem:[%s2560_s0 + $0x50] sm:$0xff]  ;;  %v598_v22 = vld [vmem:[%s2560_s0 + $0x88] sm:$0xff] }
  0x75   : > { %v595_v21 = vld [vmem:[%s2560_s0 + $0x70] sm:$0xff]  ;;  %v602_v23 = vld [vmem:[%s2560_s0 + $0xa8] sm:$0xff]  ;;  %v600_v24 = vld [vmem:[%s2560_s0 + $0x98] sm:$0xff]  ;;  %v649_v26 = vpack.c.bf16 %v593_v19, %v589_v18 }
  0x76   : > { %v604_v25 = vld [vmem:[%s2560_s0 + $0xb8] sm:$0xff]  ;;  %v651_v27 = vpack.c.bf16 %v595_v21, %v591_v20  ;;  %v654_v28 = vpack.c.bf16 %v602_v23, %v598_v22  ;;  %v597_v30 = vld [vmem:[%s2560_s0 + $0x80] sm:$0xff]  ;;  %v623_v4 = vld [vmem:[%s2560_s0 + $0x150] sm:$0xff] }
  0x77   : > { %1074 = vmatpush1.bf16.msra.mxu1 %v1838_v32  ;;  %1187 = vmatpush1.bf16.msra.mxu0 %v1839_v33  ;;  %v656_v29 = vpack.c.bf16 %v604_v25, %v600_v24  ;;  %v601_v31 = vld [vmem:[%s2560_s0 + $0xa0] sm:$0xff]  ;;  %v599_v32 = vld [vmem:[%s2560_s0 + $0x90] sm:$0xff]  ;;  %v630_v6 = vld [vmem:[%s2560_s0 + $0x188] sm:$0xff] }
  0x78   : > { %1075 = vmatprep.subr.bf16.mxu1 %v1840_v34  ;;  %1188 = vmatprep.subr.bf16.mxu0 %v1842_v35  ;;  %v603_v33 = vld [vmem:[%s2560_s0 + $0xb0] sm:$0xff]  ;;  %v606_v34 = vld [vmem:[%s2560_s0 + $0xc8] sm:$0xff]  ;;  %v640_v20 = vld [vmem:[%s2560_s0 + $0x1d8] sm:$0xff] }
  0x79   : > { %v610_v35 = vld [vmem:[%s2560_s0 + $0xe8] sm:$0xff]  ;;  %v627_v5 = vld [vmem:[%s2560_s0 + $0x170] sm:$0xff]  ;;  %v644_v21 = vld [vmem:[%s2560_s0 + $0x1f8] sm:$0xff] }
  0x7a   : > { %v634_v7 = vld [vmem:[%s2560_s0 + $0x1a8] sm:$0xff]  ;;  %v667_v11 = vpack.c.bf16 %v627_v5, %v623_v4  ;;  %v676_v25 = vpack.c.bf16 %v644_v21, %v640_v20 }
  0x7b   : > { %1076 = vmatpush1.bf16.msra.mxu1 %v1844_v36  ;;  %1189 = vmatpush1.bf16.msra.mxu0 %v1845_v37  ;;  %v608_v36 = vld [vmem:[%s2560_s0 + $0xd8] sm:$0xff]  ;;  %v670_v12 = vpack.c.bf16 %v634_v7, %v630_v6  ;;  %v638_v18 = vld [vmem:[%s2560_s0 + $0x1c8] sm:$0xff] }
  0x7c   : > { %1077 = vmatprep.subr.bf16.mxu1 %v1846_v38  ;;  %1190 = vmatprep.subr.bf16.mxu0 %v1848_v39  ;;  %v612_v37 = vld [vmem:[%s2560_s0 + $0xf8] sm:$0xff]  ;;  %v653_v38 = vpack.c.bf16 %v601_v31, %v597_v30  ;;  %v655_v39 = vpack.c.bf16 %v603_v33, %v599_v32  ;;  %v642_v19 = vld [vmem:[%s2560_s0 + $0x1e8] sm:$0xff]  ;;  %v1388_v32 = vlaneseq }
  0x7d   : > { %v674_v24 = vpack.c.bf16 %v642_v19, %v638_v18 }
  0x7e   : > { %v1389_v33 = vshrl.u32 %v1388_v32, 7 }
  0x7f   : > { %1078 = vmatpush1.bf16.msra.mxu1 %v1850_v40  ;;  %1191 = vmatpush1.bf16.msra.mxu0 %v1851_v41  ;;  %v658_v40 = vpack.c.bf16 %v610_v35, %v606_v34  ;;  %v660_v41 = vpack.c.bf16 %v612_v37, %v608_v36  ;;  %v1386_v35 = vld [vmem:[%s510_s11] sm:$0x3] }
  0x80   : > { %1079 = vmatprep.subr.bf16.mxu1 %v1852_v42  ;;  %1192 = vmatprep.subr.bf16.mxu0 %v1854_v43  ;;  %v605_v42 = vld [vmem:[%s2560_s0 + $0xc0] sm:$0xff]  ;;  %v1390_v34 = vsub.s32 0, %v1389_v33  ;;  %v1394_v36 = vsub.s32 1, %v1389_v33 }
  0x81   : > { %v609_v43 = vld [vmem:[%s2560_s0 + $0xe0] sm:$0xff] }
  0x82   : > { %v2403_v37 = vrot.slane %v1386_v35, %v1390_v34 }
  0x83   : > { %1080 = vmatpush1.bf16.msra.mxu1 %v1856_v44  ;;  %1193 = vmatpush1.bf16.msra.mxu0 %v1857_v45  ;;  %v607_v44 = vld [vmem:[%s2560_s0 + $0xd0] sm:$0xff] }
  0x84   : > { %1081 = vmatprep.subr.bf16.mxu1 %v1858_v46  ;;  %1194 = vmatprep.subr.bf16.mxu0 %v1860_v47  ;;  %v611_v45 = vld [vmem:[%s2560_s0 + $0xf0] sm:$0xff]  ;;  %v614_v46 = vld [vmem:[%s2560_s0 + $0x108] sm:$0xff] }
  0x85   : > { %v618_v47 = vld [vmem:[%s2560_s0 + $0x128] sm:$0xff] }
  0x87   : > { %1082 = vmatpush1.bf16.msra.mxu1 %v1862_v48  ;;  %1195 = vmatpush1.bf16.msra.mxu0 %v1863_v49  ;;  %v616_v48 = vld [vmem:[%s2560_s0 + $0x118] sm:$0xff] }
  0x88   : > { %1083 = vmatprep.subr.bf16.mxu1 %v1864_v50  ;;  %1196 = vmatprep.subr.bf16.mxu0 %v1866_v51  ;;  %v620_v49 = vld [vmem:[%s2560_s0 + $0x138] sm:$0xff]  ;;  %v657_v50 = vpack.c.bf16 %v609_v43, %v605_v42  ;;  %v659_v51 = vpack.c.bf16 %v611_v45, %v607_v44 }
  0x8b   : > { %1084 = vmatpush1.bf16.msra.mxu1 %v1868_v52  ;;  %1197 = vmatpush1.bf16.msra.mxu0 %v1869_v53  ;;  %v662_v52 = vpack.c.bf16 %v618_v47, %v614_v46  ;;  %v664_v53 = vpack.c.bf16 %v620_v49, %v616_v48 }
  0x8c   : > { %1085 = vmatprep.subr.bf16.mxu1 %v1870_v54  ;;  %1198 = vmatprep.subr.bf16.mxu0 %v1872_v55  ;;  %v613_v54 = vld [vmem:[%s2560_s0 + $0x100] sm:$0xff] }
  0x8d   : > { %v617_v55 = vld [vmem:[%s2560_s0 + $0x120] sm:$0xff] }
  0x8f   : > { %1086 = vmatpush1.bf16.msra.mxu1 %v1874_v56  ;;  %1199 = vmatpush1.bf16.msra.mxu0 %v1875_v57  ;;  %v615_v56 = vld [vmem:[%s2560_s0 + $0x110] sm:$0xff] }
  0x90   : > { %1087 = vmatprep.subr.bf16.mxu1 %v1876_v58  ;;  %1200 = vmatprep.subr.bf16.mxu0 %v1878_v59  ;;  %v619_v57 = vld [vmem:[%s2560_s0 + $0x130] sm:$0xff]  ;;  %v622_v58 = vld [vmem:[%s2560_s0 + $0x148] sm:$0xff] }
  0x91   : > { %v626_v59 = vld [vmem:[%s2560_s0 + $0x168] sm:$0xff] }
  0x93   : > { %1088 = vmatpush1.bf16.msra.mxu1 %v1880_v60  ;;  %1201 = vmatpush1.bf16.msra.mxu0 %v1881_v61  ;;  %v624_v60 = vld [vmem:[%s2560_s0 + $0x158] sm:$0xff] }
  0x94   : > { %1089 = vmatprep.subr.bf16.mxu1 %v1882_v62  ;;  %1202 = vmatprep.subr.bf16.mxu0 %v1884_v63  ;;  %v628_v61 = vld [vmem:[%s2560_s0 + $0x178] sm:$0xff]  ;;  %v661_v62 = vpack.c.bf16 %v617_v55, %v613_v54  ;;  %v663_v63 = vpack.c.bf16 %v619_v57, %v615_v56 }
  0x97   : > { %1090 = vmatpush1.bf16.msra.mxu1 %v1886_v0  ;;  %1203 = vmatpush1.bf16.msra.mxu0 %v1887_v1  ;;  %v666_v0 = vpack.c.bf16 %v626_v59, %v622_v58  ;;  %v668_v1 = vpack.c.bf16 %v628_v61, %v624_v60 }
  0x98   : > { %1091 = vmatprep.subr.bf16.mxu1 %v1888_v2  ;;  %1204 = vmatprep.subr.bf16.mxu0 %v1890_v3  ;;  %v621_v2 = vld [vmem:[%s2560_s0 + $0x140] sm:$0xff] }
  0x99   : > { %v625_v3 = vld [vmem:[%s2560_s0 + $0x160] sm:$0xff] }
  0x9a   : > { %v665_v10 = vpack.c.bf16 %v625_v3, %v621_v2 }
  0x9b   : > { %1092 = vmatpush1.bf16.msra.mxu1 %v1892_v8  ;;  %1205 = vmatpush1.bf16.msra.mxu0 %v1893_v9  ;;  %v632_v8 = vld [vmem:[%s2560_s0 + $0x198] sm:$0xff] }
  0x9c   : > { %v636_v9 = vld [vmem:[%s2560_s0 + $0x1b8] sm:$0xff] }
  0x9d   : > { %v672_v13 = vpack.c.bf16 %v636_v9, %v632_v8 }
  0x9e   : > { %1094 = vmatmul.mubr.bf16.vlgmr.msra.gmra.mrb[0].mxu1 %v645_v14  ;;  %1207 = vmatmul.mubr.bf16.vlgmr.msra.gmra.mrb[0].mxu0 %v647_v15  ;;  %v629_v14 = vld [vmem:[%s2560_s0 + $0x180] sm:$0xff] }
  0x9f   : > { %1103 = vmatprep.mubr.bf16.mxu1 %v650_v16  ;;  %1216 = vmatprep.mubr.bf16.mxu0 %v652_v17  ;;  %v633_v15 = vld [vmem:[%s2560_s0 + $0x1a0] sm:$0xff]  ;;  %v631_v16 = vld [vmem:[%s2560_s0 + $0x190] sm:$0xff] }
  0xa0   : > { %v635_v17 = vld [vmem:[%s2560_s0 + $0x1b0] sm:$0xff]  ;;  %v669_v22 = vpack.c.bf16 %v633_v15, %v629_v14 }
  0xa1   : > { %v671_v23 = vpack.c.bf16 %v635_v17, %v631_v16 }
  0xa6   : > { %1104 = vmatmul.mubr.bf16.gmra.mrb[4].mxu1 %v649_v26  ;;  %1217 = vmatmul.mubr.bf16.gmra.mrb[4].mxu0 %v651_v27  ;;  %v637_v26 = vld [vmem:[%s2560_s0 + $0x1c0] sm:$0xff] }
  0xa7   : > { %1113 = vmatprep.mubr.bf16.mxu1 %v654_v28  ;;  %1226 = vmatprep.mubr.bf16.mxu0 %v656_v29  ;;  %v641_v27 = vld [vmem:[%s2560_s0 + $0x1e0] sm:$0xff]  ;;  %v639_v28 = vld [vmem:[%s2560_s0 + $0x1d0] sm:$0xff] }
  0xa8   : > { %v643_v29 = vld [vmem:[%s2560_s0 + $0x1f0] sm:$0xff]  ;;  %v673_v30 = vpack.c.bf16 %v641_v27, %v637_v26 }
  0xa9   : > { %v675_v31 = vpack.c.bf16 %v643_v29, %v639_v28 }
  0xae   : > { %1114 = vmatmul.mubr.bf16.gmra.mrb[8].mxu1 %v653_v38  ;;  %1227 = vmatmul.mubr.bf16.gmra.mrb[8].mxu0 %v655_v39 }
  0xaf   : > { %1123 = vmatprep.mubr.bf16.mxu1 %v658_v40  ;;  %1236 = vmatprep.mubr.bf16.mxu0 %v660_v41  ;;  %v2405_v40 = vrot.slane %v1386_v35, %v1394_v36 }
  0xb6   : > { %1124 = vmatmul.mubr.bf16.gmra.mrb[12].mxu1 %v657_v50  ;;  %1237 = vmatmul.mubr.bf16.gmra.mrb[12].mxu0 %v659_v51 }
  0xb7   : > { %1133 = vmatprep.mubr.bf16.mxu1 %v662_v52  ;;  %1246 = vmatprep.mubr.bf16.mxu0 %v664_v53 }
  0xbe   : > { %1134 = vmatmul.mubr.bf16.gmra.mrb[16].mxu1 %v661_v62  ;;  %1247 = vmatmul.mubr.bf16.gmra.mrb[16].mxu0 %v663_v63 }
  0xbf   : > { %1143 = vmatprep.mubr.bf16.mxu1 %v666_v0  ;;  %1256 = vmatprep.mubr.bf16.mxu0 %v668_v1 }
  0xc6   : > { %1144 = vmatmul.mubr.bf16.gmra.mrb[20].mxu1 %v665_v10  ;;  %1257 = vmatmul.mubr.bf16.gmra.mrb[20].mxu0 %v667_v11 }
  0xc7   : > { %1153 = vmatprep.mubr.bf16.mxu1 %v670_v12  ;;  %1266 = vmatprep.mubr.bf16.mxu0 %v672_v13 }
  0xce   : > { %1154 = vmatmul.mubr.bf16.gmra.mrb[24].mxu1 %v669_v22  ;;  %1267 = vmatmul.mubr.bf16.gmra.mrb[24].mxu0 %v671_v23 }
  0xcf   : > { %1163 = vmatprep.mubr.bf16.mxu1 %v674_v24  ;;  %1276 = vmatprep.mubr.bf16.mxu0 %v676_v25 }
  0xd6   : > { %1164 = vmatmul.mubr.bf16.gmra.mrb[28].mxu1 %v673_v30  ;;  %1277 = vmatmul.mubr.bf16.gmra.mrb[28].mxu0 %v675_v31 }
 0x171   : > { %v1095_v38 = vpop.f32.mrb[0].mxu1  ;;  %v1208_v39 = vpop.f32.mrb[0].mxu0 }
 0x172   : > { %v1209_v41 = vadd.f32 %v1208_v39, %v1095_v38  ;;  %v1097_v42 = vpop.f32.mrb[1].mxu1  ;;  %v1210_v43 = vpop.f32.mrb[1].mxu0 }
 0x173   : > { %v1211_v44 = vadd.f32 %v1210_v43, %v1097_v42  ;;  %v1099_v45 = vpop.f32.mrb[2].mxu1  ;;  %v1212_v46 = vpop.f32.mrb[2].mxu0 }
 0x174   : > { %v1398_v47 = vadd.f32 %v2403_v37, %v1209_v41  ;;  %v1213_v48 = vadd.f32 %v1212_v46, %v1099_v45  ;;  %v1101_v49 = vpop.f32.mrb[3].mxu1  ;;  %v1214_v50 = vpop.f32.mrb[3].mxu0 }
 0x175   : > { %v1399_v51 = vadd.f32 %v2405_v40, %v1211_v44  ;;  %v1215_v52 = vadd.f32 %v1214_v50, %v1101_v49 }
 0x176   : > { %1430 = vst [vmem:[%s2409_s12] sm:$0xff] %v1398_v47  ;;  %v1400_v53 = vadd.f32 %v2403_v37, %v1213_v48 }
 0x177   : > { %1431 = vst [vmem:[%s2409_s12 + $0x8] sm:$0xff] %v1399_v51  ;;  %v1401_v54 = vadd.f32 %v2405_v40, %v1215_v52 }
 0x178   : > { %1432 = vst [vmem:[%s2409_s12 + $0x10] sm:$0xff] %v1400_v53 }
 0x179   : > { %1433 = vst [vmem:[%s2409_s12 + $0x18] sm:$0xff] %v1401_v54  ;;  %v1105_v55 = vpop.f32.mrb[4].mxu1  ;;  %v1218_v56 = vpop.f32.mrb[4].mxu0 }
 0x17a   : > { %v1219_v57 = vadd.f32 %v1218_v56, %v1105_v55  ;;  %v1107_v58 = vpop.f32.mrb[5].mxu1  ;;  %v1220_v59 = vpop.f32.mrb[5].mxu0 }
 0x17b   : > { %v1221_v60 = vadd.f32 %v1220_v59, %v1107_v58  ;;  %v1109_v61 = vpop.f32.mrb[6].mxu1  ;;  %v1222_v62 = vpop.f32.mrb[6].mxu0 }
 0x17c   : > { %v1402_v63 = vadd.f32 %v2403_v37, %v1219_v57  ;;  %v1223_v0 = vadd.f32 %v1222_v62, %v1109_v61  ;;  %v1111_v1 = vpop.f32.mrb[7].mxu1  ;;  %v1224_v2 = vpop.f32.mrb[7].mxu0 }
 0x17d   : > { %v1403_v3 = vadd.f32 %v2405_v40, %v1221_v60  ;;  %v1225_v4 = vadd.f32 %v1224_v2, %v1111_v1 }
 0x17e   : > { %1434 = vst [vmem:[%s2409_s12 + $0x20] sm:$0xff] %v1402_v63  ;;  %v1404_v5 = vadd.f32 %v2403_v37, %v1223_v0 }
 0x17f   : > { %1435 = vst [vmem:[%s2409_s12 + $0x28] sm:$0xff] %v1403_v3  ;;  %v1405_v6 = vadd.f32 %v2405_v40, %v1225_v4 }
 0x180   : > { %1436 = vst [vmem:[%s2409_s12 + $0x30] sm:$0xff] %v1404_v5 }
 0x181   : > { %1437 = vst [vmem:[%s2409_s12 + $0x38] sm:$0xff] %v1405_v6  ;;  %v1115_v7 = vpop.f32.mrb[8].mxu1  ;;  %v1228_v8 = vpop.f32.mrb[8].mxu0 }
 0x182   : > { %v1229_v9 = vadd.f32 %v1228_v8, %v1115_v7  ;;  %v1117_v10 = vpop.f32.mrb[9].mxu1  ;;  %v1230_v11 = vpop.f32.mrb[9].mxu0 }
 0x183   : > { %v1231_v12 = vadd.f32 %v1230_v11, %v1117_v10  ;;  %v1119_v13 = vpop.f32.mrb[10].mxu1  ;;  %v1232_v14 = vpop.f32.mrb[10].mxu0 }
 0x184   : > { %v1406_v15 = vadd.f32 %v2403_v37, %v1229_v9  ;;  %v1233_v16 = vadd.f32 %v1232_v14, %v1119_v13  ;;  %v1121_v17 = vpop.f32.mrb[11].mxu1  ;;  %v1234_v18 = vpop.f32.mrb[11].mxu0 }
 0x185   : > { %v1407_v19 = vadd.f32 %v2405_v40, %v1231_v12  ;;  %v1235_v20 = vadd.f32 %v1234_v18, %v1121_v17 }
 0x186   : > { %1438 = vst [vmem:[%s2409_s12 + $0x40] sm:$0xff] %v1406_v15  ;;  %v1408_v21 = vadd.f32 %v2403_v37, %v1233_v16 }
 0x187   : > { %1439 = vst [vmem:[%s2409_s12 + $0x48] sm:$0xff] %v1407_v19  ;;  %v1409_v22 = vadd.f32 %v2405_v40, %v1235_v20 }
 0x188   : > { %1440 = vst [vmem:[%s2409_s12 + $0x50] sm:$0xff] %v1408_v21 }
 0x189   : > { %1441 = vst [vmem:[%s2409_s12 + $0x58] sm:$0xff] %v1409_v22  ;;  %v1125_v23 = vpop.f32.mrb[12].mxu1  ;;  %v1238_v24 = vpop.f32.mrb[12].mxu0 }
 0x18a   : > { %v1239_v25 = vadd.f32 %v1238_v24, %v1125_v23  ;;  %v1127_v26 = vpop.f32.mrb[13].mxu1  ;;  %v1240_v27 = vpop.f32.mrb[13].mxu0 }
 0x18b   : > { %v1241_v28 = vadd.f32 %v1240_v27, %v1127_v26  ;;  %v1129_v29 = vpop.f32.mrb[14].mxu1  ;;  %v1242_v30 = vpop.f32.mrb[14].mxu0 }
 0x18c   : > { %v1410_v31 = vadd.f32 %v2403_v37, %v1239_v25  ;;  %v1243_v32 = vadd.f32 %v1242_v30, %v1129_v29  ;;  %v1131_v33 = vpop.f32.mrb[15].mxu1  ;;  %v1244_v34 = vpop.f32.mrb[15].mxu0 }
 0x18d   : > { %v1411_v35 = vadd.f32 %v2405_v40, %v1241_v28  ;;  %v1245_v36 = vadd.f32 %v1244_v34, %v1131_v33 }
 0x18e   : > { %1442 = vst [vmem:[%s2409_s12 + $0x60] sm:$0xff] %v1410_v31  ;;  %v1412_v38 = vadd.f32 %v2403_v37, %v1243_v32 }
 0x18f   : > { %1443 = vst [vmem:[%s2409_s12 + $0x68] sm:$0xff] %v1411_v35  ;;  %v1413_v39 = vadd.f32 %v2405_v40, %v1245_v36 }
 0x190   : > { %1444 = vst [vmem:[%s2409_s12 + $0x70] sm:$0xff] %v1412_v38 }
 0x191   : > { %1445 = vst [vmem:[%s2409_s12 + $0x78] sm:$0xff] %v1413_v39  ;;  %v1135_v41 = vpop.f32.mrb[16].mxu1  ;;  %v1248_v42 = vpop.f32.mrb[16].mxu0 }
 0x192   : > { %v1249_v43 = vadd.f32 %v1248_v42, %v1135_v41  ;;  %v1137_v44 = vpop.f32.mrb[17].mxu1  ;;  %v1250_v45 = vpop.f32.mrb[17].mxu0 }
 0x193   : > { %v1251_v46 = vadd.f32 %v1250_v45, %v1137_v44  ;;  %v1139_v47 = vpop.f32.mrb[18].mxu1  ;;  %v1252_v48 = vpop.f32.mrb[18].mxu0  ;;  %v1488_v44 = vld [vmem:[%s2409_s12 + $0x10] sm:$0xff] (%p1989_p6)  ;;  %v1492_v45 = vld [vmem:[%s2409_s12 + $0x20] sm:$0xff] (%p1989_p6) }
 0x194   : > { %v1414_v49 = vadd.f32 %v2403_v37, %v1249_v43  ;;  %v1253_v50 = vadd.f32 %v1252_v48, %v1139_v47  ;;  %v1141_v51 = vpop.f32.mrb[19].mxu1  ;;  %v1254_v52 = vpop.f32.mrb[19].mxu0  ;;  %v1486_v43 = vld [vmem:[%s2409_s12 + $0x8] sm:$0xff] (%p1989_p6)  ;;  %1489 = vst [vmem:[%s2482_s23 + $0x80] sm:$0xff] (%p1989_p6), %v1488_v44  ;;  %1493 = vst [vmem:[%s2482_s23 + $0x100] sm:$0xff] (%p1989_p6), %v1492_v45  ;;  %v1496_v47 = vld [vmem:[%s2409_s12 + $0x30] sm:$0xff] (%p1989_p6) }
 0x195   : > { %v1415_v53 = vadd.f32 %v2405_v40, %v1251_v46  ;;  %v1255_v54 = vadd.f32 %v1254_v52, %v1141_v51  ;;  %v1494_v46 = vld [vmem:[%s2409_s12 + $0x28] sm:$0xff] (%p1989_p6)  ;;  %1487 = vst [vmem:[%s2482_s23 + $0x8] sm:$0xff] (%p1989_p6), %v1486_v43  ;;  %v1498_v48 = vld [vmem:[%s2409_s12 + $0x38] sm:$0xff] (%p1989_p6)  ;;  %1497 = vst [vmem:[%s2482_s23 + $0x180] sm:$0xff] (%p1989_p6), %v1496_v47 }
 0x196   : > { %1446 = vst [vmem:[%s2409_s12 + $0x80] sm:$0xff] %v1414_v49  ;;  %v1416_v55 = vadd.f32 %v2403_v37, %v1253_v50  ;;  %1495 = vst [vmem:[%s2482_s23 + $0x108] sm:$0xff] (%p1989_p6), %v1494_v46  ;;  %v1500_v49 = vld [vmem:[%s2409_s12 + $0x40] sm:$0xff] (%p1989_p6)  ;;  %v1502_v50 = vld [vmem:[%s2409_s12 + $0x48] sm:$0xff] (%p1989_p6) }
 0x197   : > { %1447 = vst [vmem:[%s2409_s12 + $0x88] sm:$0xff] %v1415_v53  ;;  %v1417_v56 = vadd.f32 %v2405_v40, %v1255_v54  ;;  %1499 = vst [vmem:[%s2482_s23 + $0x188] sm:$0xff] (%p1989_p6), %v1498_v48  ;;  %v1504_v51 = vld [vmem:[%s2409_s12 + $0x50] sm:$0xff] (%p1989_p6)  ;;  %v1506_v52 = vld [vmem:[%s2409_s12 + $0x58] sm:$0xff] (%p1989_p6) }
 0x198   : > { %1448 = vst [vmem:[%s2409_s12 + $0x90] sm:$0xff] %v1416_v55  ;;  %1501 = vst [vmem:[%s2482_s23 + $0x200] sm:$0xff] (%p1989_p6), %v1500_v49  ;;  %v1508_v53 = vld [vmem:[%s2409_s12 + $0x60] sm:$0xff] (%p1989_p6)  ;;  %v1510_v54 = vld [vmem:[%s2409_s12 + $0x68] sm:$0xff] (%p1989_p6) }
 0x199   : > { %1449 = vst [vmem:[%s2409_s12 + $0x98] sm:$0xff] %v1417_v56  ;;  %v1145_v57 = vpop.f32.mrb[20].mxu1  ;;  %v1258_v58 = vpop.f32.mrb[20].mxu0  ;;  %1503 = vst [vmem:[%s2482_s23 + $0x208] sm:$0xff] (%p1989_p6), %v1502_v50  ;;  %v1512_v55 = vld [vmem:[%s2409_s12 + $0x70] sm:$0xff] (%p1989_p6)  ;;  %v1514_v56 = vld [vmem:[%s2409_s12 + $0x78] sm:$0xff] (%p1989_p6) }
 0x19a   : > { %v1259_v59 = vadd.f32 %v1258_v58, %v1145_v57  ;;  %v1147_v60 = vpop.f32.mrb[21].mxu1  ;;  %v1260_v61 = vpop.f32.mrb[21].mxu0  ;;  %1505 = vst [vmem:[%s2482_s23 + $0x280] sm:$0xff] (%p1989_p6), %v1504_v51  ;;  %1507 = vst [vmem:[%s2482_s23 + $0x288] sm:$0xff] (%p1989_p6), %v1506_v52 }
 0x19b   : > { %v1261_v62 = vadd.f32 %v1260_v61, %v1147_v60  ;;  %v1149_v63 = vpop.f32.mrb[22].mxu1  ;;  %v1262_v0 = vpop.f32.mrb[22].mxu0  ;;  %1509 = vst [vmem:[%s2482_s23 + $0x300] sm:$0xff] (%p1989_p6), %v1508_v53  ;;  %1511 = vst [vmem:[%s2482_s23 + $0x308] sm:$0xff] (%p1989_p6), %v1510_v54 }
 0x19c   : > { %v1418_v1 = vadd.f32 %v2403_v37, %v1259_v59  ;;  %v1263_v2 = vadd.f32 %v1262_v0, %v1149_v63  ;;  %v1151_v3 = vpop.f32.mrb[23].mxu1  ;;  %v1264_v4 = vpop.f32.mrb[23].mxu0  ;;  %1513 = vst [vmem:[%s2482_s23 + $0x380] sm:$0xff] (%p1989_p6), %v1512_v55  ;;  %1515 = vst [vmem:[%s2482_s23 + $0x388] sm:$0xff] (%p1989_p6), %v1514_v56 }
 0x19d   : > { %v1419_v5 = vadd.f32 %v2405_v40, %v1261_v62  ;;  %v1265_v6 = vadd.f32 %v1264_v4, %v1151_v3  ;;  %v1516_v57 = vld [vmem:[%s2409_s12 + $0x80] sm:$0xff] (%p1989_p6) }
 0x19e   : > { %1450 = vst [vmem:[%s2409_s12 + $0xa0] sm:$0xff] %v1418_v1  ;;  %v1420_v7 = vadd.f32 %v2403_v37, %v1263_v2  ;;  %v1518_v58 = vld [vmem:[%s2409_s12 + $0x88] sm:$0xff] (%p1989_p6)  ;;  %1517 = vst [vmem:[%s2482_s23 + $0x400] sm:$0xff] (%p1989_p6), %v1516_v57 }
 0x19f   : > { %1451 = vst [vmem:[%s2409_s12 + $0xa8] sm:$0xff] %v1419_v5  ;;  %v1421_v8 = vadd.f32 %v2405_v40, %v1265_v6  ;;  %1519 = vst [vmem:[%s2482_s23 + $0x408] sm:$0xff] (%p1989_p6), %v1518_v58  ;;  %v1520_v59 = vld [vmem:[%s2409_s12 + $0x90] sm:$0xff] (%p1989_p6) }
 0x1a0   : > { %1452 = vst [vmem:[%s2409_s12 + $0xb0] sm:$0xff] %v1420_v7  ;;  %v1522_v60 = vld [vmem:[%s2409_s12 + $0x98] sm:$0xff] (%p1989_p6)  ;;  %1521 = vst [vmem:[%s2482_s23 + $0x480] sm:$0xff] (%p1989_p6), %v1520_v59 }
 0x1a1   : > { %1453 = vst [vmem:[%s2409_s12 + $0xb8] sm:$0xff] %v1421_v8  ;;  %v1155_v9 = vpop.f32.mrb[24].mxu1  ;;  %v1268_v10 = vpop.f32.mrb[24].mxu0  ;;  %1523 = vst [vmem:[%s2482_s23 + $0x488] sm:$0xff] (%p1989_p6), %v1522_v60 }
 0x1a2   : > { %v1269_v11 = vadd.f32 %v1268_v10, %v1155_v9  ;;  %v1157_v12 = vpop.f32.mrb[25].mxu1  ;;  %v1270_v13 = vpop.f32.mrb[25].mxu0 }
 0x1a3   : > { %v1271_v14 = vadd.f32 %v1270_v13, %v1157_v12  ;;  %v1159_v15 = vpop.f32.mrb[26].mxu1  ;;  %v1272_v16 = vpop.f32.mrb[26].mxu0 }
 0x1a4   : > { %v1422_v17 = vadd.f32 %v2403_v37, %v1269_v11  ;;  %v1273_v18 = vadd.f32 %v1272_v16, %v1159_v15  ;;  %v1161_v19 = vpop.f32.mrb[27].mxu1  ;;  %v1274_v20 = vpop.f32.mrb[27].mxu0 }
 0x1a5   : > { %v1423_v21 = vadd.f32 %v2405_v40, %v1271_v14  ;;  %v1275_v22 = vadd.f32 %v1274_v20, %v1161_v19  ;;  %v1524_v61 = vld [vmem:[%s2409_s12 + $0xa0] sm:$0xff] (%p1989_p6) }
 0x1a6   : > { %1454 = vst [vmem:[%s2409_s12 + $0xc0] sm:$0xff] %v1422_v17  ;;  %v1424_v23 = vadd.f32 %v2403_v37, %v1273_v18  ;;  %1525 = vst [vmem:[%s2482_s23 + $0x500] sm:$0xff] (%p1989_p6), %v1524_v61  ;;  %v1526_v62 = vld [vmem:[%s2409_s12 + $0xa8] sm:$0xff] (%p1989_p6) }
 0x1a7   : > { %1455 = vst [vmem:[%s2409_s12 + $0xc8] sm:$0xff] %v1423_v21  ;;  %v1425_v24 = vadd.f32 %v2405_v40, %v1275_v22  ;;  %v1528_v63 = vld [vmem:[%s2409_s12 + $0xb0] sm:$0xff] (%p1989_p6)  ;;  %1527 = vst [vmem:[%s2482_s23 + $0x508] sm:$0xff] (%p1989_p6), %v1526_v62 }
 0x1a8   : > { %1456 = vst [vmem:[%s2409_s12 + $0xd0] sm:$0xff] %v1424_v23  ;;  %v1530_v0 = vld [vmem:[%s2409_s12 + $0xb8] sm:$0xff] (%p1989_p6)  ;;  %1529 = vst [vmem:[%s2482_s23 + $0x580] sm:$0xff] (%p1989_p6), %v1528_v63 }
 0x1a9   : > { %1457 = vst [vmem:[%s2409_s12 + $0xd8] sm:$0xff] %v1425_v24  ;;  %v1165_v25 = vpop.f32.mrb[28].mxu1  ;;  %v1278_v26 = vpop.f32.mrb[28].mxu0  ;;  %1531 = vst [vmem:[%s2482_s23 + $0x588] sm:$0xff] (%p1989_p6), %v1530_v0 }
 0x1aa   : > { %v1279_v27 = vadd.f32 %v1278_v26, %v1165_v25  ;;  %v1167_v28 = vpop.f32.mrb[29].mxu1  ;;  %v1280_v29 = vpop.f32.mrb[29].mxu0 }
 0x1ab   : > { %v1281_v30 = vadd.f32 %v1280_v29, %v1167_v28  ;;  %v1169_v31 = vpop.f32.mrb[30].mxu1  ;;  %v1282_v32 = vpop.f32.mrb[30].mxu0  ;;  %1468 = sbr.rel (!%p1989_p6) target bundleno = 442 (0x1ba), region = 82 }
 0x1ac   : > { %v1426_v33 = vadd.f32 %v2403_v37, %v1279_v27  ;;  %v1283_v34 = vadd.f32 %v1282_v32, %v1169_v31  ;;  %v1171_v35 = vpop.f32.mrb[31].mxu1  ;;  %v1284_v36 = vpop.f32.mrb[31].mxu0 }
 0x1ad   : > { %v1427_v38 = vadd.f32 %v2405_v40, %v1281_v30  ;;  %v1285_v39 = vadd.f32 %v1284_v36, %v1171_v35  ;;  %v1532_v1 = vld [vmem:[%s2409_s12 + $0xc0] sm:$0xff] (%p1989_p6) }
 0x1ae   : > { %1458 = vst [vmem:[%s2409_s12 + $0xe0] sm:$0xff] %v1426_v33  ;;  %v1428_v41 = vadd.f32 %v2403_v37, %v1283_v34  ;;  %v1484_v37 = vld [vmem:[%s2409_s12] sm:$0xff] (%p1989_p6)  ;;  %v1534_v2 = vld [vmem:[%s2409_s12 + $0xc8] sm:$0xff] (%p1989_p6)  ;;  %1533 = vst [vmem:[%s2482_s23 + $0x600] sm:$0xff] (%p1989_p6), %v1532_v1 }
 0x1af   : > { %1459 = vst [vmem:[%s2409_s12 + $0xe8] sm:$0xff] %v1427_v38  ;;  %v1429_v42 = vadd.f32 %v2405_v40, %v1285_v39  ;;  %v1490_v40 = vld [vmem:[%s2409_s12 + $0x18] sm:$0xff] (%p1989_p6)  ;;  %1485 = vst [vmem:[%s2482_s23] sm:$0xff] (%p1989_p6), %v1484_v37  ;;  %v1536_v3 = vld [vmem:[%s2409_s12 + $0xd0] sm:$0xff] (%p1989_p6) }
 0x1b0   : > { %1460 = vst [vmem:[%s2409_s12 + $0xf0] sm:$0xff] %v1428_v41  ;;  %1491 = vst [vmem:[%s2482_s23 + $0x88] sm:$0xff] (%p1989_p6), %v1490_v40  ;;  %v1538_v4 = vld [vmem:[%s2409_s12 + $0xd8] sm:$0xff] (%p1989_p6) }
 0x1b1   : > { %1461 = vst [vmem:[%s2409_s12 + $0xf8] sm:$0xff] %v1429_v42  ;;  %1535 = vst [vmem:[%s2482_s23 + $0x608] sm:$0xff] (%p1989_p6), %v1534_v2 }
 0x1b2   : > { %1537 = vst [vmem:[%s2482_s23 + $0x680] sm:$0xff] %v1536_v3  ;;  %1539 = vst [vmem:[%s2482_s23 + $0x688] sm:$0xff] %v1538_v4 }
 0x1b5   : > { %v1540_v5 = vld [vmem:[%s2409_s12 + $0xe0] sm:$0xff] }
 0x1b6   : > { %v1542_v6 = vld [vmem:[%s2409_s12 + $0xe8] sm:$0xff]  ;;  %1541 = vst [vmem:[%s2482_s23 + $0x700] sm:$0xff] %v1540_v5 }
 0x1b7   : > { %1543 = vst [vmem:[%s2482_s23 + $0x708] sm:$0xff] %v1542_v6  ;;  %v1544_v7 = vld [vmem:[%s2409_s12 + $0xf0] sm:$0xff] }
 0x1b8   : > { %v1546_v8 = vld [vmem:[%s2409_s12 + $0xf8] sm:$0xff]  ;;  %1545 = vst [vmem:[%s2482_s23 + $0x780] sm:$0xff] %v1544_v7 }
 0x1b9   : > { %1547 = vst [vmem:[%s2482_s23 + $0x788] sm:$0xff] %v1546_v8 }
 0x1ba PF: > { %s13_s16 = sadd.s32 1, %s1932_s16   ;;  %s2565_s12 = smov %s1920_s13 }
 0x1bb   : > { %p10_p12 = scmp.ge.s32.totalorder %s13_s16, 10   ;;  %s2566_s13 = smov %s1994_s22 }
 0x1bc   : > { %s2567_s14 = smov %s1928_s15  ;;  %s2568_s15 = smov %s2570_s17 }
 0x1bd   :  { %12 = sbr.rel (!%p10_p12) target bundleno = 3 (0x3), region = 142 }

// kernel: vae_forward.12
= control target key start
LH: loop header
LB: loop body
LE: loop exit
PB: predicated region body
PF: predicated region fallthrough
CT: control target
= control target key end

     0   :  { %s2025_s27 = smov 0   ;;  %s2466_s0 = inlined_call_operand.vmem [shape: f32[8,128], index: 0, kind: input, shape index: {}]   ;;  %s2467_s1 = inlined_call_operand.vmem [shape: bf16[128,512], index: 1, kind: input, shape index: {}]   ;;  %s2468_s2 = inlined_call_operand.vmem [shape: f32[1,512], index: 2, kind: input, shape index: {}]   ;;  %s2469_s3 = inlined_call_operand.vmem [shape: f32[1,512], index: 3, kind: input, shape index: {}]   ;;  %s2470_s4 = inlined_call_operand.vmem [shape: bf16[128,512], index: 4, kind: input, shape index: {}]   ;;  %s2471_s5 = inlined_call_operand.vmem [shape: bf16[128,512], index: 5, kind: input, shape index: {}]   ;;  %s2472_s6 = inlined_call_operand.vmem [shape: bf16[128,512], index: 6, kind: input, shape index: {}]   ;;  %s2473_s7 = inlined_call_operand.vmem [shape: f32[1,512], index: 7, kind: input, shape index: {}]   ;;  %s2474_s8 = inlined_call_operand.vmem [shape: f32[2,8,128], index: 8, kind: output, shape index: {}]  }
   0x1 LB: > { %s1574_s28 = sadd.s32 4294967295, %s1976_s27   ;;  %p1577_p0 = scmp.ge.s32.totalorder %s1976_s27, 1  ;;  %s1976_s27 = sphi %s2025_s27, %s18_s27  }
   0x2   : > { %p252_p1 = scmp.lt.s32.totalorder %s1976_s27, 3 }
   0x4   : > { %p253_p2 = pnand %p1577_p0, %p252_p1 }
   0x5   : > { %p280_p3 = scmp.lt.s32.totalorder (!%p253_p2), %s1574_s28, 1  ;;  %p1579_p4 = scmp.ne.s32.totalorder (!%p253_p2), %s1574_s28, 0 }
   0x6   : > { %256 = sbr.rel (%p253_p2) target bundleno = 862 (0x35e), region = 52 }
   0xd   : > { %s281_s29 = scalar_select %p280_p3, %s1574_s28, 1 }
   0xe   : > { %288 = sbr.rel (%p1579_p4) target bundleno = 277 (0x115), region = 56  ;;  %v1738_v0 = vld [vmem:[%s2467_s1 + $0x4] ss:$16 sps:$4 sm:$0xff] (!%p1579_p4)   ;;  %v1740_v1 = vld [vmem:[%s2467_s1 + $0xc] ss:$16 sps:$4 sm:$0xff] (!%p1579_p4)   ;;  %v1978_v2 = vmov (!%p1579_p4), 0   ;;  %v325_v35 = vlaneseq (!%p1579_p4) }
   0xf   : > { %s1578_s30 = sshll.u32 %s281_s29, 3  ;;  %537 = vmatprep.mubr.bf16.mxu0 (!%p1579_p4), %v1978_v2  ;;  %578 = vmatprep.mubr.bf16.mxu1 (!%p1579_p4), %v1978_v2  ;;  %v1742_v3 = vld [vmem:[%s2467_s1] ss:$16 sps:$4 sm:$0xff] (!%p1579_p4)   ;;  %v1743_v4 = vld [vmem:[%s2467_s1 + $0x8] ss:$16 sps:$4 sm:$0xff] (!%p1579_p4)  }
  0x10   : > { %s2036_s11 = scalar_lea.vmem %s2474_s8, %s1578_s30  ;;  %505 = vmatprep.subr.bf16.mxu0 (!%p1579_p4), %v1738_v0  ;;  %546 = vmatprep.subr.bf16.mxu1 (!%p1579_p4), %v1740_v1  ;;  %v1744_v5 = vld [vmem:[%s2467_s1 + $0x24] ss:$16 sps:$4 sm:$0xff] (!%p1579_p4)   ;;  %v1746_v6 = vld [vmem:[%s2467_s1 + $0x2c] ss:$16 sps:$4 sm:$0xff] (!%p1579_p4)   ;;  %v1748_v7 = vld [vmem:[%s2467_s1 + $0x20] ss:$16 sps:$4 sm:$0xff] (!%p1579_p4)  }
  0x11   : > { %506 = vmatpush1.bf16.msra.mxu0 (!%p1579_p4), %v1742_v3  ;;  %547 = vmatpush1.bf16.msra.mxu1 (!%p1579_p4), %v1743_v4  ;;  %v1749_v8 = vld [vmem:[%s2467_s1 + $0x28] ss:$16 sps:$4 sm:$0xff] (!%p1579_p4)   ;;  %v1750_v9 = vld [vmem:[%s2467_s1 + $0x44] ss:$16 sps:$4 sm:$0xff] (!%p1579_p4)   ;;  %v1752_v10 = vld [vmem:[%s2467_s1 + $0x4c] ss:$16 sps:$4 sm:$0xff] (!%p1579_p4)  }
  0x12   : > { %507 = vmatprep.subr.bf16.mxu0 (!%p1579_p4), %v1744_v5  ;;  %548 = vmatprep.subr.bf16.mxu1 (!%p1579_p4), %v1746_v6  ;;  %v1754_v11 = vld [vmem:[%s2467_s1 + $0x40] ss:$16 sps:$4 sm:$0xff] (!%p1579_p4)   ;;  %v1755_v12 = vld [vmem:[%s2467_s1 + $0x48] ss:$16 sps:$4 sm:$0xff] (!%p1579_p4)   ;;  %v1756_v13 = vld [vmem:[%s2467_s1 + $0x64] ss:$16 sps:$4 sm:$0xff] (!%p1579_p4)  }
  0x13   : > { %v1758_v14 = vld [vmem:[%s2467_s1 + $0x6c] ss:$16 sps:$4 sm:$0xff] (!%p1579_p4)   ;;  %v1760_v15 = vld [vmem:[%s2467_s1 + $0x60] ss:$16 sps:$4 sm:$0xff] (!%p1579_p4)   ;;  %v1761_v16 = vld [vmem:[%s2467_s1 + $0x68] ss:$16 sps:$4 sm:$0xff] (!%p1579_p4)  }
  0x14   : > { %v1762_v17 = vld [vmem:[%s2467_s1 + $0x84] ss:$16 sps:$4 sm:$0xff] (!%p1579_p4)   ;;  %v1764_v18 = vld [vmem:[%s2467_s1 + $0x8c] ss:$16 sps:$4 sm:$0xff] (!%p1579_p4)   ;;  %v1766_v19 = vld [vmem:[%s2467_s1 + $0x80] ss:$16 sps:$4 sm:$0xff] (!%p1579_p4)  }
  0x15   : > { %508 = vmatpush1.bf16.msra.mxu0 %v1748_v7  ;;  %549 = vmatpush1.bf16.msra.mxu1 %v1749_v8  ;;  %v1767_v20 = vld [vmem:[%s2467_s1 + $0x88] ss:$16 sps:$4 sm:$0xff]   ;;  %v1768_v21 = vld [vmem:[%s2467_s1 + $0xa4] ss:$16 sps:$4 sm:$0xff]   ;;  %v1770_v22 = vld [vmem:[%s2467_s1 + $0xac] ss:$16 sps:$4 sm:$0xff]  }
  0x16   : > { %509 = vmatprep.subr.bf16.mxu0 %v1750_v9  ;;  %550 = vmatprep.subr.bf16.mxu1 %v1752_v10  ;;  %v1772_v23 = vld [vmem:[%s2467_s1 + $0xa0] ss:$16 sps:$4 sm:$0xff]   ;;  %v1773_v24 = vld [vmem:[%s2467_s1 + $0xa8] ss:$16 sps:$4 sm:$0xff]   ;;  %v1774_v25 = vld [vmem:[%s2467_s1 + $0xc4] ss:$16 sps:$4 sm:$0xff]  }
  0x17   : > { %v1776_v26 = vld [vmem:[%s2467_s1 + $0xcc] ss:$16 sps:$4 sm:$0xff]   ;;  %v1778_v27 = vld [vmem:[%s2467_s1 + $0xc0] ss:$16 sps:$4 sm:$0xff]   ;;  %v1779_v28 = vld [vmem:[%s2467_s1 + $0xc8] ss:$16 sps:$4 sm:$0xff]  }
  0x18   : > { %v1780_v29 = vld [vmem:[%s2467_s1 + $0xe4] ss:$16 sps:$4 sm:$0xff]   ;;  %v1782_v30 = vld [vmem:[%s2467_s1 + $0xec] ss:$16 sps:$4 sm:$0xff]   ;;  %v1784_v31 = vld [vmem:[%s2467_s1 + $0xe0] ss:$16 sps:$4 sm:$0xff]  }
  0x19   : > { %510 = vmatpush1.bf16.msra.mxu0 %v1754_v11  ;;  %551 = vmatpush1.bf16.msra.mxu1 %v1755_v12  ;;  %v1785_v32 = vld [vmem:[%s2467_s1 + $0xe8] ss:$16 sps:$4 sm:$0xff]   ;;  %v289_v33 = vld [vmem:[%s2466_s0] sm:$0xff]  ;;  %v326_v36 = vshrl.u32 %v325_v35, 7 }
  0x1a   : > { %511 = vmatprep.subr.bf16.mxu0 %v1756_v13  ;;  %552 = vmatprep.subr.bf16.mxu1 %v1758_v14  ;;  %v290_v34 = vpack.c.bf16 %v289_v33, %v289_v33  ;;  %v323_v39 = vld [vmem:[%s2468_s2] sm:$0xf] }
  0x1b   : > { %v327_v37 = vsub.s32 0, %v326_v36  ;;  %v335_v38 = vsub.s32 2, %v326_v36  ;;  %v331_v40 = vsub.s32 1, %v326_v36  ;;  %v339_v41 = vsub.s32 3, %v326_v36 }
  0x1d   : > { %512 = vmatpush1.bf16.msra.mxu0 %v1760_v15  ;;  %553 = vmatpush1.bf16.msra.mxu1 %v1761_v16  ;;  %v328_v42 = vrot.slane %v323_v39, %v327_v37  ;;  %v336_v43 = vrot.slane %v323_v39, %v335_v38  ;;  %v332_v44 = vrot.slane %v323_v39, %v331_v40 }
  0x1e   : > { %513 = vmatprep.subr.bf16.mxu0 %v1762_v17  ;;  %554 = vmatprep.subr.bf16.mxu1 %v1764_v18  ;;  %v340_v45 = vrot.slane %v323_v39, %v339_v41 }
  0x21   : > { %514 = vmatpush1.bf16.msra.mxu0 %v1766_v19  ;;  %555 = vmatpush1.bf16.msra.mxu1 %v1767_v20 }
  0x22   : > { %515 = vmatprep.subr.bf16.mxu0 %v1768_v21  ;;  %556 = vmatprep.subr.bf16.mxu1 %v1770_v22 }
  0x25   : > { %516 = vmatpush1.bf16.msra.mxu0 %v1772_v23  ;;  %557 = vmatpush1.bf16.msra.mxu1 %v1773_v24 }
  0x26   : > { %517 = vmatprep.subr.bf16.mxu0 %v1774_v25  ;;  %558 = vmatprep.subr.bf16.mxu1 %v1776_v26 }
  0x29   : > { %518 = vmatpush1.bf16.msra.mxu0 %v1778_v27  ;;  %559 = vmatpush1.bf16.msra.mxu1 %v1779_v28 }
  0x2a   : > { %519 = vmatprep.subr.bf16.mxu0 %v1780_v29  ;;  %560 = vmatprep.subr.bf16.mxu1 %v1782_v30 }
  0x2d   : > { %520 = vmatpush1.bf16.msra.mxu0 %v1784_v31  ;;  %561 = vmatpush1.bf16.msra.mxu1 %v1785_v32 }
  0x30   : > { %538 = vmatmul.mubr.bf16.vlgmr.msra.gmra.mrb[0].mxu0 %v290_v34  ;;  %579 = vmatmul.mubr.bf16.vlgmr.msra.gmra.mrb[0].mxu1 %v290_v34 }
 0x103   : > { %v539_v46 = vpop.f32.mrb[0].mxu0  ;;  %v580_v47 = vpop.f32.mrb[0].mxu1 }
 0x104   : > { %v540_v48 = vadd.f32 %v539_v46, %v328_v42  ;;  %v581_v49 = vadd.f32 %v580_v47, %v336_v43  ;;  %v541_v50 = vpop.f32.mrb[1].mxu0  ;;  %v582_v51 = vpop.f32.mrb[1].mxu1 }
 0x105   : > { %v542_v52 = vadd.f32 %v541_v50, %v332_v44  ;;  %v583_v53 = vadd.f32 %v582_v51, %v340_v45  ;;  %v543_v54 = vpop.f32.mrb[2].mxu0  ;;  %v584_v55 = vpop.f32.mrb[2].mxu1 }
 0x106   : > { %1786 = vtanh.f32 %v540_v48  ;;  %v544_v56 = vpop.f32.mrb[3].mxu0  ;;  %v585_v57 = vpop.f32.mrb[3].mxu1 }
 0x107   : > { %1788 = vtanh.f32 %v581_v49 }
 0x108   : > { %1790 = vtanh.f32 %v542_v52 }
 0x109   : > { %1792 = vtanh.f32 %v583_v53 }
 0x110   : > { %v1787_v58 = vpop.eup %1786 }
 0x111   : > { %v1789_v59 = vpop.eup %1788  ;;  %591 = vst [vmem:[#allocation2] sm:$0xff] %v1787_v58 }
 0x112   : > { %v1791_v60 = vpop.eup %1790  ;;  %593 = vst [vmem:[#allocation3] sm:$0xff] %v1789_v59 }
 0x113   : > { %v1793_v61 = vpop.eup %1792  ;;  %592 = vst [vmem:[#allocation4] sm:$0xff] %v1791_v60 }
 0x114   : > { %594 = vst [vmem:[#allocation5] sm:$0xff] %v1793_v61 }
 0x115 PF: > { %v1794_v62 = vld [vmem:[%s2470_s4 + $0x4] ss:$16 sps:$4 sm:$0xff]   ;;  %v1796_v63 = vld [vmem:[%s2470_s4] ss:$16 sps:$4 sm:$0xff]   ;;  %v1979_v0 = vmov 0  }
 0x116   : > { %822 = vmatprep.mubr.bf16.mxu0 %v1979_v0  ;;  %863 = vmatprep.mubr.bf16.mxu1 %v1979_v0  ;;  %v1797_v1 = vld [vmem:[%s2470_s4 + $0x24] ss:$16 sps:$4 sm:$0xff]   ;;  %v1799_v2 = vld [vmem:[%s2470_s4 + $0x20] ss:$16 sps:$4 sm:$0xff]   ;;  %v1805_v4 = vld [vmem:[%s2470_s4 + $0xc] ss:$16 sps:$4 sm:$0xff]  }
 0x117   : > { %790 = vmatprep.subr.bf16.mxu0 %v1794_v62  ;;  %v1800_v3 = vld [vmem:[%s2470_s4 + $0x44] ss:$16 sps:$4 sm:$0xff]   ;;  %v1808_v5 = vld [vmem:[%s2470_s4 + $0x8] ss:$16 sps:$4 sm:$0xff]   ;;  %v1802_v6 = vld [vmem:[%s2470_s4 + $0x40] ss:$16 sps:$4 sm:$0xff]   ;;  %831 = vmatprep.subr.bf16.mxu1 %v1805_v4  ;;  %v873_v4 = vlaneseq }
 0x118   : > { %791 = vmatpush1.bf16.msra.mxu0 %v1796_v63  ;;  %v1803_v7 = vld [vmem:[%s2470_s4 + $0x64] ss:$16 sps:$4 sm:$0xff]   ;;  %832 = vmatpush1.bf16.msra.mxu1 %v1808_v5  ;;  %v1811_v8 = vld [vmem:[%s2470_s4 + $0x2c] ss:$16 sps:$4 sm:$0xff]   ;;  %v1814_v9 = vld [vmem:[%s2470_s4 + $0x28] ss:$16 sps:$4 sm:$0xff]  }
 0x119   : > { %792 = vmatprep.subr.bf16.mxu0 %v1797_v1  ;;  %833 = vmatprep.subr.bf16.mxu1 %v1811_v8  ;;  %v1807_v10 = vld [vmem:[%s2470_s4 + $0x60] ss:$16 sps:$4 sm:$0xff]   ;;  %v1809_v11 = vld [vmem:[%s2470_s4 + $0x84] ss:$16 sps:$4 sm:$0xff]   ;;  %v1817_v12 = vld [vmem:[%s2470_s4 + $0x4c] ss:$16 sps:$4 sm:$0xff]  }
 0x11a   : > { %v1820_v13 = vld [vmem:[%s2470_s4 + $0x48] ss:$16 sps:$4 sm:$0xff]   ;;  %v1823_v14 = vld [vmem:[%s2470_s4 + $0x6c] ss:$16 sps:$4 sm:$0xff]   ;;  %v1813_v15 = vld [vmem:[%s2470_s4 + $0x80] ss:$16 sps:$4 sm:$0xff]  }
 0x11b   : > { %v1815_v16 = vld [vmem:[%s2470_s4 + $0xa4] ss:$16 sps:$4 sm:$0xff]   ;;  %v1826_v17 = vld [vmem:[%s2470_s4 + $0x68] ss:$16 sps:$4 sm:$0xff]   ;;  %v1829_v18 = vld [vmem:[%s2470_s4 + $0x8c] ss:$16 sps:$4 sm:$0xff]  }
 0x11c   : > { %793 = vmatpush1.bf16.msra.mxu0 %v1799_v2  ;;  %834 = vmatpush1.bf16.msra.mxu1 %v1814_v9  ;;  %v1819_v19 = vld [vmem:[%s2470_s4 + $0xa0] ss:$16 sps:$4 sm:$0xff]   ;;  %v1821_v20 = vld [vmem:[%s2470_s4 + $0xc4] ss:$16 sps:$4 sm:$0xff]   ;;  %v1832_v21 = vld [vmem:[%s2470_s4 + $0x88] ss:$16 sps:$4 sm:$0xff]  }
 0x11d   : > { %794 = vmatprep.subr.bf16.mxu0 %v1800_v3  ;;  %835 = vmatprep.subr.bf16.mxu1 %v1817_v12  ;;  %v1825_v22 = vld [vmem:[%s2470_s4 + $0xc0] ss:$16 sps:$4 sm:$0xff]   ;;  %v1833_v23 = vld [vmem:[%s2470_s4 + $0xac] ss:$16 sps:$4 sm:$0xff]   ;;  %v1827_v24 = vld [vmem:[%s2470_s4 + $0xe4] ss:$16 sps:$4 sm:$0xff]  }
 0x11e   : > { %v1835_v25 = vld [vmem:[%s2470_s4 + $0xa8] ss:$16 sps:$4 sm:$0xff]   ;;  %v1836_v26 = vld [vmem:[%s2470_s4 + $0xcc] ss:$16 sps:$4 sm:$0xff]   ;;  %v1831_v27 = vld [vmem:[%s2470_s4 + $0xe0] ss:$16 sps:$4 sm:$0xff]  }
 0x11f   : > { %v596_v28 = vld [vmem:[#allocation2] sm:$0xff]  ;;  %v1838_v29 = vld [vmem:[%s2470_s4 + $0xc8] ss:$16 sps:$4 sm:$0xff]   ;;  %v1839_v30 = vld [vmem:[%s2470_s4 + $0xec] ss:$16 sps:$4 sm:$0xff]   ;;  %v2342_v5 = vshrl.u32 %v873_v4, 7 }
 0x120   : > { %795 = vmatpush1.bf16.msra.mxu0 %v1802_v6  ;;  %836 = vmatpush1.bf16.msra.mxu1 %v1820_v13  ;;  %v597_v31 = vpack.c.bf16 %v596_v28, %v596_v28  ;;  %v1841_v32 = vld [vmem:[%s2470_s4 + $0xe8] ss:$16 sps:$4 sm:$0xff]   ;;  %v1844_v33 = vld [vmem:[%s2471_s5 + $0x4] ss:$16 sps:$4 sm:$0xff]   ;;  %v1847_v34 = vld [vmem:[%s2471_s5 + $0xc] ss:$16 sps:$4 sm:$0xff]  }
 0x121   : > { %796 = vmatprep.subr.bf16.mxu0 %v1803_v7  ;;  %837 = vmatprep.subr.bf16.mxu1 %v1823_v14  ;;  %v1842_v35 = vld [vmem:[%s2471_s5] ss:$16 sps:$4 sm:$0xff]   ;;  %v1845_v36 = vld [vmem:[%s2471_s5 + $0x8] ss:$16 sps:$4 sm:$0xff]   ;;  %v1850_v37 = vld [vmem:[%s2471_s5 + $0x24] ss:$16 sps:$4 sm:$0xff]  }
 0x122   : > { %v1853_v38 = vld [vmem:[%s2471_s5 + $0x2c] ss:$16 sps:$4 sm:$0xff]   ;;  %v1848_v39 = vld [vmem:[%s2471_s5 + $0x20] ss:$16 sps:$4 sm:$0xff]   ;;  %v1851_v40 = vld [vmem:[%s2471_s5 + $0x28] ss:$16 sps:$4 sm:$0xff]  }
 0x123   : > { %v1856_v41 = vld [vmem:[%s2471_s5 + $0x44] ss:$16 sps:$4 sm:$0xff]   ;;  %v1859_v42 = vld [vmem:[%s2471_s5 + $0x4c] ss:$16 sps:$4 sm:$0xff]   ;;  %v1854_v43 = vld [vmem:[%s2471_s5 + $0x40] ss:$16 sps:$4 sm:$0xff]  }
 0x124   : > { %797 = vmatpush1.bf16.msra.mxu0 %v1807_v10  ;;  %838 = vmatpush1.bf16.msra.mxu1 %v1826_v17  ;;  %v1857_v44 = vld [vmem:[%s2471_s5 + $0x48] ss:$16 sps:$4 sm:$0xff]   ;;  %v1862_v45 = vld [vmem:[%s2471_s5 + $0x64] ss:$16 sps:$4 sm:$0xff]   ;;  %v1865_v46 = vld [vmem:[%s2471_s5 + $0x6c] ss:$16 sps:$4 sm:$0xff]  }
 0x125   : > { %798 = vmatprep.subr.bf16.mxu0 %v1809_v11  ;;  %839 = vmatprep.subr.bf16.mxu1 %v1829_v18  ;;  %v1860_v47 = vld [vmem:[%s2471_s5 + $0x60] ss:$16 sps:$4 sm:$0xff]   ;;  %v1863_v48 = vld [vmem:[%s2471_s5 + $0x68] ss:$16 sps:$4 sm:$0xff]   ;;  %v1868_v49 = vld [vmem:[%s2471_s5 + $0x84] ss:$16 sps:$4 sm:$0xff]  }
 0x126   : > { %v1871_v50 = vld [vmem:[%s2471_s5 + $0x8c] ss:$16 sps:$4 sm:$0xff]   ;;  %v1866_v51 = vld [vmem:[%s2471_s5 + $0x80] ss:$16 sps:$4 sm:$0xff]   ;;  %v1869_v52 = vld [vmem:[%s2471_s5 + $0x88] ss:$16 sps:$4 sm:$0xff]  }
 0x127   : > { %v1872_v53 = vld [vmem:[%s2471_s5 + $0xa0] ss:$16 sps:$4 sm:$0xff]   ;;  %v1874_v54 = vld [vmem:[%s2471_s5 + $0xa4] ss:$16 sps:$4 sm:$0xff]   ;;  %v1875_v55 = vld [vmem:[%s2471_s5 + $0xa8] ss:$16 sps:$4 sm:$0xff]  }
 0x128   : > { %799 = vmatpush1.bf16.msra.mxu0 %v1813_v15  ;;  %840 = vmatpush1.bf16.msra.mxu1 %v1832_v21  ;;  %v1877_v56 = vld [vmem:[%s2471_s5 + $0xac] ss:$16 sps:$4 sm:$0xff]   ;;  %v1880_v57 = vld [vmem:[%s2471_s5 + $0xc4] ss:$16 sps:$4 sm:$0xff]   ;;  %v1878_v59 = vld [vmem:[%s2471_s5 + $0xc0] ss:$16 sps:$4 sm:$0xff]  }
 0x129   : > { %800 = vmatprep.subr.bf16.mxu0 %v1815_v16  ;;  %841 = vmatprep.subr.bf16.mxu1 %v1833_v23  ;;  %v1883_v58 = vld [vmem:[%s2471_s5 + $0xcc] ss:$16 sps:$4 sm:$0xff]   ;;  %v1881_v60 = vld [vmem:[%s2471_s5 + $0xc8] ss:$16 sps:$4 sm:$0xff]   ;;  %v1886_v61 = vld [vmem:[%s2471_s5 + $0xe4] ss:$16 sps:$4 sm:$0xff]  }
 0x12a   : > { %v1889_v62 = vld [vmem:[%s2471_s5 + $0xec] ss:$16 sps:$4 sm:$0xff]   ;;  %v1884_v63 = vld [vmem:[%s2471_s5 + $0xe0] ss:$16 sps:$4 sm:$0xff]   ;;  %v1887_v1 = vld [vmem:[%s2471_s5 + $0xe8] ss:$16 sps:$4 sm:$0xff]  }
 0x12b   : > { %v1892_v2 = vld [vmem:[%s2472_s6 + $0x4] ss:$16 sps:$4 sm:$0xff]   ;;  %v1895_v3 = vld [vmem:[%s2472_s6 + $0xc] ss:$16 sps:$4 sm:$0xff]   ;;  %v875_v6 = vsub.s32 0, %v2342_v5  ;;  %v879_v8 = vsub.s32 1, %v2342_v5 }
 0x12c   : > { %801 = vmatpush1.bf16.msra.mxu0 %v1819_v19  ;;  %842 = vmatpush1.bf16.msra.mxu1 %v1835_v25  ;;  %v595_v7 = vld [vmem:[%s2469_s3] sm:$0xf]  ;;  %v887_v11 = vsub.s32 3, %v2342_v5  ;;  %v883_v21 = vsub.s32 2, %v2342_v5  ;;  %v1923_v4 = vld [vmem:[%s2472_s6 + $0xa8] ss:$16 sps:$4 sm:$0xff]  }
 0x12d   : > { %802 = vmatprep.subr.bf16.mxu0 %v1821_v20  ;;  %843 = vmatprep.subr.bf16.mxu1 %v1836_v26  ;;  %v876_v9 = vrot.slane %v595_v7, %v875_v6  ;;  %v880_v10 = vrot.slane %v595_v7, %v879_v8 }
 0x12e   : > { %v888_v19 = vrot.slane %v595_v7, %v887_v11  ;;  %v884_v26 = vrot.slane %v595_v7, %v883_v21  ;;  %v1928_v7 = vld [vmem:[%s2472_s6 + $0xc4] ss:$16 sps:$4 sm:$0xff]  }
 0x130   : > { %803 = vmatpush1.bf16.msra.mxu0 %v1825_v22  ;;  %844 = vmatpush1.bf16.msra.mxu1 %v1838_v29 }
 0x131   : > { %804 = vmatprep.subr.bf16.mxu0 %v1827_v24  ;;  %845 = vmatprep.subr.bf16.mxu1 %v1839_v30 }
 0x134   : > { %805 = vmatpush1.bf16.msra.mxu0 %v1831_v27  ;;  %846 = vmatpush1.bf16.msra.mxu1 %v1841_v32 }
 0x135   : > { %1118 = vmatprep.subr.bf16.mxu0 %v1844_v33  ;;  %1159 = vmatprep.subr.bf16.mxu1 %v1847_v34 }
 0x137   : > { %823 = vmatmul.mubr.bf16.vlgmr.msra.gmra.mrb[0].mxu0 %v597_v31  ;;  %864 = vmatmul.mubr.bf16.vlgmr.msra.gmra.mrb[0].mxu1 %v597_v31 }
 0x138   : > { %1150 = vmatprep.mubr.bf16.mxu0 %v1979_v0  ;;  %1191 = vmatprep.mubr.bf16.mxu1 %v1979_v0 }
 0x139   : > { %1119 = vmatpush1.bf16.msra.mxu0 %v1842_v35  ;;  %1160 = vmatpush1.bf16.msra.mxu1 %v1845_v36  ;;  %v916_v36 = vld [vmem:[#allocation3] sm:$0xff] }
 0x13a   : > { %1120 = vmatprep.subr.bf16.mxu0 %v1850_v37  ;;  %1161 = vmatprep.subr.bf16.mxu1 %v1853_v38 }
 0x13d   : > { %1121 = vmatpush1.bf16.msra.mxu0 %v1848_v39  ;;  %1162 = vmatpush1.bf16.msra.mxu1 %v1851_v40 }
 0x13e   : > { %1122 = vmatprep.subr.bf16.mxu0 %v1856_v41  ;;  %1163 = vmatprep.subr.bf16.mxu1 %v1859_v42 }
 0x141   : > { %1123 = vmatpush1.bf16.msra.mxu0 %v1854_v43  ;;  %1164 = vmatpush1.bf16.msra.mxu1 %v1857_v44 }
 0x142   : > { %1124 = vmatprep.subr.bf16.mxu0 %v1862_v45  ;;  %1165 = vmatprep.subr.bf16.mxu1 %v1865_v46  ;;  %v1890_v46 = vld [vmem:[%s2472_s6] ss:$16 sps:$4 sm:$0xff]  }
 0x145   : > { %1125 = vmatpush1.bf16.msra.mxu0 %v1860_v47  ;;  %1166 = vmatpush1.bf16.msra.mxu1 %v1863_v48  ;;  %v1893_v47 = vld [vmem:[%s2472_s6 + $0x8] ss:$16 sps:$4 sm:$0xff]  }
 0x146   : > { %1126 = vmatprep.subr.bf16.mxu0 %v1868_v49  ;;  %1167 = vmatprep.subr.bf16.mxu1 %v1871_v50  ;;  %v1898_v49 = vld [vmem:[%s2472_s6 + $0x24] ss:$16 sps:$4 sm:$0xff]   ;;  %v1901_v50 = vld [vmem:[%s2472_s6 + $0x2c] ss:$16 sps:$4 sm:$0xff]  }
 0x149   : > { %1127 = vmatpush1.bf16.msra.mxu0 %v1866_v51  ;;  %1168 = vmatpush1.bf16.msra.mxu1 %v1869_v52  ;;  %v1896_v51 = vld [vmem:[%s2472_s6 + $0x20] ss:$16 sps:$4 sm:$0xff]   ;;  %v1899_v52 = vld [vmem:[%s2472_s6 + $0x28] ss:$16 sps:$4 sm:$0xff]  }
 0x14a   : > { %1128 = vmatprep.subr.bf16.mxu0 %v1874_v54  ;;  %1169 = vmatprep.subr.bf16.mxu1 %v1877_v56  ;;  %v1907_v54 = vld [vmem:[%s2472_s6 + $0x4c] ss:$16 sps:$4 sm:$0xff]   ;;  %v1905_v56 = vld [vmem:[%s2472_s6 + $0x48] ss:$16 sps:$4 sm:$0xff]  }
 0x14d   : > { %1129 = vmatpush1.bf16.msra.mxu0 %v1872_v53  ;;  %1170 = vmatpush1.bf16.msra.mxu1 %v1875_v55  ;;  %v1904_v53 = vld [vmem:[%s2472_s6 + $0x44] ss:$16 sps:$4 sm:$0xff]   ;;  %v1902_v55 = vld [vmem:[%s2472_s6 + $0x40] ss:$16 sps:$4 sm:$0xff]  }
 0x14e   : > { %1130 = vmatprep.subr.bf16.mxu0 %v1880_v57  ;;  %1171 = vmatprep.subr.bf16.mxu1 %v1883_v58  ;;  %v1910_v57 = vld [vmem:[%s2472_s6 + $0x64] ss:$16 sps:$4 sm:$0xff]   ;;  %v1908_v58 = vld [vmem:[%s2472_s6 + $0x60] ss:$16 sps:$4 sm:$0xff]  }
 0x151   : > { %1131 = vmatpush1.bf16.msra.mxu0 %v1878_v59  ;;  %1172 = vmatpush1.bf16.msra.mxu1 %v1881_v60  ;;  %v1911_v59 = vld [vmem:[%s2472_s6 + $0x68] ss:$16 sps:$4 sm:$0xff]   ;;  %v1916_v60 = vld [vmem:[%s2472_s6 + $0x84] ss:$16 sps:$4 sm:$0xff]  }
 0x152   : > { %1132 = vmatprep.subr.bf16.mxu0 %v1886_v61  ;;  %1173 = vmatprep.subr.bf16.mxu1 %v1889_v62  ;;  %v1919_v61 = vld [vmem:[%s2472_s6 + $0x8c] ss:$16 sps:$4 sm:$0xff]   ;;  %v1914_v62 = vld [vmem:[%s2472_s6 + $0x80] ss:$16 sps:$4 sm:$0xff]  }
 0x155   : > { %1133 = vmatpush1.bf16.msra.mxu0 %v1884_v63  ;;  %1174 = vmatpush1.bf16.msra.mxu1 %v1887_v1  ;;  %v1917_v63 = vld [vmem:[%s2472_s6 + $0x88] ss:$16 sps:$4 sm:$0xff]   ;;  %v1922_v1 = vld [vmem:[%s2472_s6 + $0xa4] ss:$16 sps:$4 sm:$0xff]  }
 0x156   : > { %1419 = vmatprep.subr.bf16.mxu0 %v1892_v2  ;;  %1460 = vmatprep.subr.bf16.mxu1 %v1895_v3  ;;  %v1925_v2 = vld [vmem:[%s2472_s6 + $0xac] ss:$16 sps:$4 sm:$0xff]   ;;  %v1920_v3 = vld [vmem:[%s2472_s6 + $0xa0] ss:$16 sps:$4 sm:$0xff]  }
 0x20a   : > { %v824_v12 = vpop.f32.mrb[0].mxu0  ;;  %v865_v22 = vpop.f32.mrb[0].mxu1 }
 0x20b   : > { %v893_v13 = vadd.f32 %v876_v9, %v824_v12  ;;  %v826_v14 = vpop.f32.mrb[1].mxu0  ;;  %v867_v23 = vpop.f32.mrb[1].mxu1  ;;  %v895_v29 = vadd.f32 %v884_v26, %v865_v22  ;;  %v1931_v9 = vld [vmem:[%s2472_s6 + $0xcc] ss:$16 sps:$4 sm:$0xff]   ;;  %v1929_v12 = vld [vmem:[%s2472_s6 + $0xc8] ss:$16 sps:$4 sm:$0xff]  }
 0x20c   : > { %v894_v15 = vadd.f32 %v880_v10, %v826_v14  ;;  %v828_v16 = vpop.f32.mrb[2].mxu0  ;;  %v896_v24 = vadd.f32 %v888_v19, %v867_v23  ;;  %v869_v25 = vpop.f32.mrb[2].mxu1  ;;  %v1926_v10 = vld [vmem:[%s2472_s6 + $0xc0] ss:$16 sps:$4 sm:$0xff]   ;;  %v1937_v14 = vld [vmem:[%s2472_s6 + $0xec] ss:$16 sps:$4 sm:$0xff]  }
 0x20d   : > { %v1644_v17 = vmul.f32 -1.442695, %v893_v13  ;;  %v829_v18 = vpop.f32.mrb[3].mxu0  ;;  %v870_v27 = vpop.f32.mrb[3].mxu1  ;;  %v1934_v13 = vld [vmem:[%s2472_s6 + $0xe4] ss:$16 sps:$4 sm:$0xff]  }
 0x20e   : > { %v1645_v20 = vmul.f32 -1.442695, %v894_v15  ;;  %v1646_v28 = vmul.f32 -1.442695, %v896_v24  ;;  %v1932_v15 = vld [vmem:[%s2472_s6 + $0xe0] ss:$16 sps:$4 sm:$0xff]  }
 0x20f   : > { %1938 = vpow2.f32 %v1644_v17  ;;  %v1935_v16 = vld [vmem:[%s2472_s6 + $0xe8] ss:$16 sps:$4 sm:$0xff]   ;;  %v1225_v17 = vld [vmem:[#allocation4] sm:$0xff]  ;;  %v924_v19 = vld [vmem:[%s2473_s7] sm:$0xf] }
 0x210   : > { %1940 = vpow2.f32 %v1645_v20  ;;  %v1226_v18 = vpack.c.bf16 %v1225_v17, %v1225_v17  ;;  %v1204_v20 = vrot.slane %v924_v19, %v875_v6  ;;  %v1208_v22 = vrot.slane %v924_v19, %v879_v8 }
 0x211   : > { %1942 = vpow2.f32 %v1646_v28  ;;  %v1212_v8 = vrot.slane %v924_v19, %v883_v21 }
 0x212   : > { %1944 = vtanh.f32 %v895_v29 }
 0x219   : > { %v1939_v30 = vpop.eup %1938 }
 0x21a   : > { %v1941_v31 = vpop.eup %1940  ;;  %v900_v32 = vadd.f32 1.0, %v1939_v30 }
 0x21b   : > { %v906_v33 = vadd.f32 1.0, %v1941_v31  ;;  %v1943_v34 = vpop.eup %1942 }
 0x21c   : > { %1946 = vrcp.f32 %v900_v32  ;;  %v1945_v35 = vpop.eup %1944  ;;  %v913_v38 = vadd.f32 1.0, %v1943_v34 }
 0x21d   : > { %1948 = vrcp.f32 %v906_v33 }
 0x21e   : > { %1950 = vrcp.f32 %v913_v38 }
 0x226   : > { %v1947_v37 = vpop.eup %1946 }
 0x227   : > { %v1949_v39 = vpop.eup %1948  ;;  %v918_v40 = vmul.f32 %v1947_v37, %v1945_v35  ;;  %v1216_v35 = vrot.slane %v924_v19, %v887_v11  ;;  %v1524_v11 = vld [vmem:[#allocation5] sm:$0xff] }
 0x228   : > { %v917_v41 = vmul.f32 %v1949_v39, %v916_v36  ;;  %v1951_v43 = vpop.eup %1950 }
 0x22a   : > { %v919_v42 = vadd.f32 %v918_v40, %v917_v41 }
 0x22c   : > { %1952 = vtanh.f32 %v919_v42  ;;  %922 = vst [vmem:[#allocation3] sm:$0xff] %v919_v42 }
 0x236   : > { %v1953_v44 = vpop.eup %1952 }
 0x237   : > { %v921_v45 = vmul.f32 %v1953_v44, %v1951_v43 }
 0x239   : > { %923 = vst [vmem:[#allocation2] sm:$0xff] %v921_v45  ;;  %v925_v48 = vpack.c.bf16 %v921_v45, %v921_v45 }
 0x23b   : > { %1151 = vmatmul.mubr.bf16.vlgmr.msra.gmra.mrb[4].mxu0 %v925_v48  ;;  %1192 = vmatmul.mubr.bf16.vlgmr.msra.gmra.mrb[4].mxu1 %v925_v48 }
 0x23c   : > { %1420 = vmatpush1.bf16.msra.mxu0 %v1890_v46  ;;  %1461 = vmatpush1.bf16.msra.mxu1 %v1893_v47 }
 0x23d   : > { %1421 = vmatprep.subr.bf16.mxu0 %v1898_v49  ;;  %1462 = vmatprep.subr.bf16.mxu1 %v1901_v50 }
 0x23e   : > { %1451 = vmatprep.mubr.bf16.mxu0 %v1979_v0  ;;  %1492 = vmatprep.mubr.bf16.mxu1 %v1979_v0  ;;  %v1913_v0 = vld [vmem:[%s2472_s6 + $0x6c] ss:$16 sps:$4 sm:$0xff]  }
 0x240   : > { %1422 = vmatpush1.bf16.msra.mxu0 %v1896_v51  ;;  %1463 = vmatpush1.bf16.msra.mxu1 %v1899_v52 }
 0x241   : > { %1423 = vmatprep.subr.bf16.mxu0 %v1904_v53  ;;  %1464 = vmatprep.subr.bf16.mxu1 %v1907_v54 }
 0x244   : > { %1424 = vmatpush1.bf16.msra.mxu0 %v1902_v55  ;;  %1465 = vmatpush1.bf16.msra.mxu1 %v1905_v56 }
 0x245   : > { %1425 = vmatprep.subr.bf16.mxu0 %v1910_v57  ;;  %1466 = vmatprep.subr.bf16.mxu1 %v1913_v0 }
 0x248   : > { %1426 = vmatpush1.bf16.msra.mxu0 %v1908_v58  ;;  %1467 = vmatpush1.bf16.msra.mxu1 %v1911_v59 }
 0x249   : > { %1427 = vmatprep.subr.bf16.mxu0 %v1916_v60  ;;  %1468 = vmatprep.subr.bf16.mxu1 %v1919_v61 }
 0x24c   : > { %1428 = vmatpush1.bf16.msra.mxu0 %v1914_v62  ;;  %1469 = vmatpush1.bf16.msra.mxu1 %v1917_v63 }
 0x24d   : > { %1429 = vmatprep.subr.bf16.mxu0 %v1922_v1  ;;  %1470 = vmatprep.subr.bf16.mxu1 %v1925_v2 }
 0x250   : > { %1430 = vmatpush1.bf16.msra.mxu0 %v1920_v3  ;;  %1471 = vmatpush1.bf16.msra.mxu1 %v1923_v4 }
 0x251   : > { %1431 = vmatprep.subr.bf16.mxu0 %v1928_v7  ;;  %1472 = vmatprep.subr.bf16.mxu1 %v1931_v9 }
 0x254   : > { %1432 = vmatpush1.bf16.msra.mxu0 %v1926_v10  ;;  %1473 = vmatpush1.bf16.msra.mxu1 %v1929_v12 }
 0x255   : > { %1433 = vmatprep.subr.bf16.mxu0 %v1934_v13  ;;  %1474 = vmatprep.subr.bf16.mxu1 %v1937_v14 }
 0x258   : > { %1434 = vmatpush1.bf16.msra.mxu0 %v1932_v15  ;;  %1475 = vmatpush1.bf16.msra.mxu1 %v1935_v16 }
 0x25b   : > { %1452 = vmatmul.mubr.bf16.vlgmr.msra.gmra.mrb[4].mxu0 %v1226_v18  ;;  %1493 = vmatmul.mubr.bf16.vlgmr.msra.gmra.mrb[4].mxu1 %v1226_v18 }
 0x32e   : > { %v1453_v23 = vpop.f32.mrb[4].mxu0  ;;  %v1494_v24 = vpop.f32.mrb[4].mxu1 }
 0x32f   : > { %v1716_v25 = vadd.f32 %v1453_v23, %v1204_v20  ;;  %v1455_v26 = vpop.f32.mrb[5].mxu0  ;;  %v1496_v27 = vpop.f32.mrb[5].mxu1  ;;  %v1718_v37 = vadd.f32 %v1494_v24, %v1212_v8 }
 0x330   : > { %v1717_v28 = vadd.f32 %v1455_v26, %v1208_v22  ;;  %v1457_v29 = vpop.f32.mrb[6].mxu0  ;;  %v1498_v30 = vpop.f32.mrb[6].mxu1  ;;  %v1719_v6 = vadd.f32 %v1496_v27, %v1216_v35 }
 0x331   : > { %v1711_v31 = vmul.f32 -1.442695, %v1716_v25  ;;  %v1458_v32 = vpop.f32.mrb[7].mxu0  ;;  %v1499_v33 = vpop.f32.mrb[7].mxu1 }
 0x332   : > { %v1712_v34 = vmul.f32 -1.442695, %v1717_v28  ;;  %v1713_v36 = vmul.f32 -1.442695, %v1719_v6 }
 0x333   : > { %1954 = vpow2.f32 %v1711_v31 }
 0x334   : > { %1956 = vpow2.f32 %v1712_v34 }
 0x335   : > { %1958 = vpow2.f32 %v1713_v36 }
 0x336   : > { %1960 = vtanh.f32 %v1718_v37 }
 0x33d   : > { %v1955_v38 = vpop.eup %1954 }
 0x33e   : > { %v1957_v39 = vpop.eup %1956  ;;  %v1508_v40 = vadd.f32 1.0, %v1955_v38 }
 0x33f   : > { %v1514_v41 = vadd.f32 1.0, %v1957_v39  ;;  %v1959_v42 = vpop.eup %1958 }
 0x340   : > { %1962 = vrcp.f32 %v1508_v40  ;;  %v1961_v43 = vpop.eup %1960  ;;  %v1521_v47 = vadd.f32 1.0, %v1959_v42 }
 0x341   : > { %1964 = vrcp.f32 %v1514_v41 }
 0x342   : > { %1966 = vrcp.f32 %v1521_v47 }
 0x34a   : > { %v1963_v44 = vpop.eup %1962 }
 0x34b   : > { %v1965_v45 = vpop.eup %1964  ;;  %v1526_v46 = vmul.f32 %v1963_v44, %v1961_v43 }
 0x34c   : > { %v1525_v5 = vmul.f32 %v1965_v45, %v1524_v11  ;;  %v1967_v48 = vpop.eup %1966 }
 0x34e   : > { %v1527_v21 = vadd.f32 %v1526_v46, %v1525_v5 }
 0x350   : > { %1968 = vtanh.f32 %v1527_v21  ;;  %1530 = vst [vmem:[#allocation5] sm:$0xff] %v1527_v21 }
 0x35a   : > { %v1969_v49 = vpop.eup %1968 }
 0x35b   : > { %v1529_v50 = vmul.f32 %v1969_v49, %v1967_v48 }
 0x35d   : > { %1531 = vst [vmem:[#allocation4] sm:$0xff] %v1529_v50  ;;  %1532 = vst [vmem:[%s2036_s11] sm:$0xff] %v1529_v50 }
 0x35e PF: > { %s18_s27 = sadd.s32 1, %s1976_s27  }
 0x35f   : > { %p15_p5 = scmp.ge.s32.totalorder %s18_s27, 4  }
 0x361   :  { %17 = sbr.rel (!%p15_p5) target bundleno = 1 (0x1), region = 83 }

// kernel: vae_forward.13
= control target key start
LH: loop header
LB: loop body
LE: loop exit
PB: predicated region body
PF: predicated region fallthrough
CT: control target
= control target key end

     0   :  { %s3058_s13 = smov 0   ;;  %s3060_s14 = smov 0   ;;  %s3748_s0 = inlined_call_operand.vmem [shape: f32[2,8,128], index: 0, kind: input, shape index: {}]   ;;  %s3749_s1 = inlined_call_operand.vmem [shape: bf16[128,1024], index: 1, kind: input, shape index: {}]   ;;  %s3750_s2 = inlined_call_operand.vmem [shape: f32[1,1024], index: 2, kind: input, shape index: {}]   ;;  %s3751_s3 = inlined_call_operand.vmem [shape: bf16[128,512], index: 3, kind: input, shape index: {}]   ;;  %s3752_s4 = inlined_call_operand.vmem [shape: bf16[128,512], index: 4, kind: input, shape index: {}]   ;;  %s3753_s5 = inlined_call_operand.vmem [shape: bf16[128,512], index: 5, kind: input, shape index: {}]   ;;  %s3754_s6 = inlined_call_operand.vmem [shape: bf16[128,512], index: 6, kind: input, shape index: {}]   ;;  %s3755_s7 = inlined_call_operand.vmem [shape: f32[1,512], index: 7, kind: input, shape index: {}]   ;;  %s3756_s8 = inlined_call_operand.vmem [shape: bf16[128,128], index: 8, kind: input, shape index: {}]   ;;  %s3757_s9 = inlined_call_operand.vmem [shape: f32[1,128], index: 9, kind: input, shape index: {}]   ;;  %s3758_s10 = inlined_call_operand.vmem [shape: f32[2,8,8,128], index: 10, kind: output, shape index: {}]  }
   0x1   :  { %s3062_s15 = smov 0   ;;  %s3064_s16 = smov 0  }
   0x2   :  { %s3066_s17 = smov 0  }
   0x3 LB: > { %s29_s18 = sadd.s32 1, %s2988_s15  ;;  %s32_s19 = sadd.s32 1, %s2992_s16  ;;  %s2996_s17 = sphi %s3066_s17, %s20_s17   ;;  %s2992_s16 = sphi %s3064_s16, %s3762_s16   ;;  %s2988_s15 = sphi %s3062_s15, %s3761_s15   ;;  %s2984_s14 = sphi %s3060_s14, %s3760_s14   ;;  %s2980_s13 = sphi %s3058_s13, %s3759_s13  }
   0x4   : > { %p30_p0 = scmp.ge.s32.totalorder %s29_s18, 8  ;;  %p2402_p1 = scmp.ge.s32.totalorder %s2996_s17, 1 }
   0x5   : > { %p325_p2 = scmp.lt.s32.totalorder %s2996_s17, 17 }
   0x6   : > { %s3764_s18 = smov (%p30_p0, %s29_s18), 0  ;;  %s3766_s19 = smov (!%p30_p0, %s32_s19), %s2992_s16 }
   0x7   : > { %p326_p3 = pnand %p2402_p1, %p325_p2  ;;  %p34_p4 = scmp.ge.s32.totalorder %s3766_s19, 2 }
   0x8   : > { %p365_p5 = scmp.lt.s32.totalorder (!%p326_p3), %s2984_s14, 1  ;;  %p371_p6 = scmp.lt.s32.totalorder (!%p326_p3), %s2980_s13, 7 }
   0x9   : > { %s3768_s19 = smov (%p34_p4, %s3766_s19), 0  ;;  %329 = sbr.rel (%p326_p3) target bundleno = 1454 (0x5ae), region = 60 }
   0xa   : > { %p378_p7 = scmp.eq.s32.totalorder (!%p326_p3), %s2984_s14, 0  ;;  %p379_p8 = scmp.eq.s32.totalorder (!%p326_p3), %s2980_s13, 0 }
   0xc   : > { %p380_p9 = pnand (!%p326_p3), %p379_p8, %p378_p7 }
  0x10   : > { %s3770_s14 = smov (!%p365_p5, %s2984_s14), 1  ;;  %383 = sbr.rel (%p380_p9) target bundleno = 23 (0x17), region = 64 }
  0x11   : > { %s372_s20 = scalar_select %p371_p6, %s2980_s13, 7 }
  0x12   : > { %s2403_s21 = sshll.u32 %s3770_s14, 3  ;;  %v2998_v0 = vmov (!%p380_p9), 0.0  }
  0x13   : > { %s3096_s24 = scalar_lea.vmem %s3748_s0, %s2403_s21  ;;  %s374_s25 = sadd.s32 %s2403_s21, %s372_s20  ;;  %384 = vst [vmem:[#allocation7] sm:$0xff] (!%p380_p9), %v2998_v0 }
  0x14   : > { %s2405_s26 = sshll.u32 %s374_s25, 3 }
  0x15   : > { %s3101_s29 = scalar_lea.vmem %s3758_s10, %s2405_s26 }
  0x17 PF: > { %p2406_p10 = scmp.ne.s32.totalorder %s2980_s13, 0 }
  0x18   : > { %v390_v1 = vld [vmem:[%s3749_s1] sm:$0xff] (!%p2406_p10)  ;;  %v391_v3 = vld [vmem:[%s3749_s1 + $0x8] sm:$0xff] (!%p2406_p10)  ;;  %v2999_v9 = vmov (!%p2406_p10), 0   ;;  %v392_v0 = vld [vmem:[%s3749_s1 + $0x10] sm:$0xff] (!%p2406_p10) }
  0x19   : > { %387 = sbr.rel (%p2406_p10) target bundleno = 308 (0x134), region = 68  ;;  %v394_v2 = vld [vmem:[%s3749_s1 + $0x20] sm:$0xff] (!%p2406_p10)  ;;  %v395_v5 = vld [vmem:[%s3749_s1 + $0x28] sm:$0xff] (!%p2406_p10)  ;;  %848 = vmatprep.mubr.bf16.mxu0 (!%p2406_p10), %v2999_v9  ;;  %889 = vmatprep.mubr.bf16.mxu1 (!%p2406_p10), %v2999_v9 }
  0x1a   : > { %v2408_v4 = vcombine.high (!%p2406_p10), %v390_v1, %v394_v2  ;;  %v2407_v6 = vcombine.low (!%p2406_p10), %v390_v1, %v394_v2  ;;  %v398_v7 = vld [vmem:[%s3749_s1 + $0x40] sm:$0xff] (!%p2406_p10)  ;;  %v2410_v10 = vcombine.high (!%p2406_p10), %v391_v3, %v395_v5  ;;  %v2409_v11 = vcombine.low (!%p2406_p10), %v391_v3, %v395_v5  ;;  %v399_v13 = vld [vmem:[%s3749_s1 + $0x48] sm:$0xff] (!%p2406_p10)  ;;  %v396_v1 = vld [vmem:[%s3749_s1 + $0x30] sm:$0xff] (!%p2406_p10) }
  0x1b   : > { %v402_v8 = vld [vmem:[%s3749_s1 + $0x60] sm:$0xff] (!%p2406_p10)  ;;  %v403_v14 = vld [vmem:[%s3749_s1 + $0x68] sm:$0xff] (!%p2406_p10)  ;;  %v393_v2 = vld [vmem:[%s3749_s1 + $0x18] sm:$0xff] (!%p2406_p10) }
  0x1c   : > { %v2416_v12 = vcombine.high (!%p2406_p10), %v398_v7, %v402_v8  ;;  %v406_v15 = vld [vmem:[%s3749_s1 + $0x80] sm:$0xff] (!%p2406_p10)  ;;  %816 = vmatprep.subr.bf16.mxu0 (!%p2406_p10), %v2408_v4  ;;  %v2418_v16 = vcombine.high (!%p2406_p10), %v399_v13, %v403_v14  ;;  %v407_v18 = vld [vmem:[%s3749_s1 + $0x88] sm:$0xff] (!%p2406_p10)  ;;  %857 = vmatprep.subr.bf16.mxu1 (!%p2406_p10), %v2410_v10  ;;  %v2415_v20 = vcombine.low (!%p2406_p10), %v398_v7, %v402_v8  ;;  %v397_v3 = vld [vmem:[%s3749_s1 + $0x38] sm:$0xff] (!%p2406_p10) }
  0x1d   : > { %v410_v17 = vld [vmem:[%s3749_s1 + $0xa0] sm:$0xff] (!%p2406_p10)  ;;  %v411_v19 = vld [vmem:[%s3749_s1 + $0xa8] sm:$0xff] (!%p2406_p10)  ;;  %817 = vmatpush1.bf16.msra.mxu0 (!%p2406_p10), %v2407_v6  ;;  %858 = vmatpush1.bf16.msra.mxu1 (!%p2406_p10), %v2409_v11  ;;  %v2417_v21 = vcombine.low (!%p2406_p10), %v399_v13, %v403_v14  ;;  %v2412_v7 = vcombine.high (!%p2406_p10), %v392_v0, %v396_v1  ;;  %v2414_v8 = vcombine.high (!%p2406_p10), %v393_v2, %v397_v3  ;;  %v400_v10 = vld [vmem:[%s3749_s1 + $0x50] sm:$0xff] (!%p2406_p10) }
  0x1e   : > { %818 = vmatprep.subr.bf16.mxu0 (!%p2406_p10), %v2416_v12  ;;  %v2424_v22 = vcombine.high (!%p2406_p10), %v406_v15, %v410_v17  ;;  %859 = vmatprep.subr.bf16.mxu1 (!%p2406_p10), %v2418_v16  ;;  %v2426_v23 = vcombine.high (!%p2406_p10), %v407_v18, %v411_v19  ;;  %v414_v24 = vld [vmem:[%s3749_s1 + $0xc0] sm:$0xff] (!%p2406_p10)  ;;  %v415_v26 = vld [vmem:[%s3749_s1 + $0xc8] sm:$0xff] (!%p2406_p10)  ;;  %v2423_v28 = vcombine.low (!%p2406_p10), %v406_v15, %v410_v17  ;;  %v404_v11 = vld [vmem:[%s3749_s1 + $0x70] sm:$0xff] (!%p2406_p10) }
  0x1f   : > { %v418_v25 = vld [vmem:[%s3749_s1 + $0xe0] sm:$0xff] (!%p2406_p10)  ;;  %v419_v27 = vld [vmem:[%s3749_s1 + $0xe8] sm:$0xff] (!%p2406_p10)  ;;  %v2425_v29 = vcombine.low (!%p2406_p10), %v407_v18, %v411_v19  ;;  %v401_v13 = vld [vmem:[%s3749_s1 + $0x58] sm:$0xff] (!%p2406_p10)  ;;  %v2411_v15 = vcombine.low (!%p2406_p10), %v392_v0, %v396_v1  ;;  %v2413_v16 = vcombine.low (!%p2406_p10), %v393_v2, %v397_v3  ;;  %v2420_v17 = vcombine.high (!%p2406_p10), %v400_v10, %v404_v11 }
  0x20   : > { %v2432_v30 = vcombine.high %v414_v24, %v418_v25  ;;  %v2434_v31 = vcombine.high %v415_v26, %v419_v27  ;;  %v422_v32 = vld [vmem:[%s3749_s1 + $0x100] sm:$0xff]  ;;  %v423_v34 = vld [vmem:[%s3749_s1 + $0x108] sm:$0xff]  ;;  %v2431_v36 = vcombine.low %v414_v24, %v418_v25  ;;  %v2433_v37 = vcombine.low %v415_v26, %v419_v27  ;;  %v405_v14 = vld [vmem:[%s3749_s1 + $0x78] sm:$0xff] }
  0x21   : > { %819 = vmatpush1.bf16.msra.mxu0 %v2415_v20  ;;  %860 = vmatpush1.bf16.msra.mxu1 %v2417_v21  ;;  %v426_v33 = vld [vmem:[%s3749_s1 + $0x120] sm:$0xff]  ;;  %v427_v35 = vld [vmem:[%s3749_s1 + $0x128] sm:$0xff]  ;;  %v2422_v18 = vcombine.high %v401_v13, %v405_v14  ;;  %v408_v19 = vld [vmem:[%s3749_s1 + $0x90] sm:$0xff]  ;;  %v2421_v24 = vcombine.low %v401_v13, %v405_v14 }
  0x22   : > { %820 = vmatprep.subr.bf16.mxu0 %v2424_v22  ;;  %861 = vmatprep.subr.bf16.mxu1 %v2426_v23  ;;  %v2440_v38 = vcombine.high %v422_v32, %v426_v33  ;;  %v2442_v39 = vcombine.high %v423_v34, %v427_v35  ;;  %v430_v40 = vld [vmem:[%s3749_s1 + $0x140] sm:$0xff]  ;;  %v431_v42 = vld [vmem:[%s3749_s1 + $0x148] sm:$0xff]  ;;  %v2439_v44 = vcombine.low %v422_v32, %v426_v33  ;;  %v412_v20 = vld [vmem:[%s3749_s1 + $0xb0] sm:$0xff] }
  0x23   : > { %v434_v41 = vld [vmem:[%s3749_s1 + $0x160] sm:$0xff]  ;;  %v435_v43 = vld [vmem:[%s3749_s1 + $0x168] sm:$0xff]  ;;  %v2441_v45 = vcombine.low %v423_v34, %v427_v35  ;;  %v409_v21 = vld [vmem:[%s3749_s1 + $0x98] sm:$0xff]  ;;  %v2419_v23 = vcombine.low %v400_v10, %v404_v11  ;;  %v2428_v25 = vcombine.high %v408_v19, %v412_v20 }
  0x24   : > { %v2448_v46 = vcombine.high %v430_v40, %v434_v41  ;;  %v2450_v47 = vcombine.high %v431_v42, %v435_v43  ;;  %v438_v48 = vld [vmem:[%s3749_s1 + $0x180] sm:$0xff]  ;;  %v439_v50 = vld [vmem:[%s3749_s1 + $0x188] sm:$0xff]  ;;  %v2447_v52 = vcombine.low %v430_v40, %v434_v41  ;;  %v2449_v53 = vcombine.low %v431_v42, %v435_v43  ;;  %v413_v22 = vld [vmem:[%s3749_s1 + $0xb8] sm:$0xff] }
  0x25   : > { %821 = vmatpush1.bf16.msra.mxu0 %v2423_v28  ;;  %862 = vmatpush1.bf16.msra.mxu1 %v2425_v29  ;;  %v442_v49 = vld [vmem:[%s3749_s1 + $0x1a0] sm:$0xff]  ;;  %v443_v51 = vld [vmem:[%s3749_s1 + $0x1a8] sm:$0xff]  ;;  %v2430_v26 = vcombine.high %v409_v21, %v413_v22  ;;  %v416_v27 = vld [vmem:[%s3749_s1 + $0xd0] sm:$0xff]  ;;  %v2429_v32 = vcombine.low %v409_v21, %v413_v22 }
  0x26   : > { %822 = vmatprep.subr.bf16.mxu0 %v2432_v30  ;;  %863 = vmatprep.subr.bf16.mxu1 %v2434_v31  ;;  %v2456_v54 = vcombine.high %v438_v48, %v442_v49  ;;  %v2458_v55 = vcombine.high %v439_v50, %v443_v51  ;;  %v446_v56 = vld [vmem:[%s3749_s1 + $0x1c0] sm:$0xff]  ;;  %v447_v58 = vld [vmem:[%s3749_s1 + $0x1c8] sm:$0xff]  ;;  %v2455_v60 = vcombine.low %v438_v48, %v442_v49  ;;  %v420_v28 = vld [vmem:[%s3749_s1 + $0xf0] sm:$0xff] }
  0x27   : > { %v450_v57 = vld [vmem:[%s3749_s1 + $0x1e0] sm:$0xff]  ;;  %v451_v59 = vld [vmem:[%s3749_s1 + $0x1e8] sm:$0xff]  ;;  %v2457_v61 = vcombine.low %v439_v50, %v443_v51  ;;  %v417_v29 = vld [vmem:[%s3749_s1 + $0xd8] sm:$0xff]  ;;  %v2427_v31 = vcombine.low %v408_v19, %v412_v20  ;;  %v2436_v33 = vcombine.high %v416_v27, %v420_v28 }
  0x28   : > { %v2464_v62 = vcombine.high %v446_v56, %v450_v57  ;;  %v2466_v63 = vcombine.high %v447_v58, %v451_v59  ;;  %v2463_v4 = vcombine.low %v446_v56, %v450_v57  ;;  %v388_v5 = vld [vmem:[%s3096_s24] sm:$0xff]  ;;  %v2465_v6 = vcombine.low %v447_v58, %v451_v59  ;;  %v421_v30 = vld [vmem:[%s3749_s1 + $0xf8] sm:$0xff]  ;;  %v424_v35 = vld [vmem:[%s3749_s1 + $0x110] sm:$0xff] }
  0x29   : > { %823 = vmatpush1.bf16.msra.mxu0 %v2431_v36  ;;  %864 = vmatpush1.bf16.msra.mxu1 %v2433_v37  ;;  %v3221_v12 = vpack.c.bf16 %v388_v5, %v388_v5  ;;  %v2438_v34 = vcombine.high %v417_v29, %v421_v30  ;;  %v428_v36 = vld [vmem:[%s3749_s1 + $0x130] sm:$0xff]  ;;  %v429_v37 = vld [vmem:[%s3749_s1 + $0x138] sm:$0xff] }
  0x2a   : > { %824 = vmatprep.subr.bf16.mxu0 %v2440_v38  ;;  %865 = vmatprep.subr.bf16.mxu1 %v2442_v39  ;;  %v2435_v38 = vcombine.low %v416_v27, %v420_v28  ;;  %v2437_v39 = vcombine.low %v417_v29, %v421_v30  ;;  %v2444_v40 = vcombine.high %v424_v35, %v428_v36  ;;  %v432_v42 = vld [vmem:[%s3749_s1 + $0x150] sm:$0xff] }
  0x2b   : > { %v436_v43 = vld [vmem:[%s3749_s1 + $0x170] sm:$0xff] }
  0x2c   : > { %v2452_v48 = vcombine.high %v432_v42, %v436_v43  ;;  %v440_v50 = vld [vmem:[%s3749_s1 + $0x190] sm:$0xff] }
  0x2d   : > { %825 = vmatpush1.bf16.msra.mxu0 %v2439_v44  ;;  %866 = vmatpush1.bf16.msra.mxu1 %v2441_v45  ;;  %v433_v44 = vld [vmem:[%s3749_s1 + $0x158] sm:$0xff]  ;;  %v444_v51 = vld [vmem:[%s3749_s1 + $0x1b0] sm:$0xff] }
  0x2e   : > { %826 = vmatprep.subr.bf16.mxu0 %v2448_v46  ;;  %867 = vmatprep.subr.bf16.mxu1 %v2450_v47  ;;  %v437_v45 = vld [vmem:[%s3749_s1 + $0x178] sm:$0xff]  ;;  %v2443_v46 = vcombine.low %v424_v35, %v428_v36  ;;  %v2460_v56 = vcombine.high %v440_v50, %v444_v51  ;;  %v448_v58 = vld [vmem:[%s3749_s1 + $0x1d0] sm:$0xff] }
  0x2f   : > { %v2454_v49 = vcombine.high %v433_v44, %v437_v45  ;;  %v452_v59 = vld [vmem:[%s3749_s1 + $0x1f0] sm:$0xff] }
  0x30   : > { %v2468_v0 = vcombine.high %v448_v58, %v452_v59  ;;  %v2467_v2 = vcombine.low %v448_v58, %v452_v59 }
  0x31   : > { %827 = vmatpush1.bf16.msra.mxu0 %v2447_v52  ;;  %868 = vmatpush1.bf16.msra.mxu1 %v2449_v53  ;;  %v441_v52 = vld [vmem:[%s3749_s1 + $0x198] sm:$0xff] }
  0x32   : > { %828 = vmatprep.subr.bf16.mxu0 %v2456_v54  ;;  %869 = vmatprep.subr.bf16.mxu1 %v2458_v55  ;;  %v445_v53 = vld [vmem:[%s3749_s1 + $0x1b8] sm:$0xff]  ;;  %v2451_v54 = vcombine.low %v432_v42, %v436_v43  ;;  %v2453_v55 = vcombine.low %v433_v44, %v437_v45 }
  0x33   : > { %v2462_v57 = vcombine.high %v441_v52, %v445_v53 }
  0x35   : > { %829 = vmatpush1.bf16.msra.mxu0 %v2455_v60  ;;  %870 = vmatpush1.bf16.msra.mxu1 %v2457_v61  ;;  %v449_v60 = vld [vmem:[%s3749_s1 + $0x1d8] sm:$0xff] }
  0x36   : > { %830 = vmatprep.subr.bf16.mxu0 %v2464_v62  ;;  %871 = vmatprep.subr.bf16.mxu1 %v2466_v63  ;;  %v453_v61 = vld [vmem:[%s3749_s1 + $0x1f8] sm:$0xff]  ;;  %v2459_v62 = vcombine.low %v440_v50, %v444_v51  ;;  %v2461_v63 = vcombine.low %v441_v52, %v445_v53 }
  0x37   : > { %v2470_v1 = vcombine.high %v449_v60, %v453_v61  ;;  %v2469_v3 = vcombine.low %v449_v60, %v453_v61 }
  0x39   : > { %831 = vmatpush1.bf16.msra.mxu0 %v2463_v4  ;;  %872 = vmatpush1.bf16.msra.mxu1 %v2465_v6  ;;  %v456_v4 = vlaneseq }
  0x3a   : > { %898 = vmatprep.subr.bf16.mxu0 %v2412_v7  ;;  %939 = vmatprep.subr.bf16.mxu1 %v2414_v8  ;;  %v454_v7 = vld [vmem:[%s3750_s2] sm:$0xff] }
  0x3b   : > { %v457_v5 = vshrl.u32 %v456_v4, 7 }
  0x3c   : > { %849 = vmatmul.mubr.bf16.vlgmr.msra.gmra.mrb[0].mxu0 %v3221_v12  ;;  %890 = vmatmul.mubr.bf16.vlgmr.msra.gmra.mrb[0].mxu1 %v3221_v12 }
  0x3d   : > { %899 = vmatpush1.bf16.msra.mxu0 %v2411_v15  ;;  %940 = vmatpush1.bf16.msra.mxu1 %v2413_v16  ;;  %v458_v6 = vsub.s32 0, %v457_v5  ;;  %v466_v8 = vsub.s32 2, %v457_v5  ;;  %v462_v10 = vsub.s32 1, %v457_v5  ;;  %v470_v11 = vsub.s32 3, %v457_v5 }
  0x3e   : > { %900 = vmatprep.subr.bf16.mxu0 %v2420_v17  ;;  %941 = vmatprep.subr.bf16.mxu1 %v2422_v18  ;;  %v486_v35 = vsub.s32 7, %v457_v5 }
  0x3f   : > { %930 = vmatprep.mubr.bf16.mxu0 %v2999_v9  ;;  %971 = vmatprep.mubr.bf16.mxu1 %v2999_v9  ;;  %v425_v9 = vld [vmem:[%s3749_s1 + $0x118] sm:$0xff]  ;;  %v459_v13 = vrot.slane %v454_v7, %v458_v6  ;;  %v467_v14 = vrot.slane %v454_v7, %v466_v8  ;;  %v463_v15 = vrot.slane %v454_v7, %v462_v10 }
  0x40   : > { %v2446_v41 = vcombine.high %v425_v9, %v429_v37  ;;  %v2445_v47 = vcombine.low %v425_v9, %v429_v37  ;;  %v471_v16 = vrot.slane %v454_v7, %v470_v11 }
  0x41   : > { %901 = vmatpush1.bf16.msra.mxu0 %v2419_v23  ;;  %942 = vmatpush1.bf16.msra.mxu1 %v2421_v24 }
  0x42   : > { %902 = vmatprep.subr.bf16.mxu0 %v2428_v25  ;;  %943 = vmatprep.subr.bf16.mxu1 %v2430_v26 }
  0x45   : > { %903 = vmatpush1.bf16.msra.mxu0 %v2427_v31  ;;  %944 = vmatpush1.bf16.msra.mxu1 %v2429_v32  ;;  %v474_v32 = vsub.s32 4, %v457_v5 }
  0x46   : > { %904 = vmatprep.subr.bf16.mxu0 %v2436_v33  ;;  %945 = vmatprep.subr.bf16.mxu1 %v2438_v34  ;;  %v482_v33 = vsub.s32 6, %v457_v5  ;;  %v478_v34 = vsub.s32 5, %v457_v5 }
  0x47   : > { %v475_v36 = vrot.slane %v454_v7, %v474_v32 }
  0x48   : > { %v483_v9 = vrot.slane %v454_v7, %v482_v33  ;;  %v479_v37 = vrot.slane %v454_v7, %v478_v34 }
  0x49   : > { %905 = vmatpush1.bf16.msra.mxu0 %v2435_v38  ;;  %946 = vmatpush1.bf16.msra.mxu1 %v2437_v39  ;;  %v487_v38 = vrot.slane %v454_v7, %v486_v35 }
  0x4a   : > { %906 = vmatprep.subr.bf16.mxu0 %v2444_v40  ;;  %947 = vmatprep.subr.bf16.mxu1 %v2446_v41 }
  0x4d   : > { %907 = vmatpush1.bf16.msra.mxu0 %v2443_v46  ;;  %948 = vmatpush1.bf16.msra.mxu1 %v2445_v47 }
  0x4e   : > { %908 = vmatprep.subr.bf16.mxu0 %v2452_v48  ;;  %949 = vmatprep.subr.bf16.mxu1 %v2454_v49 }
  0x51   : > { %909 = vmatpush1.bf16.msra.mxu0 %v2451_v54  ;;  %950 = vmatpush1.bf16.msra.mxu1 %v2453_v55 }
  0x52   : > { %910 = vmatprep.subr.bf16.mxu0 %v2460_v56  ;;  %951 = vmatprep.subr.bf16.mxu1 %v2462_v57 }
  0x55   : > { %911 = vmatpush1.bf16.msra.mxu0 %v2459_v62  ;;  %952 = vmatpush1.bf16.msra.mxu1 %v2461_v63 }
  0x56   : > { %912 = vmatprep.subr.bf16.mxu0 %v2468_v0  ;;  %953 = vmatprep.subr.bf16.mxu1 %v2470_v1 }
  0x59   : > { %913 = vmatpush1.bf16.msra.mxu0 %v2467_v2  ;;  %954 = vmatpush1.bf16.msra.mxu1 %v2469_v3 }
  0x5c   : > { %931 = vmatmul.mubr.bf16.vlgmr.msra.gmra.mrb[4].mxu0 %v3221_v12  ;;  %972 = vmatmul.mubr.bf16.vlgmr.msra.gmra.mrb[4].mxu1 %v3221_v12 }
 0x10f   : > { %v850_v17 = vpop.f32.mrb[0].mxu0  ;;  %v891_v19 = vpop.f32.mrb[0].mxu1 }
 0x110   : > { %v851_v18 = vadd.f32 %v850_v17, %v459_v13  ;;  %v852_v20 = vpop.f32.mrb[1].mxu0  ;;  %v892_v21 = vadd.f32 %v891_v19, %v467_v14  ;;  %v893_v22 = vpop.f32.mrb[1].mxu1 }
 0x111   : > { %v853_v12 = vadd.f32 %v852_v20, %v463_v15  ;;  %v854_v23 = vpop.f32.mrb[2].mxu0  ;;  %v894_v24 = vadd.f32 %v893_v22, %v471_v16  ;;  %v895_v25 = vpop.f32.mrb[2].mxu1 }
 0x112   : > { %2714 = vtanh.f32 %v851_v18  ;;  %v855_v26 = vpop.f32.mrb[3].mxu0  ;;  %v896_v27 = vpop.f32.mrb[3].mxu1 }
 0x113   : > { %2716 = vtanh.f32 %v892_v21 }
 0x114   : > { %2718 = vtanh.f32 %v853_v12 }
 0x115   : > { %2720 = vtanh.f32 %v894_v24 }
 0x11c   : > { %v2715_v28 = vpop.eup %2714 }
 0x11d   : > { %v2717_v29 = vpop.eup %2716  ;;  %984 = vst [vmem:[#allocation2] sm:$0xff] %v2715_v28 }
 0x11e   : > { %v2719_v30 = vpop.eup %2718  ;;  %986 = vst [vmem:[#allocation3] sm:$0xff] %v2717_v29 }
 0x11f   : > { %v2721_v31 = vpop.eup %2720  ;;  %985 = vst [vmem:[#allocation4] sm:$0xff] %v2719_v30 }
 0x120   : > { %987 = vst [vmem:[#allocation5] sm:$0xff] %v2721_v31 }
 0x12f   : > { %v932_v39 = vpop.f32.mrb[4].mxu0  ;;  %v973_v41 = vpop.f32.mrb[4].mxu1 }
 0x130   : > { %v933_v40 = vadd.f32 %v932_v39, %v475_v36  ;;  %v934_v42 = vpop.f32.mrb[5].mxu0  ;;  %v974_v43 = vadd.f32 %v973_v41, %v483_v9  ;;  %v975_v45 = vpop.f32.mrb[5].mxu1 }
 0x131   : > { %v935_v44 = vadd.f32 %v934_v42, %v479_v37  ;;  %v936_v46 = vpop.f32.mrb[6].mxu0  ;;  %v976_v47 = vadd.f32 %v975_v45, %v487_v38  ;;  %v977_v48 = vpop.f32.mrb[6].mxu1 }
 0x132   : > { %988 = vst [vmem:[#allocation6] sm:$0xff] %v933_v40  ;;  %v937_v49 = vpop.f32.mrb[7].mxu0  ;;  %990 = vst [vmem:[#allocation6 + $0x10] sm:$0xff] %v974_v43  ;;  %v978_v50 = vpop.f32.mrb[7].mxu1 }
 0x133   : > { %989 = vst [vmem:[#allocation6 + $0x8] sm:$0xff] %v935_v44  ;;  %991 = vst [vmem:[#allocation6 + $0x18] sm:$0xff] %v976_v47 }
 0x134 PF: > { %v2722_v51 = vld [vmem:[%s3751_s3 + $0x4] ss:$16 sps:$4 sm:$0xff]   ;;  %v2724_v52 = vld [vmem:[%s3751_s3 + $0xc] ss:$16 sps:$4 sm:$0xff]   ;;  %v3000_v53 = vmov 0   ;;  %vm3002_vm0 = vmmov 0  }
 0x135   : > { %1222 = vmatprep.mubr.bf16.mxu0 %v3000_v53  ;;  %1263 = vmatprep.mubr.bf16.mxu1 %v3000_v53  ;;  %v2726_v54 = vld [vmem:[%s3751_s3] ss:$16 sps:$4 sm:$0xff]   ;;  %v2727_v55 = vld [vmem:[%s3751_s3 + $0x8] ss:$16 sps:$4 sm:$0xff]   ;;  %v2728_v56 = vld [vmem:[%s3751_s3 + $0x24] ss:$16 sps:$4 sm:$0xff]  }
 0x136   : > { %1190 = vmatprep.subr.bf16.mxu0 %v2722_v51  ;;  %1231 = vmatprep.subr.bf16.mxu1 %v2724_v52  ;;  %v2730_v57 = vld [vmem:[%s3751_s3 + $0x2c] ss:$16 sps:$4 sm:$0xff]   ;;  %v2732_v58 = vld [vmem:[%s3751_s3 + $0x20] ss:$16 sps:$4 sm:$0xff]   ;;  %v2733_v59 = vld [vmem:[%s3751_s3 + $0x28] ss:$16 sps:$4 sm:$0xff]  }
 0x137   : > { %1191 = vmatpush1.bf16.msra.mxu0 %v2726_v54  ;;  %1232 = vmatpush1.bf16.msra.mxu1 %v2727_v55  ;;  %v2734_v60 = vld [vmem:[%s3751_s3 + $0x44] ss:$16 sps:$4 sm:$0xff]   ;;  %v2736_v61 = vld [vmem:[%s3751_s3 + $0x4c] ss:$16 sps:$4 sm:$0xff]   ;;  %v2738_v62 = vld [vmem:[%s3751_s3 + $0x40] ss:$16 sps:$4 sm:$0xff]  }
 0x138   : > { %1192 = vmatprep.subr.bf16.mxu0 %v2728_v56  ;;  %1233 = vmatprep.subr.bf16.mxu1 %v2730_v57  ;;  %v2739_v63 = vld [vmem:[%s3751_s3 + $0x48] ss:$16 sps:$4 sm:$0xff]   ;;  %v2740_v0 = vld [vmem:[%s3751_s3 + $0x64] ss:$16 sps:$4 sm:$0xff]   ;;  %v2742_v1 = vld [vmem:[%s3751_s3 + $0x6c] ss:$16 sps:$4 sm:$0xff]  }
 0x139   : > { %v2744_v2 = vld [vmem:[%s3751_s3 + $0x60] ss:$16 sps:$4 sm:$0xff]   ;;  %v2745_v3 = vld [vmem:[%s3751_s3 + $0x68] ss:$16 sps:$4 sm:$0xff]   ;;  %v2746_v4 = vld [vmem:[%s3751_s3 + $0x84] ss:$16 sps:$4 sm:$0xff]  }
 0x13a   : > { %v2748_v5 = vld [vmem:[%s3751_s3 + $0x8c] ss:$16 sps:$4 sm:$0xff]   ;;  %v2750_v6 = vld [vmem:[%s3751_s3 + $0x80] ss:$16 sps:$4 sm:$0xff]   ;;  %v2751_v7 = vld [vmem:[%s3751_s3 + $0x88] ss:$16 sps:$4 sm:$0xff]  }
 0x13b   : > { %1193 = vmatpush1.bf16.msra.mxu0 %v2732_v58  ;;  %1234 = vmatpush1.bf16.msra.mxu1 %v2733_v59  ;;  %v2752_v8 = vld [vmem:[%s3751_s3 + $0xa4] ss:$16 sps:$4 sm:$0xff]   ;;  %v2754_v10 = vld [vmem:[%s3751_s3 + $0xac] ss:$16 sps:$4 sm:$0xff]   ;;  %v2756_v11 = vld [vmem:[%s3751_s3 + $0xa0] ss:$16 sps:$4 sm:$0xff]  }
 0x13c   : > { %1194 = vmatprep.subr.bf16.mxu0 %v2734_v60  ;;  %1235 = vmatprep.subr.bf16.mxu1 %v2736_v61  ;;  %v2757_v13 = vld [vmem:[%s3751_s3 + $0xa8] ss:$16 sps:$4 sm:$0xff]   ;;  %v2758_v14 = vld [vmem:[%s3751_s3 + $0xc4] ss:$16 sps:$4 sm:$0xff]   ;;  %v2760_v15 = vld [vmem:[%s3751_s3 + $0xcc] ss:$16 sps:$4 sm:$0xff]  }
 0x13d   : > { %v2762_v16 = vld [vmem:[%s3751_s3 + $0xc0] ss:$16 sps:$4 sm:$0xff]   ;;  %v2763_v17 = vld [vmem:[%s3751_s3 + $0xc8] ss:$16 sps:$4 sm:$0xff]   ;;  %v2764_v18 = vld [vmem:[%s3751_s3 + $0xe4] ss:$16 sps:$4 sm:$0xff]  }
 0x13e   : > { %v2766_v19 = vld [vmem:[%s3751_s3 + $0xec] ss:$16 sps:$4 sm:$0xff]   ;;  %v2768_v20 = vld [vmem:[%s3751_s3 + $0xe0] ss:$16 sps:$4 sm:$0xff]   ;;  %v2769_v21 = vld [vmem:[%s3751_s3 + $0xe8] ss:$16 sps:$4 sm:$0xff]  }
 0x13f   : > { %1195 = vmatpush1.bf16.msra.mxu0 %v2738_v62  ;;  %1236 = vmatpush1.bf16.msra.mxu1 %v2739_v63  ;;  %v996_v12 = vld [vmem:[#allocation7] sm:$0xff]  ;;  %v2775_v23 = vld [vmem:[%s3752_s4 + $0xc] ss:$16 sps:$4 sm:$0xff]   ;;  %v2773_v26 = vld [vmem:[%s3752_s4 + $0x8] ss:$16 sps:$4 sm:$0xff]  }
 0x140   : > { %1196 = vmatprep.subr.bf16.mxu0 %v2740_v0  ;;  %1237 = vmatprep.subr.bf16.mxu1 %v2742_v1  ;;  %v2772_v22 = vld [vmem:[%s3752_s4 + $0x4] ss:$16 sps:$4 sm:$0xff]   ;;  %v2770_v24 = vld [vmem:[%s3752_s4] ss:$16 sps:$4 sm:$0xff]   ;;  %v997_v25 = vpack.c.bf16 %v996_v12, %v996_v12  ;;  %v2781_v28 = vld [vmem:[%s3752_s4 + $0x2c] ss:$16 sps:$4 sm:$0xff]  }
 0x141   : > { %v2778_v27 = vld [vmem:[%s3752_s4 + $0x24] ss:$16 sps:$4 sm:$0xff]   ;;  %v2776_v29 = vld [vmem:[%s3752_s4 + $0x20] ss:$16 sps:$4 sm:$0xff]   ;;  %v2779_v30 = vld [vmem:[%s3752_s4 + $0x28] ss:$16 sps:$4 sm:$0xff]  }
 0x142   : > { %v2784_v31 = vld [vmem:[%s3752_s4 + $0x44] ss:$16 sps:$4 sm:$0xff]   ;;  %v2787_v32 = vld [vmem:[%s3752_s4 + $0x4c] ss:$16 sps:$4 sm:$0xff]   ;;  %v2782_v33 = vld [vmem:[%s3752_s4 + $0x40] ss:$16 sps:$4 sm:$0xff]  }
 0x143   : > { %1197 = vmatpush1.bf16.msra.mxu0 %v2744_v2  ;;  %1238 = vmatpush1.bf16.msra.mxu1 %v2745_v3  ;;  %v2785_v34 = vld [vmem:[%s3752_s4 + $0x48] ss:$16 sps:$4 sm:$0xff]   ;;  %v2790_v35 = vld [vmem:[%s3752_s4 + $0x64] ss:$16 sps:$4 sm:$0xff]   ;;  %v2793_v36 = vld [vmem:[%s3752_s4 + $0x6c] ss:$16 sps:$4 sm:$0xff]  }
 0x144   : > { %1198 = vmatprep.subr.bf16.mxu0 %v2746_v4  ;;  %1239 = vmatprep.subr.bf16.mxu1 %v2748_v5  ;;  %v2788_v9 = vld [vmem:[%s3752_s4 + $0x60] ss:$16 sps:$4 sm:$0xff]   ;;  %v2791_v37 = vld [vmem:[%s3752_s4 + $0x68] ss:$16 sps:$4 sm:$0xff]   ;;  %v2796_v38 = vld [vmem:[%s3752_s4 + $0x84] ss:$16 sps:$4 sm:$0xff]  }
 0x145   : > { %v2799_v39 = vld [vmem:[%s3752_s4 + $0x8c] ss:$16 sps:$4 sm:$0xff]   ;;  %v2794_v40 = vld [vmem:[%s3752_s4 + $0x80] ss:$16 sps:$4 sm:$0xff]   ;;  %v2797_v41 = vld [vmem:[%s3752_s4 + $0x88] ss:$16 sps:$4 sm:$0xff]  }
 0x146   : > { %v2802_v42 = vld [vmem:[%s3752_s4 + $0xa4] ss:$16 sps:$4 sm:$0xff]   ;;  %v2805_v43 = vld [vmem:[%s3752_s4 + $0xac] ss:$16 sps:$4 sm:$0xff]   ;;  %v2800_v44 = vld [vmem:[%s3752_s4 + $0xa0] ss:$16 sps:$4 sm:$0xff]  }
 0x147   : > { %1199 = vmatpush1.bf16.msra.mxu0 %v2750_v6  ;;  %1240 = vmatpush1.bf16.msra.mxu1 %v2751_v7  ;;  %v2803_v45 = vld [vmem:[%s3752_s4 + $0xa8] ss:$16 sps:$4 sm:$0xff]   ;;  %v2808_v46 = vld [vmem:[%s3752_s4 + $0xc4] ss:$16 sps:$4 sm:$0xff]   ;;  %v2811_v47 = vld [vmem:[%s3752_s4 + $0xcc] ss:$16 sps:$4 sm:$0xff]  }
 0x148   : > { %1200 = vmatprep.subr.bf16.mxu0 %v2752_v8  ;;  %1241 = vmatprep.subr.bf16.mxu1 %v2754_v10  ;;  %v2806_v48 = vld [vmem:[%s3752_s4 + $0xc0] ss:$16 sps:$4 sm:$0xff]   ;;  %v2809_v49 = vld [vmem:[%s3752_s4 + $0xc8] ss:$16 sps:$4 sm:$0xff]   ;;  %v2814_v50 = vld [vmem:[%s3752_s4 + $0xe4] ss:$16 sps:$4 sm:$0xff]  }
 0x149   : > { %v2817_v51 = vld [vmem:[%s3752_s4 + $0xec] ss:$16 sps:$4 sm:$0xff]   ;;  %v2812_v52 = vld [vmem:[%s3752_s4 + $0xe0] ss:$16 sps:$4 sm:$0xff]   ;;  %v2815_v54 = vld [vmem:[%s3752_s4 + $0xe8] ss:$16 sps:$4 sm:$0xff]  }
 0x14a   : > { %v1276_v55 = vld [vmem:[#allocation2] sm:$0xff]  ;;  %v2823_v58 = vld [vmem:[%s3753_s5 + $0xc] ss:$16 sps:$4 sm:$0xff]   ;;  %v2821_v60 = vld [vmem:[%s3753_s5 + $0x8] ss:$16 sps:$4 sm:$0xff]  }
 0x14b   : > { %1201 = vmatpush1.bf16.msra.mxu0 %v2756_v11  ;;  %1242 = vmatpush1.bf16.msra.mxu1 %v2757_v13  ;;  %v1277_v56 = vpack.c.bf16 %v1276_v55, %v1276_v55  ;;  %v2820_v57 = vld [vmem:[%s3753_s5 + $0x4] ss:$16 sps:$4 sm:$0xff]   ;;  %v2818_v59 = vld [vmem:[%s3753_s5] ss:$16 sps:$4 sm:$0xff]   ;;  %v2829_v62 = vld [vmem:[%s3753_s5 + $0x2c] ss:$16 sps:$4 sm:$0xff]  }
 0x14c   : > { %1202 = vmatprep.subr.bf16.mxu0 %v2758_v14  ;;  %1243 = vmatprep.subr.bf16.mxu1 %v2760_v15  ;;  %v2826_v61 = vld [vmem:[%s3753_s5 + $0x24] ss:$16 sps:$4 sm:$0xff]   ;;  %v2824_v63 = vld [vmem:[%s3753_s5 + $0x20] ss:$16 sps:$4 sm:$0xff]   ;;  %v2827_v0 = vld [vmem:[%s3753_s5 + $0x28] ss:$16 sps:$4 sm:$0xff]  }
 0x14d   : > { %v2832_v1 = vld [vmem:[%s3753_s5 + $0x44] ss:$16 sps:$4 sm:$0xff]   ;;  %v2835_v2 = vld [vmem:[%s3753_s5 + $0x4c] ss:$16 sps:$4 sm:$0xff]   ;;  %v2830_v3 = vld [vmem:[%s3753_s5 + $0x40] ss:$16 sps:$4 sm:$0xff]  }
 0x14e   : > { %v2833_v4 = vld [vmem:[%s3753_s5 + $0x48] ss:$16 sps:$4 sm:$0xff]   ;;  %v2838_v5 = vld [vmem:[%s3753_s5 + $0x64] ss:$16 sps:$4 sm:$0xff]   ;;  %v2841_v6 = vld [vmem:[%s3753_s5 + $0x6c] ss:$16 sps:$4 sm:$0xff]  }
 0x14f   : > { %1203 = vmatpush1.bf16.msra.mxu0 %v2762_v16  ;;  %1244 = vmatpush1.bf16.msra.mxu1 %v2763_v17  ;;  %v2836_v7 = vld [vmem:[%s3753_s5 + $0x60] ss:$16 sps:$4 sm:$0xff]   ;;  %v2839_v8 = vld [vmem:[%s3753_s5 + $0x68] ss:$16 sps:$4 sm:$0xff]   ;;  %v2844_v10 = vld [vmem:[%s3753_s5 + $0x84] ss:$16 sps:$4 sm:$0xff]  }
 0x150   : > { %1204 = vmatprep.subr.bf16.mxu0 %v2764_v18  ;;  %1245 = vmatprep.subr.bf16.mxu1 %v2766_v19  ;;  %v2847_v11 = vld [vmem:[%s3753_s5 + $0x8c] ss:$16 sps:$4 sm:$0xff]   ;;  %v2842_v13 = vld [vmem:[%s3753_s5 + $0x80] ss:$16 sps:$4 sm:$0xff]   ;;  %v2845_v14 = vld [vmem:[%s3753_s5 + $0x88] ss:$16 sps:$4 sm:$0xff]  }
 0x151   : > { %v2848_v15 = vld [vmem:[%s3753_s5 + $0xa0] ss:$16 sps:$4 sm:$0xff]   ;;  %v2850_v16 = vld [vmem:[%s3753_s5 + $0xa4] ss:$16 sps:$4 sm:$0xff]   ;;  %v2851_v17 = vld [vmem:[%s3753_s5 + $0xa8] ss:$16 sps:$4 sm:$0xff]  }
 0x152   : > { %v2853_v18 = vld [vmem:[%s3753_s5 + $0xac] ss:$16 sps:$4 sm:$0xff]   ;;  %v2856_v19 = vld [vmem:[%s3753_s5 + $0xc4] ss:$16 sps:$4 sm:$0xff]   ;;  %v2857_v12 = vld [vmem:[%s3753_s5 + $0xc8] ss:$16 sps:$4 sm:$0xff]  }
 0x153   : > { %1205 = vmatpush1.bf16.msra.mxu0 %v2768_v20  ;;  %1246 = vmatpush1.bf16.msra.mxu1 %v2769_v21  ;;  %v2859_v20 = vld [vmem:[%s3753_s5 + $0xcc] ss:$16 sps:$4 sm:$0xff]   ;;  %v2854_v21 = vld [vmem:[%s3753_s5 + $0xc0] ss:$16 sps:$4 sm:$0xff]  }
 0x154   : > { %1470 = vmatprep.subr.bf16.mxu0 %v2772_v22  ;;  %1511 = vmatprep.subr.bf16.mxu1 %v2775_v23  ;;  %v2862_v22 = vld [vmem:[%s3753_s5 + $0xe4] ss:$16 sps:$4 sm:$0xff]   ;;  %v2865_v23 = vld [vmem:[%s3753_s5 + $0xec] ss:$16 sps:$4 sm:$0xff]  }
 0x156   : > { %1223 = vmatmul.mubr.bf16.vlgmr.msra.gmra.mrb[0].mxu0 %v997_v25  ;;  %1264 = vmatmul.mubr.bf16.vlgmr.msra.gmra.mrb[0].mxu1 %v997_v25  ;;  %v2863_v25 = vld [vmem:[%s3753_s5 + $0xe8] ss:$16 sps:$4 sm:$0xff]  }
 0x157   : > { %1471 = vmatpush1.bf16.msra.mxu0 %v2770_v24  ;;  %1512 = vmatpush1.bf16.msra.mxu1 %v2773_v26  ;;  %v2860_v24 = vld [vmem:[%s3753_s5 + $0xe0] ss:$16 sps:$4 sm:$0xff]   ;;  %v2868_v26 = vld [vmem:[%s3754_s6 + $0x4] ss:$16 sps:$4 sm:$0xff]  }
 0x158   : > { %1472 = vmatprep.subr.bf16.mxu0 %v2778_v27  ;;  %1513 = vmatprep.subr.bf16.mxu1 %v2781_v28  ;;  %v2871_v27 = vld [vmem:[%s3754_s6 + $0xc] ss:$16 sps:$4 sm:$0xff]   ;;  %v992_v28 = vld [vmem:[#allocation6] sm:$0xff] }
 0x159   : > { %1502 = vmatprep.mubr.bf16.mxu0 %v3000_v53  ;;  %1543 = vmatprep.mubr.bf16.mxu1 %v3000_v53 }
 0x15b   : > { %1473 = vmatpush1.bf16.msra.mxu0 %v2776_v29  ;;  %1514 = vmatpush1.bf16.msra.mxu1 %v2779_v30  ;;  %v993_v29 = vld [vmem:[#allocation6 + $0x8] sm:$0xff] }
 0x15c   : > { %1474 = vmatprep.subr.bf16.mxu0 %v2784_v31  ;;  %1515 = vmatprep.subr.bf16.mxu1 %v2787_v32 }
 0x15f   : > { %1475 = vmatpush1.bf16.msra.mxu0 %v2782_v33  ;;  %1516 = vmatpush1.bf16.msra.mxu1 %v2785_v34 }
 0x160   : > { %1476 = vmatprep.subr.bf16.mxu0 %v2790_v35  ;;  %1517 = vmatprep.subr.bf16.mxu1 %v2793_v36 }
 0x163   : > { %1477 = vmatpush1.bf16.msra.mxu0 %v2788_v9  ;;  %1518 = vmatpush1.bf16.msra.mxu1 %v2791_v37 }
 0x164   : > { %1478 = vmatprep.subr.bf16.mxu0 %v2796_v38  ;;  %1519 = vmatprep.subr.bf16.mxu1 %v2799_v39 }
 0x167   : > { %1479 = vmatpush1.bf16.msra.mxu0 %v2794_v40  ;;  %1520 = vmatpush1.bf16.msra.mxu1 %v2797_v41  ;;  %v995_v41 = vld [vmem:[#allocation6 + $0x18] sm:$0xff] }
 0x168   : > { %1480 = vmatprep.subr.bf16.mxu0 %v2802_v42  ;;  %1521 = vmatprep.subr.bf16.mxu1 %v2805_v43  ;;  %v994_v43 = vld [vmem:[#allocation6 + $0x10] sm:$0xff] }
 0x16b   : > { %1481 = vmatpush1.bf16.msra.mxu0 %v2800_v44  ;;  %1522 = vmatpush1.bf16.msra.mxu1 %v2803_v45 }
 0x16c   : > { %1482 = vmatprep.subr.bf16.mxu0 %v2808_v46  ;;  %1523 = vmatprep.subr.bf16.mxu1 %v2811_v47 }
 0x16f   : > { %1483 = vmatpush1.bf16.msra.mxu0 %v2806_v48  ;;  %1524 = vmatpush1.bf16.msra.mxu1 %v2809_v49 }
 0x170   : > { %1484 = vmatprep.subr.bf16.mxu0 %v2814_v50  ;;  %1525 = vmatprep.subr.bf16.mxu1 %v2817_v51 }
 0x173   : > { %1485 = vmatpush1.bf16.msra.mxu0 %v2812_v52  ;;  %1526 = vmatpush1.bf16.msra.mxu1 %v2815_v54  ;;  %v1575_v52 = vld [vmem:[#allocation3] sm:$0xff] }
 0x174   : > { %1777 = vmatprep.subr.bf16.mxu0 %v2820_v57  ;;  %1818 = vmatprep.subr.bf16.mxu1 %v2823_v58 }
 0x176   : > { %1503 = vmatmul.mubr.bf16.vlgmr.msra.gmra.mrb[0].mxu0 %v1277_v56  ;;  %1544 = vmatmul.mubr.bf16.vlgmr.msra.gmra.mrb[0].mxu1 %v1277_v56 }
 0x177   : > { %1809 = vmatprep.mubr.bf16.mxu0 %v3000_v53  ;;  %1850 = vmatprep.mubr.bf16.mxu1 %v3000_v53 }
 0x178   : > { %1778 = vmatpush1.bf16.msra.mxu0 %v2818_v59  ;;  %1819 = vmatpush1.bf16.msra.mxu1 %v2821_v60 }
 0x179   : > { %1779 = vmatprep.subr.bf16.mxu0 %v2826_v61  ;;  %1820 = vmatprep.subr.bf16.mxu1 %v2829_v62 }
 0x17c   : > { %1780 = vmatpush1.bf16.msra.mxu0 %v2824_v63  ;;  %1821 = vmatpush1.bf16.msra.mxu1 %v2827_v0  ;;  %v2866_v63 = vld [vmem:[%s3754_s6] ss:$16 sps:$4 sm:$0xff]   ;;  %v2869_v0 = vld [vmem:[%s3754_s6 + $0x8] ss:$16 sps:$4 sm:$0xff]  }
 0x17d   : > { %1781 = vmatprep.subr.bf16.mxu0 %v2832_v1  ;;  %1822 = vmatprep.subr.bf16.mxu1 %v2835_v2  ;;  %v2874_v2 = vld [vmem:[%s3754_s6 + $0x24] ss:$16 sps:$4 sm:$0xff]  }
 0x180   : > { %1782 = vmatpush1.bf16.msra.mxu0 %v2830_v3  ;;  %1823 = vmatpush1.bf16.msra.mxu1 %v2833_v4  ;;  %v2877_v3 = vld [vmem:[%s3754_s6 + $0x2c] ss:$16 sps:$4 sm:$0xff]   ;;  %v2872_v4 = vld [vmem:[%s3754_s6 + $0x20] ss:$16 sps:$4 sm:$0xff]  }
 0x181   : > { %1783 = vmatprep.subr.bf16.mxu0 %v2838_v5  ;;  %1824 = vmatprep.subr.bf16.mxu1 %v2841_v6  ;;  %v2875_v5 = vld [vmem:[%s3754_s6 + $0x28] ss:$16 sps:$4 sm:$0xff]   ;;  %v2880_v6 = vld [vmem:[%s3754_s6 + $0x44] ss:$16 sps:$4 sm:$0xff]  }
 0x184   : > { %1784 = vmatpush1.bf16.msra.mxu0 %v2836_v7  ;;  %1825 = vmatpush1.bf16.msra.mxu1 %v2839_v8  ;;  %v2883_v7 = vld [vmem:[%s3754_s6 + $0x4c] ss:$16 sps:$4 sm:$0xff]   ;;  %v2878_v8 = vld [vmem:[%s3754_s6 + $0x40] ss:$16 sps:$4 sm:$0xff]  }
 0x185   : > { %1785 = vmatprep.subr.bf16.mxu0 %v2844_v10  ;;  %1826 = vmatprep.subr.bf16.mxu1 %v2847_v11  ;;  %v2881_v10 = vld [vmem:[%s3754_s6 + $0x48] ss:$16 sps:$4 sm:$0xff]   ;;  %v2886_v11 = vld [vmem:[%s3754_s6 + $0x64] ss:$16 sps:$4 sm:$0xff]  }
 0x188   : > { %1786 = vmatpush1.bf16.msra.mxu0 %v2842_v13  ;;  %1827 = vmatpush1.bf16.msra.mxu1 %v2845_v14  ;;  %v2884_v13 = vld [vmem:[%s3754_s6 + $0x60] ss:$16 sps:$4 sm:$0xff]   ;;  %v2887_v14 = vld [vmem:[%s3754_s6 + $0x68] ss:$16 sps:$4 sm:$0xff]  }
 0x189   : > { %1787 = vmatprep.subr.bf16.mxu0 %v2850_v16  ;;  %1828 = vmatprep.subr.bf16.mxu1 %v2853_v18  ;;  %v2895_v16 = vld [vmem:[%s3754_s6 + $0x8c] ss:$16 sps:$4 sm:$0xff]   ;;  %v2893_v18 = vld [vmem:[%s3754_s6 + $0x88] ss:$16 sps:$4 sm:$0xff]  }
 0x18c   : > { %1788 = vmatpush1.bf16.msra.mxu0 %v2848_v15  ;;  %1829 = vmatpush1.bf16.msra.mxu1 %v2851_v17  ;;  %v2892_v15 = vld [vmem:[%s3754_s6 + $0x84] ss:$16 sps:$4 sm:$0xff]   ;;  %v2890_v17 = vld [vmem:[%s3754_s6 + $0x80] ss:$16 sps:$4 sm:$0xff]  }
 0x18d   : > { %1789 = vmatprep.subr.bf16.mxu0 %v2856_v19  ;;  %1830 = vmatprep.subr.bf16.mxu1 %v2859_v20  ;;  %v2898_v19 = vld [vmem:[%s3754_s6 + $0xa4] ss:$16 sps:$4 sm:$0xff]   ;;  %v2901_v20 = vld [vmem:[%s3754_s6 + $0xac] ss:$16 sps:$4 sm:$0xff]  }
 0x190   : > { %1790 = vmatpush1.bf16.msra.mxu0 %v2854_v21  ;;  %1831 = vmatpush1.bf16.msra.mxu1 %v2857_v12  ;;  %v2896_v21 = vld [vmem:[%s3754_s6 + $0xa0] ss:$16 sps:$4 sm:$0xff]   ;;  %v2899_v12 = vld [vmem:[%s3754_s6 + $0xa8] ss:$16 sps:$4 sm:$0xff]  }
 0x191   : > { %1791 = vmatprep.subr.bf16.mxu0 %v2862_v22  ;;  %1832 = vmatprep.subr.bf16.mxu1 %v2865_v23  ;;  %v2904_v22 = vld [vmem:[%s3754_s6 + $0xc4] ss:$16 sps:$4 sm:$0xff]   ;;  %v2907_v23 = vld [vmem:[%s3754_s6 + $0xcc] ss:$16 sps:$4 sm:$0xff]  }
 0x194   : > { %1792 = vmatpush1.bf16.msra.mxu0 %v2860_v24  ;;  %1833 = vmatpush1.bf16.msra.mxu1 %v2863_v25  ;;  %v2902_v24 = vld [vmem:[%s3754_s6 + $0xc0] ss:$16 sps:$4 sm:$0xff]   ;;  %v2905_v25 = vld [vmem:[%s3754_s6 + $0xc8] ss:$16 sps:$4 sm:$0xff]  }
 0x195   : > { %2078 = vmatprep.subr.bf16.mxu0 %v2868_v26  ;;  %2119 = vmatprep.subr.bf16.mxu1 %v2871_v27  ;;  %v2910_v26 = vld [vmem:[%s3754_s6 + $0xe4] ss:$16 sps:$4 sm:$0xff]   ;;  %v2913_v27 = vld [vmem:[%s3754_s6 + $0xec] ss:$16 sps:$4 sm:$0xff]  }
 0x249   : > { %v1504_v30 = vpop.f32.mrb[0].mxu0  ;;  %v1545_v31 = vpop.f32.mrb[0].mxu1 }
 0x24a   : > { %v2645_v32 = vadd.f32 %v1504_v30, %v992_v28  ;;  %v1506_v33 = vpop.f32.mrb[1].mxu0  ;;  %v1547_v34 = vpop.f32.mrb[1].mxu1  ;;  %v2647_v45 = vadd.f32 %v1545_v31, %v994_v43  ;;  %v2908_v28 = vld [vmem:[%s3754_s6 + $0xe0] ss:$16 sps:$4 sm:$0xff]  }
 0x24b   : > { %v2646_v35 = vadd.f32 %v1506_v33, %v993_v29  ;;  %v1508_v36 = vpop.f32.mrb[2].mxu0  ;;  %v1549_v9 = vpop.f32.mrb[2].mxu1  ;;  %v2648_v42 = vadd.f32 %v1547_v34, %v995_v41  ;;  %v2911_v29 = vld [vmem:[%s3754_s6 + $0xe8] ss:$16 sps:$4 sm:$0xff]   ;;  %v1884_v30 = vld [vmem:[#allocation4] sm:$0xff]  ;;  %v3001_v33 = vmov 0.0  }
 0x24c   : > { %v2535_v37 = vmul.f32 -1.442695, %v2645_v32  ;;  %v1509_v38 = vpop.f32.mrb[3].mxu0  ;;  %v1550_v39 = vpop.f32.mrb[3].mxu1  ;;  %v1885_v31 = vpack.c.bf16 %v1884_v30, %v1884_v30  ;;  %v2914_v32 = vld [vmem:[%s3756_s8] sm:$0xff]   ;;  %v2915_v34 = vld [vmem:[%s3756_s8 + $0x8] sm:$0xff]  }
 0x24d   : > { %v2536_v40 = vmul.f32 -1.442695, %v2646_v35  ;;  %v2537_v44 = vmul.f32 -1.442695, %v2648_v42  ;;  %v2916_v35 = vld [vmem:[%s3756_s8 + $0x10] sm:$0xff]   ;;  %v2917_v36 = vld [vmem:[%s3756_s8 + $0x18] sm:$0xff]  }
 0x24e   : > { %2922 = vpow2.f32 %v2535_v37  ;;  %v2918_v9 = vld [vmem:[%s3756_s8 + $0x20] sm:$0xff]   ;;  %v2919_v37 = vld [vmem:[%s3756_s8 + $0x28] sm:$0xff]   ;;  %v2920_v38 = vld [vmem:[%s3756_s8 + $0x30] sm:$0xff]  }
 0x24f   : > { %2924 = vpow2.f32 %v2536_v40  ;;  %v2921_v39 = vld [vmem:[%s3756_s8 + $0x38] sm:$0xff]   ;;  %v1860_v40 = vlaneseq  ;;  %v1583_v43 = vld [vmem:[%s3755_s7] sm:$0xf] }
 0x250   : > { %2926 = vpow2.f32 %v2537_v44 }
 0x251   : > { %2928 = vtanh.f32 %v2647_v45  ;;  %v1861_v41 = vshrl.u32 %v1860_v40, 7 }
 0x253   : > { %v1862_v42 = vsub.s32 0, %v1861_v41  ;;  %v1866_v44 = vsub.s32 1, %v1861_v41 }
 0x255   : > { %v1863_v45 = vrot.slane %v1583_v43, %v1862_v42 }
 0x258   : > { %v2923_v46 = vpop.eup %2922 }
 0x259   : > { %v2925_v47 = vpop.eup %2924  ;;  %v1559_v48 = vadd.f32 1.0, %v2923_v46  ;;  %v1867_v46 = vrot.slane %v1583_v43, %v1866_v44 }
 0x25a   : > { %v1565_v49 = vadd.f32 1.0, %v2925_v47  ;;  %v2927_v50 = vpop.eup %2926 }
 0x25b   : > { %2930 = vrcp.f32 %v1559_v48  ;;  %v2929_v51 = vpop.eup %2928  ;;  %v1572_v57 = vadd.f32 1.0, %v2927_v50 }
 0x25c   : > { %2932 = vrcp.f32 %v1565_v49  ;;  %v1874_v49 = vsub.s32 3, %v1861_v41 }
 0x25d   : > { %2934 = vrcp.f32 %v1572_v57 }
 0x265   : > { %v2931_v54 = vpop.eup %2930 }
 0x266   : > { %v2933_v55 = vpop.eup %2932  ;;  %v1577_v56 = vmul.f32 %v2931_v54, %v2929_v51 }
 0x267   : > { %v1576_v58 = vmul.f32 %v2933_v55, %v1575_v52  ;;  %v2935_v60 = vpop.eup %2934 }
 0x269   : > { %v1578_v59 = vadd.f32 %v1577_v56, %v1576_v58 }
 0x26b   : > { %2936 = vtanh.f32 %v1578_v59  ;;  %1581 = vst [vmem:[#allocation3] sm:$0xff] %v1578_v59 }
 0x275   : > { %v2937_v61 = vpop.eup %2936 }
 0x276   : > { %v1580_v62 = vmul.f32 %v2937_v61, %v2935_v60  ;;  %v1875_v61 = vrot.slane %v1583_v43, %v1874_v49 }
 0x278   : > { %1582 = vst [vmem:[#allocation2] sm:$0xff] %v1580_v62  ;;  %v1584_v1 = vpack.c.bf16 %v1580_v62, %v1580_v62  ;;  %v1870_v62 = vsub.s32 2, %v1861_v41 }
 0x27a   : > { %1810 = vmatmul.mubr.bf16.vlgmr.msra.gmra.mrb[4].mxu0 %v1584_v1  ;;  %1851 = vmatmul.mubr.bf16.vlgmr.msra.gmra.mrb[4].mxu1 %v1584_v1 }
 0x27b   : > { %2079 = vmatpush1.bf16.msra.mxu0 %v2866_v63  ;;  %2120 = vmatpush1.bf16.msra.mxu1 %v2869_v0  ;;  %v1871_v0 = vrot.slane %v1583_v43, %v1870_v62 }
 0x27c   : > { %2080 = vmatprep.subr.bf16.mxu0 %v2874_v2  ;;  %2121 = vmatprep.subr.bf16.mxu1 %v2877_v3 }
 0x27d   : > { %2110 = vmatprep.mubr.bf16.mxu0 %v3000_v53  ;;  %2151 = vmatprep.mubr.bf16.mxu1 %v3000_v53  ;;  %v2889_v53 = vld [vmem:[%s3754_s6 + $0x6c] ss:$16 sps:$4 sm:$0xff]  }
 0x27f   : > { %2081 = vmatpush1.bf16.msra.mxu0 %v2872_v4  ;;  %2122 = vmatpush1.bf16.msra.mxu1 %v2875_v5 }
 0x280   : > { %2082 = vmatprep.subr.bf16.mxu0 %v2880_v6  ;;  %2123 = vmatprep.subr.bf16.mxu1 %v2883_v7 }
 0x283   : > { %2083 = vmatpush1.bf16.msra.mxu0 %v2878_v8  ;;  %2124 = vmatpush1.bf16.msra.mxu1 %v2881_v10  ;;  %v2183_v10 = vld [vmem:[#allocation5] sm:$0xff] }
 0x284   : > { %2084 = vmatprep.subr.bf16.mxu0 %v2886_v11  ;;  %2125 = vmatprep.subr.bf16.mxu1 %v2889_v53 }
 0x287   : > { %2085 = vmatpush1.bf16.msra.mxu0 %v2884_v13  ;;  %2126 = vmatpush1.bf16.msra.mxu1 %v2887_v14 }
 0x288   : > { %2086 = vmatprep.subr.bf16.mxu0 %v2892_v15  ;;  %2127 = vmatprep.subr.bf16.mxu1 %v2895_v16 }
 0x28b   : > { %2087 = vmatpush1.bf16.msra.mxu0 %v2890_v17  ;;  %2128 = vmatpush1.bf16.msra.mxu1 %v2893_v18 }
 0x28c   : > { %2088 = vmatprep.subr.bf16.mxu0 %v2898_v19  ;;  %2129 = vmatprep.subr.bf16.mxu1 %v2901_v20 }
 0x28f   : > { %2089 = vmatpush1.bf16.msra.mxu0 %v2896_v21  ;;  %2130 = vmatpush1.bf16.msra.mxu1 %v2899_v12  ;;  %v2305_v21 = vand.u32 127, %v1860_v40  ;;  %v2605_v12 = vld [vmem:[%s3757_s9] ss:$0 sm:$0xff] }
 0x290   : > { %2090 = vmatprep.subr.bf16.mxu0 %v2904_v22  ;;  %2131 = vmatprep.subr.bf16.mxu1 %v2907_v23 }
 0x291   : > { %vm2306_vm1 = vcmp.lt.s32.totalorder %v2305_v21, 90 }
 0x293   : > { %2091 = vmatpush1.bf16.msra.mxu0 %v2902_v24  ;;  %2132 = vmatpush1.bf16.msra.mxu1 %v2905_v25 }
 0x294   : > { %2092 = vmatprep.subr.bf16.mxu0 %v2910_v26  ;;  %2133 = vmatprep.subr.bf16.mxu1 %v2913_v27 }
 0x297   : > { %2093 = vmatpush1.bf16.msra.mxu0 %v2908_v28  ;;  %2134 = vmatpush1.bf16.msra.mxu1 %v2911_v29 }
 0x298   : > { %2625 = vmatprep.subr.bf16.mxu0 %v3001_v33 }
 0x29a   : > { %2111 = vmatmul.mubr.bf16.vlgmr.msra.gmra.mrb[4].mxu0 %v1885_v31  ;;  %2152 = vmatmul.mubr.bf16.vlgmr.msra.gmra.mrb[4].mxu1 %v1885_v31 }
 0x29b   : > { %2626 = vmatpush3.bf16.msra.mxu0 %v2914_v32  ;;  %2641 = vmatprep.mubr.msk.bf16.mxu0 %vm3002_vm0, %v3001_v33 }
 0x29c   : > { %2627 = vmatprep.subr.bf16.mxu0 %v3001_v33 }
 0x29f   : > { %2628 = vmatpush3.bf16.msra.mxu0 %v2915_v34 }
 0x2a0   : > { %2629 = vmatprep.subr.bf16.mxu0 %v3001_v33 }
 0x2a3   : > { %2630 = vmatpush3.bf16.msra.mxu0 %v2916_v35 }
 0x2a4   : > { %2631 = vmatprep.subr.bf16.mxu0 %v3001_v33 }
 0x2a7   : > { %2632 = vmatpush3.bf16.msra.mxu0 %v2917_v36 }
 0x2a8   : > { %2633 = vmatprep.subr.bf16.mxu0 %v3001_v33 }
 0x2ab   : > { %2634 = vmatpush3.bf16.msra.mxu0 %v2918_v9 }
 0x2ac   : > { %2635 = vmatprep.subr.bf16.mxu0 %v3001_v33 }
 0x2af   : > { %2636 = vmatpush3.bf16.msra.mxu0 %v2919_v37 }
 0x2b0   : > { %2637 = vmatprep.subr.bf16.mxu0 %v3001_v33 }
 0x2b3   : > { %2638 = vmatpush3.bf16.msra.mxu0 %v2920_v38 }
 0x2b4   : > { %2639 = vmatprep.subr.bf16.mxu0 %v3001_v33 }
 0x2b7   : > { %2640 = vmatpush3.bf16.msra.mxu0 %v2921_v39 }
 0x36d   : > { %v2112_v47 = vpop.f32.mrb[4].mxu0  ;;  %v2153_v48 = vpop.f32.mrb[4].mxu1 }
 0x36e   : > { %v2649_v50 = vadd.f32 %v2112_v47, %v1863_v45  ;;  %v2114_v51 = vpop.f32.mrb[5].mxu0  ;;  %v2155_v52 = vpop.f32.mrb[5].mxu1  ;;  %v2651_v2 = vadd.f32 %v2153_v48, %v1871_v0 }
 0x36f   : > { %v2650_v54 = vadd.f32 %v2114_v51, %v1867_v46  ;;  %v2116_v55 = vpop.f32.mrb[6].mxu0  ;;  %v2157_v56 = vpop.f32.mrb[6].mxu1  ;;  %v2652_v63 = vadd.f32 %v2155_v52, %v1875_v61 }
 0x370   : > { %v2602_v57 = vmul.f32 -1.442695, %v2649_v50  ;;  %v2117_v58 = vpop.f32.mrb[7].mxu0  ;;  %v2158_v59 = vpop.f32.mrb[7].mxu1 }
 0x371   : > { %v2603_v60 = vmul.f32 -1.442695, %v2650_v54  ;;  %v2604_v1 = vmul.f32 -1.442695, %v2652_v63 }
 0x372   : > { %2938 = vpow2.f32 %v2602_v57 }
 0x373   : > { %2940 = vpow2.f32 %v2603_v60 }
 0x374   : > { %2942 = vpow2.f32 %v2604_v1 }
 0x375   : > { %2944 = vtanh.f32 %v2651_v2 }
 0x37c   : > { %v2939_v3 = vpop.eup %2938 }
 0x37d   : > { %v2941_v4 = vpop.eup %2940  ;;  %v2167_v5 = vadd.f32 1.0, %v2939_v3 }
 0x37e   : > { %v2173_v6 = vadd.f32 1.0, %v2941_v4  ;;  %v2943_v7 = vpop.eup %2942 }
 0x37f   : > { %2946 = vrcp.f32 %v2167_v5  ;;  %v2945_v8 = vpop.eup %2944  ;;  %v2180_v14 = vadd.f32 1.0, %v2943_v7 }
 0x380   : > { %2948 = vrcp.f32 %v2173_v6 }
 0x381   : > { %2950 = vrcp.f32 %v2180_v14 }
 0x389   : > { %v2947_v11 = vpop.eup %2946 }
 0x38a   : > { %v2949_v53 = vpop.eup %2948  ;;  %v2185_v13 = vmul.f32 %v2947_v11, %v2945_v8 }
 0x38b   : > { %v2184_v15 = vmul.f32 %v2949_v53, %v2183_v10  ;;  %v2951_v17 = vpop.eup %2950 }
 0x38d   : > { %v2186_v16 = vadd.f32 %v2185_v13, %v2184_v15 }
 0x38f   : > { %2952 = vtanh.f32 %v2186_v16  ;;  %2189 = vst [vmem:[#allocation5] sm:$0xff] %v2186_v16 }
 0x399   : > { %v2953_v18 = vpop.eup %2952 }
 0x39a   : > { %v2188_v19 = vmul.f32 %v2953_v18, %v2951_v17 }
 0x39c   : > { %2190 = vst [vmem:[#allocation4] sm:$0xff] %v2188_v19  ;;  %v2191_v20 = vpack.c.bf16 %v2188_v19, %v2188_v19 }
 0x39e   : > { %2642 = vmatmul.mubr.bf16.vlgmr.msra.gmra.mrb[8].mxu0 %v2191_v20 }
 0x471   : > { %v2297_v22 = vpop.f32.mrb[8].mxu0 }
 0x472   : > { %v2298_v23 = vadd.f32 %v2605_v12, %v2297_v22  ;;  %v2643_v24 = vpop.f32.mrb[9].mxu0 }
 0x473   : > { %v2300_v25 = vpop.f32.mrb[10].mxu0 }
 0x474   : > { %2303 = vst [vmem:[#allocation7] sm:$0xff] %v2298_v23  ;;  %v2644_v26 = vpop.f32.mrb[11].mxu0  ;;  %v2307_v27 = vsel %vm2306_vm1, %v2298_v23, -1e+30 }
 0x475   : > { %2308 = vmax.xlane.f32.xlu0 %v2307_v27 }
 0x502   : > { %v2309_v28 = vpop.xlane.xlu0 %2308 }
 0x503   : > { %v2310_v29 = vsub.f32 %v2307_v27, %v2309_v28 }
 0x505   : > { %v2311_v30 = vmul.f32 1.442695, %v2310_v29 }
 0x507   : > { %2954 = vpow2.f32 %v2311_v30 }
 0x511   : > { %v2955_v31 = vpop.eup %2954 }
 0x512   : > { %2313 = vadd.xlane.f32.xlu0 %v2955_v31 }
 0x59f   : > { %v2314_v32 = vpop.xlane.xlu0 %2313 }
 0x5a0   : > { %2956 = vrcp.f32 %v2314_v32 }
 0x5aa   : > { %v2957_v33 = vpop.eup %2956 }
 0x5ab   : > { %v2316_v34 = vmul.f32 %v2957_v33, %v2955_v31 }
 0x5ad   : > { %2317 = vst [vmem:[%s3101_s29] sm:$0xff] %v2316_v34 }
 0x5ae PF: > { %s20_s17 = sadd.s32 1, %s2996_s17   ;;  %s3759_s13 = smov %s2988_s15 }
 0x5af   : > { %p17_p11 = scmp.ge.s32.totalorder %s20_s17, 18   ;;  %s3760_s14 = smov %s2992_s16 }
 0x5b0   : > { %s3761_s15 = smov %s3764_s18  ;;  %s3762_s16 = smov %s3768_s19 }
 0x5b1   :  { %19 = sbr.rel (!%p17_p11) target bundleno = 3 (0x3), region = 98 }

</bundles_post_ra>
